<compile_context>
chip_gen: v7x
topology: tpu7x:2x2x1
jax: 0.10.0
libtpu: 0.0.40
codegen_flags: <defaults>
</compile_context>

<pallas_src>
import functools
import math

import jax
import jax.numpy as jnp
from jax import lax
from jax.experimental import pallas as pl
from jax.experimental.pallas import tpu as pltpu


# --------------------------------------------------------------------------- #
# Kernel
# --------------------------------------------------------------------------- #
def rnn_kernel(x_ref, wih_ref, whh_ref, b_ref, wfc_ref, bfc_ref,   # inputs
               o_ref,                                              # output
               h_ref, xproj_ref,                                   # scratch
               *, t_chunk, batch_block, unroll, precision):
    """Grid = (batch_blocks, time_chunks).

    x_ref     : (t_chunk, batch_block, D_in_p)  time-major chunk of the input
    wih_ref   : (D_in_p, H_p)
    whh_ref   : (H_p, H_p)
    b_ref     : (1, H_p)            (= b_ih + b_hh, f32)
    wfc_ref   : (H_p, D_out_p)
    bfc_ref   : (1, D_out_p)        (f32)
    o_ref     : (batch_block, D_out_p)
    h_ref     : (batch_block, H_p)  f32 hidden state, persists across time chunks
    xproj_ref : (t_chunk, batch_block, H_p) f32 hoisted input projection
    """
    tc = pl.program_id(1)

    @pl.when(tc == 0)
    def _():
        h_ref[...] = jnp.zeros_like(h_ref)  # h_0 = 0 (PyTorch default)

    d_in = x_ref.shape[-1]
    h_p = whh_ref.shape[-1]

    # (1) Hoisted input projection: one big MXU-friendly matmul for the whole
    #     time chunk, stored time-major so the serial loop reads contiguous
    #     (batch_block, H_p) tiles along the leading scratch axis.
    x_flat = x_ref[...].reshape(t_chunk * batch_block, d_in)
    xproj = (
        jnp.dot(x_flat, wih_ref[...],
                preferred_element_type=jnp.float32, precision=precision)
        + b_ref[...]
    )
    xproj_ref[...] = xproj.reshape(t_chunk, batch_block, h_p)

    whh = whh_ref[...]
    mm_dtype = whh.dtype

    # (2) Serial recurrence: only h @ W_hh + tanh remains on the serial path.
    def step(t, h):
        xp = xproj_ref[t]                               # (batch_block, H_p)
        return jnp.tanh(
            xp + jnp.dot(h.astype(mm_dtype), whh,
                         preferred_element_type=jnp.float32,
                         precision=precision))

    h = lax.fori_loop(0, t_chunk, step, h_ref[...], unroll=unroll)
    h_ref[...] = h

    # (3) Final Linear only after the last time chunk (lane-dense padded D_out).
    @pl.when(tc == pl.num_programs(1) - 1)
    def _():
        o_ref[...] = (
            jnp.dot(h.astype(wfc_ref.dtype), wfc_ref[...],
                    preferred_element_type=jnp.float32, precision=precision)
            + bfc_ref[...]
        ).astype(o_ref.dtype)


# --------------------------------------------------------------------------- #
# Wrapper
# --------------------------------------------------------------------------- #
def _round_up(n, m):
    return ((n + m - 1) // m) * m


def _pad_to(a, shape):
    return jnp.pad(a, [(0, t - s) for s, t in zip(a.shape, shape)])


def _choose_batch_block(b_pad, cap=256):
    """Largest multiple of 8 that divides b_pad, capped (merge batch rows into
    one block before splitting across the grid)."""
    bb = min(b_pad, cap)
    bb -= bb % 8
    bb = max(bb, 8)
    while bb > 8 and (b_pad % bb) != 0:
        bb -= 8
    return bb


def _choose_t_chunk(T, bb, d_in_p, h_p, param_bytes, budget_bytes=16 << 20):
    """Largest divisor of T (capped at 128) whose chunk-dependent VMEM
    (double-buffered x chunk + f32 xproj scratch) fits the budget."""
    per_t = bb * (2 * d_in_p * param_bytes + 4 * h_p)
    cap = int(min(T, 128, max(1, budget_bytes // max(per_t, 1))))
    for c in range(cap, 0, -1):
        if T % c == 0:
            return c
    return T


def _vmem_estimate(t_chunk, bb, d_in_p, h_p, d_out_p, param_bytes):
    x_bytes = 2 * t_chunk * bb * d_in_p * param_bytes            # double buffer
    w_bytes = (2 * (d_in_p * h_p + h_p * h_p + h_p * d_out_p) * param_bytes
               + 2 * (h_p + d_out_p) * 4)                        # (conservatively x2)
    o_bytes = 2 * bb * d_out_p * 4
    s_bytes = bb * h_p * 4 + t_chunk * bb * h_p * 4              # h + xproj
    return x_bytes + w_bytes + o_bytes + s_bytes


def vanilla_rnn_forward(x_seq, w_ih, w_hh, b, w_fc, b_fc,
                        *, param_dtype=jnp.bfloat16,
                        t_chunk=None, batch_block=None):
    """x_seq: (B, T, D_in) batch-first -> out: (B, D_out) float32."""
    B, T, D_in = x_seq.shape
    H = w_ih.shape[1]
    D_out = w_fc.shape[1]

    # Pad to hardware tiles: sublanes (8) for batch, lanes (128) for features.
    Bp = _round_up(B, 8)
    Dinp = _round_up(D_in, 128)
    Hp = _round_up(H, 128)
    Doutp = _round_up(D_out, 128)

    param_dtype = jnp.dtype(param_dtype)
    param_bytes = param_dtype.itemsize
    # f32 path: force full-precision MXU passes so it matches the f32 reference.
    precision = (lax.Precision.HIGHEST
                 if param_dtype == jnp.dtype(jnp.float32) else None)

    if batch_block is None:
        batch_block = _choose_batch_block(Bp)
    assert Bp % batch_block == 0 and batch_block % 8 == 0
    if t_chunk is None:
        t_chunk = _choose_t_chunk(T, batch_block, Dinp, Hp, param_bytes)
    assert T % t_chunk == 0
    # Bounded unroll: full unroll only for small chunks (LLO visibility without
    # the code-size / vreg-pressure cliff for hundreds of steps).
    unroll = t_chunk if t_chunk <= 16 else 8

    # Time-major padded input so the recurrence reads xproj[t] along the leading
    # scratch axis.  transpose+pad+cast fuse into one XLA copy over x; for very
    # large B*T*D have the producer emit time-major x directly to drop it.
    x_tm = jnp.transpose(x_seq, (1, 0, 2))                       # (T, B, D_in)
    x_p = _pad_to(x_tm, (T, Bp, Dinp)).astype(param_dtype)
    wih_p = _pad_to(w_ih, (Dinp, Hp)).astype(param_dtype)
    whh_p = _pad_to(w_hh, (Hp, Hp)).astype(param_dtype)
    b_p = _pad_to(b, (1, Hp)).astype(jnp.float32)
    wfc_p = _pad_to(w_fc, (Hp, Doutp)).astype(param_dtype)
    bfc_p = _pad_to(b_fc, (1, Doutp)).astype(jnp.float32)

    grid = (Bp // batch_block, T // t_chunk)

    # Explicit VMEM budget: estimate + headroom, capped at 56 MiB so the same
    # tiling fits v7x (64 MiB physical) and lifts the 16/32 MiB scoped defaults
    # on v5e/v6e.
    vmem_limit = _vmem_estimate(t_chunk, batch_block, Dinp, Hp, Doutp,
                                param_bytes)
    vmem_limit = int(min(56 << 20, max(16 << 20, int(vmem_limit * 1.5))))

    out = pl.pallas_call(
        functools.partial(rnn_kernel, t_chunk=t_chunk,
                          batch_block=batch_block, unroll=unroll,
                          precision=precision),
        out_shape=jax.ShapeDtypeStruct((Bp, Doutp), jnp.float32),
        grid_spec=pltpu.PrefetchScalarGridSpec(
            num_scalar_prefetch=0,
            grid=grid,
            in_specs=[
                pl.BlockSpec((t_chunk, batch_block, Dinp),
                             lambda bi, tc: (tc, bi, 0)),
                # Weights use constant index maps (fetched once, kept resident).
                pl.BlockSpec((Dinp, Hp), lambda bi, tc: (0, 0)),
                pl.BlockSpec((Hp, Hp), lambda bi, tc: (0, 0)),
                pl.BlockSpec((1, Hp), lambda bi, tc: (0, 0)),
                pl.BlockSpec((Hp, Doutp), lambda bi, tc: (0, 0)),
                pl.BlockSpec((1, Doutp), lambda bi, tc: (0, 0)),
            ],
            out_specs=pl.BlockSpec((batch_block, Doutp),
                                   lambda bi, tc: (bi, 0)),
            scratch_shapes=[
                pltpu.VMEM((batch_block, Hp), jnp.float32),            # h
                pltpu.VMEM((t_chunk, batch_block, Hp), jnp.float32),   # xproj
            ],
        ),
        compiler_params=pltpu.CompilerParams(
            # Batch blocks are independent (2-TC split on v7x); time is serial.
            dimension_semantics=("parallel", "arbitrary"),
            vmem_limit_bytes=vmem_limit,
        ),
    )(x_p, wih_p, whh_p, b_p, wfc_p, bfc_p)

    return out[:B, :D_out]


# ---------------- deterministic parameter init (mirrors _init_weights) -------
def xavier_uniform(key, shape):
    fan_in, fan_out = shape
    a = math.sqrt(6.0 / (fan_in + fan_out))
    return jax.random.uniform(key, shape, jnp.float32, minval=-a, maxval=a)


def orthogonal(key, n):
    m = jax.random.normal(key, (n, n), jnp.float32)
    q, r = jnp.linalg.qr(m)
    q = q * jnp.sign(jnp.diag(r))[None, :]
    return q


def init_params(key, input_dim, hidden_dim, output_dim):
    k1, k2, k3 = jax.random.split(key, 3)
    w_ih = xavier_uniform(k1, (input_dim, hidden_dim))   # (D_in, H)
    w_hh = orthogonal(k2, hidden_dim)                    # (H, H)
    b = jnp.zeros((1, hidden_dim), jnp.float32)          # b_ih + b_hh = 0
    w_fc = xavier_uniform(k3, (hidden_dim, output_dim))  # (H, D_out)
    b_fc = jnp.zeros((1, output_dim), jnp.float32)
    return w_ih, w_hh, b, w_fc, b_fc


# ---------------- reference in plain JAX (for sanity check) ------------------
def reference_forward(x_seq, w_ih, w_hh, b, w_fc, b_fc):
    B, T, _ = x_seq.shape
    H = w_ih.shape[1]
    hp = lax.Precision.HIGHEST
    h = jnp.zeros((B, H), jnp.float32)
    for t in range(T):
        h = jnp.tanh(jnp.dot(x_seq[:, t, :], w_ih, precision=hp)
                     + jnp.dot(h, w_hh, precision=hp) + b)
    return jnp.dot(h, w_fc, precision=hp) + b_fc


if __name__ == "__main__":
    B, T, D_in, H, D_out = 2, 8, 16, 32, 8

    key = jax.random.PRNGKey(0)
    kx, kp = jax.random.split(key)
    x_seq = jax.random.normal(kx, (B, T, D_in), jnp.float32)
    w_ih, w_hh, b, w_fc, b_fc = init_params(kp, D_in, H, D_out)

    ref = reference_forward(x_seq, w_ih, w_hh, b, w_fc, b_fc)

    # Full-precision path: tight check against the f32 reference.
    out_f32 = jax.block_until_ready(
        vanilla_rnn_forward(x_seq, w_ih, w_hh, b, w_fc, b_fc,
                            param_dtype=jnp.float32))
    assert out_f32.shape == (B, D_out)
    assert jnp.allclose(out_f32, ref, atol=1e-3, rtol=1e-3), (out_f32, ref)

    # bf16 weights/x (f32 accumulation, f32 hidden state): performance default.
    # Note: bf16 W_hh quantization compounds over T steps; re-validate the
    # tolerance for long sequences.
    out_bf16 = jax.block_until_ready(
        vanilla_rnn_forward(x_seq, w_ih, w_hh, b, w_fc, b_fc,
                            param_dtype=jnp.bfloat16))
    assert out_bf16.shape == (B, D_out)
    assert jnp.allclose(out_bf16, ref, atol=6e-2, rtol=6e-2), (out_bf16, ref)

    print("KERNEL_OK")
</pallas_src>

<mosaic_0001>
module attributes {stable_mosaic.version = 11 : i64} {
  func.func @rnn_kernel(%arg0: i32, %arg1: i32, %arg2: memref<8x8x128xf32, #tpu.memory_space<vmem>>, %arg3: memref<128x128xf32, #tpu.memory_space<vmem>>, %arg4: memref<128x128xf32, #tpu.memory_space<vmem>>, %arg5: memref<1x128xf32, #tpu.memory_space<vmem>>, %arg6: memref<128x128xf32, #tpu.memory_space<vmem>>, %arg7: memref<1x128xf32, #tpu.memory_space<vmem>>, %arg8: memref<8x128xf32, #tpu.memory_space<vmem>>, %arg9: memref<8x128xf32, #tpu.memory_space<vmem>>, %arg10: memref<8x8x128xf32, #tpu.memory_space<vmem>>) attributes {dimension_semantics = [#tpu.dimension_semantics<parallel>, #tpu.dimension_semantics<arbitrary>], iteration_bounds = array<i64: 1, 1>, scalar_prefetch = 0 : i64, scratch_operands = 2 : i64, tpu.core_type = #tpu.core_type<tc>, window_params = [{transform_indices = @transform_0, window_bounds = array<i64: 8, 8, 128>}, {pipeline_mode = #tpu.pipeline_mode<synchronous>, transform_indices = @transform_1, window_bounds = array<i64: 128, 128>}, {pipeline_mode = #tpu.pipeline_mode<synchronous>, transform_indices = @transform_2, window_bounds = array<i64: 128, 128>}, {pipeline_mode = #tpu.pipeline_mode<synchronous>, transform_indices = @transform_3, window_bounds = array<i64: 1, 128>}, {pipeline_mode = #tpu.pipeline_mode<synchronous>, transform_indices = @transform_4, window_bounds = array<i64: 128, 128>}, {pipeline_mode = #tpu.pipeline_mode<synchronous>, transform_indices = @transform_5, window_bounds = array<i64: 1, 128>}, {transform_indices = @transform_6, window_bounds = array<i64: 8, 128>}]} {
    %c0_i32 = arith.constant 0 : i32
    %0 = arith.cmpi eq, %arg1, %c0_i32 : i32
    %1 = arith.extui %0 : i1 to i32
    %c0_i32_0 = arith.constant 0 : i32
    %2 = arith.cmpi ne, %1, %c0_i32_0 : i32
    scf.if %2 {
      %cst_43 = arith.constant 0.000000e+00 : f32
      %66 = vector.broadcast %cst_43 : f32 to vector<8x128xf32>
      %c0_44 = arith.constant 0 : index
      %c0_45 = arith.constant 0 : index
      %67 = vector.load %arg9[%c0_44, %c0_45] : memref<8x128xf32, #tpu.memory_space<vmem>>, vector<8x128xf32>
      tpu.vector_store %arg9[%c0_44, %c0_45], %66 {strides = array<i32>} : memref<8x128xf32, #tpu.memory_space<vmem>>, vector<8x128xf32>,
    } else {
    }
    %c0 = arith.constant 0 : index
    %c0_1 = arith.constant 0 : index
    %c0_2 = arith.constant 0 : index
    %3 = vector.load %arg2[%c0, %c0_1, %c0_2] : memref<8x8x128xf32, #tpu.memory_space<vmem>>, vector<8x8x128xf32>
    %4 = vector.shape_cast %3 : vector<8x8x128xf32> to vector<64x128xf32>
    %c0_3 = arith.constant 0 : index
    %c0_4 = arith.constant 0 : index
    %5 = vector.load %arg3[%c0_3, %c0_4] : memref<128x128xf32, #tpu.memory_space<vmem>>, vector<128x128xf32>
    %cst = arith.constant dense<0.000000e+00> : vector<64x128xf32>
    %6 = tpu.matmul %4, %5, %cst {dimension_numbers = #tpu.dot_dimension_numbers<[1], [0], [0], [1], [0, 0, 1, 1], [], []>, precision = #tpu.contract_precision<fp32>} : vector<64x128xf32>, vector<128x128xf32>, vector<64x128xf32> -> vector<64x128xf32>
    %c0_5 = arith.constant 0 : index
    %c0_6 = arith.constant 0 : index
    %7 = vector.load %arg5[%c0_5, %c0_6] : memref<1x128xf32, #tpu.memory_space<vmem>>, vector<1x128xf32>
    %8 = vector.broadcast %7 : vector<1x128xf32> to vector<64x128xf32>
    %9 = arith.addf %6, %8 : vector<64x128xf32>
    %10 = vector.shape_cast %9 : vector<64x128xf32> to vector<8x8x128xf32>
    %c0_7 = arith.constant 0 : index
    %c0_8 = arith.constant 0 : index
    %c0_9 = arith.constant 0 : index
    %11 = vector.load %arg10[%c0_7, %c0_8, %c0_9] : memref<8x8x128xf32, #tpu.memory_space<vmem>>, vector<8x8x128xf32>
    tpu.vector_store %arg10[%c0_7, %c0_8, %c0_9], %10 {strides = array<i32>} : memref<8x8x128xf32, #tpu.memory_space<vmem>>, vector<8x8x128xf32>,
    %c0_10 = arith.constant 0 : index
    %c0_11 = arith.constant 0 : index
    %12 = vector.load %arg4[%c0_10, %c0_11] : memref<128x128xf32, #tpu.memory_space<vmem>>, vector<128x128xf32>
    %c0_12 = arith.constant 0 : index
    %c0_13 = arith.constant 0 : index
    %13 = vector.load %arg9[%c0_12, %c0_13] : memref<8x128xf32, #tpu.memory_space<vmem>>, vector<8x128xf32>
    %c0_i32_14 = arith.constant 0 : i32
    %14 = arith.index_cast %c0_i32_14 : i32 to index
    %c0_15 = arith.constant 0 : index
    %c0_16 = arith.constant 0 : index
    %15 = vector.load %arg10[%14, %c0_15, %c0_16] : memref<8x8x128xf32, #tpu.memory_space<vmem>>, vector<1x8x128xf32>
    %16 = vector.shape_cast %15 : vector<1x8x128xf32> to vector<8x128xf32>
    %cst_17 = arith.constant dense<0.000000e+00> : vector<8x128xf32>
    %17 = tpu.matmul %13, %12, %cst_17 {dimension_numbers = #tpu.dot_dimension_numbers<[1], [0], [0], [1], [0, 0, 1, 1], [], []>, precision = #tpu.contract_precision<fp32>} : vector<8x128xf32>, vector<128x128xf32>, vector<8x128xf32> -> vector<8x128xf32>
    %18 = arith.addf %16, %17 : vector<8x128xf32>
    %19 = math.tanh %18 : vector<8x128xf32>
    %c1_i32 = arith.constant 1 : i32
    %20 = arith.index_cast %c1_i32 : i32 to index
    %c0_18 = arith.constant 0 : index
    %c0_19 = arith.constant 0 : index
    %21 = vector.load %arg10[%20, %c0_18, %c0_19] : memref<8x8x128xf32, #tpu.memory_space<vmem>>, vector<1x8x128xf32>
    %22 = vector.shape_cast %21 : vector<1x8x128xf32> to vector<8x128xf32>
    %cst_20 = arith.constant dense<0.000000e+00> : vector<8x128xf32>
    %23 = tpu.matmul %19, %12, %cst_20 {dimension_numbers = #tpu.dot_dimension_numbers<[1], [0], [0], [1], [0, 0, 1, 1], [], []>, precision = #tpu.contract_precision<fp32>} : vector<8x128xf32>, vector<128x128xf32>, vector<8x128xf32> -> vector<8x128xf32>
    %24 = arith.addf %22, %23 : vector<8x128xf32>
    %25 = math.tanh %24 : vector<8x128xf32>
    %c2_i32 = arith.constant 2 : i32
    %26 = arith.index_cast %c2_i32 : i32 to index
    %c0_21 = arith.constant 0 : index
    %c0_22 = arith.constant 0 : index
    %27 = vector.load %arg10[%26, %c0_21, %c0_22] : memref<8x8x128xf32, #tpu.memory_space<vmem>>, vector<1x8x128xf32>
    %28 = vector.shape_cast %27 : vector<1x8x128xf32> to vector<8x128xf32>
    %cst_23 = arith.constant dense<0.000000e+00> : vector<8x128xf32>
    %29 = tpu.matmul %25, %12, %cst_23 {dimension_numbers = #tpu.dot_dimension_numbers<[1], [0], [0], [1], [0, 0, 1, 1], [], []>, precision = #tpu.contract_precision<fp32>} : vector<8x128xf32>, vector<128x128xf32>, vector<8x128xf32> -> vector<8x128xf32>
    %30 = arith.addf %28, %29 : vector<8x128xf32>
    %31 = math.tanh %30 : vector<8x128xf32>
    %c3_i32 = arith.constant 3 : i32
    %32 = arith.index_cast %c3_i32 : i32 to index
    %c0_24 = arith.constant 0 : index
    %c0_25 = arith.constant 0 : index
    %33 = vector.load %arg10[%32, %c0_24, %c0_25] : memref<8x8x128xf32, #tpu.memory_space<vmem>>, vector<1x8x128xf32>
    %34 = vector.shape_cast %33 : vector<1x8x128xf32> to vector<8x128xf32>
    %cst_26 = arith.constant dense<0.000000e+00> : vector<8x128xf32>
    %35 = tpu.matmul %31, %12, %cst_26 {dimension_numbers = #tpu.dot_dimension_numbers<[1], [0], [0], [1], [0, 0, 1, 1], [], []>, precision = #tpu.contract_precision<fp32>} : vector<8x128xf32>, vector<128x128xf32>, vector<8x128xf32> -> vector<8x128xf32>
    %36 = arith.addf %34, %35 : vector<8x128xf32>
    %37 = math.tanh %36 : vector<8x128xf32>
    %c4_i32 = arith.constant 4 : i32
    %38 = arith.index_cast %c4_i32 : i32 to index
    %c0_27 = arith.constant 0 : index
    %c0_28 = arith.constant 0 : index
    %39 = vector.load %arg10[%38, %c0_27, %c0_28] : memref<8x8x128xf32, #tpu.memory_space<vmem>>, vector<1x8x128xf32>
    %40 = vector.shape_cast %39 : vector<1x8x128xf32> to vector<8x128xf32>
    %cst_29 = arith.constant dense<0.000000e+00> : vector<8x128xf32>
    %41 = tpu.matmul %37, %12, %cst_29 {dimension_numbers = #tpu.dot_dimension_numbers<[1], [0], [0], [1], [0, 0, 1, 1], [], []>, precision = #tpu.contract_precision<fp32>} : vector<8x128xf32>, vector<128x128xf32>, vector<8x128xf32> -> vector<8x128xf32>
    %42 = arith.addf %40, %41 : vector<8x128xf32>
    %43 = math.tanh %42 : vector<8x128xf32>
    %c5_i32 = arith.constant 5 : i32
    %44 = arith.index_cast %c5_i32 : i32 to index
    %c0_30 = arith.constant 0 : index
    %c0_31 = arith.constant 0 : index
    %45 = vector.load %arg10[%44, %c0_30, %c0_31] : memref<8x8x128xf32, #tpu.memory_space<vmem>>, vector<1x8x128xf32>
    %46 = vector.shape_cast %45 : vector<1x8x128xf32> to vector<8x128xf32>
    %cst_32 = arith.constant dense<0.000000e+00> : vector<8x128xf32>
    %47 = tpu.matmul %43, %12, %cst_32 {dimension_numbers = #tpu.dot_dimension_numbers<[1], [0], [0], [1], [0, 0, 1, 1], [], []>, precision = #tpu.contract_precision<fp32>} : vector<8x128xf32>, vector<128x128xf32>, vector<8x128xf32> -> vector<8x128xf32>
    %48 = arith.addf %46, %47 : vector<8x128xf32>
    %49 = math.tanh %48 : vector<8x128xf32>
    %c6_i32 = arith.constant 6 : i32
    %50 = arith.index_cast %c6_i32 : i32 to index
    %c0_33 = arith.constant 0 : index
    %c0_34 = arith.constant 0 : index
    %51 = vector.load %arg10[%50, %c0_33, %c0_34] : memref<8x8x128xf32, #tpu.memory_space<vmem>>, vector<1x8x128xf32>
    %52 = vector.shape_cast %51 : vector<1x8x128xf32> to vector<8x128xf32>
    %cst_35 = arith.constant dense<0.000000e+00> : vector<8x128xf32>
    %53 = tpu.matmul %49, %12, %cst_35 {dimension_numbers = #tpu.dot_dimension_numbers<[1], [0], [0], [1], [0, 0, 1, 1], [], []>, precision = #tpu.contract_precision<fp32>} : vector<8x128xf32>, vector<128x128xf32>, vector<8x128xf32> -> vector<8x128xf32>
    %54 = arith.addf %52, %53 : vector<8x128xf32>
    %55 = math.tanh %54 : vector<8x128xf32>
    %c7_i32 = arith.constant 7 : i32
    %56 = arith.index_cast %c7_i32 : i32 to index
    %c0_36 = arith.constant 0 : index
    %c0_37 = arith.constant 0 : index
    %57 = vector.load %arg10[%56, %c0_36, %c0_37] : memref<8x8x128xf32, #tpu.memory_space<vmem>>, vector<1x8x128xf32>
    %58 = vector.shape_cast %57 : vector<1x8x128xf32> to vector<8x128xf32>
    %cst_38 = arith.constant dense<0.000000e+00> : vector<8x128xf32>
    %59 = tpu.matmul %55, %12, %cst_38 {dimension_numbers = #tpu.dot_dimension_numbers<[1], [0], [0], [1], [0, 0, 1, 1], [], []>, precision = #tpu.contract_precision<fp32>} : vector<8x128xf32>, vector<128x128xf32>, vector<8x128xf32> -> vector<8x128xf32>
    %60 = arith.addf %58, %59 : vector<8x128xf32>
    %61 = math.tanh %60 : vector<8x128xf32>
    %c8_i32 = arith.constant 8 : i32
    %c0_39 = arith.constant 0 : index
    %c0_40 = arith.constant 0 : index
    %62 = vector.load %arg9[%c0_39, %c0_40] : memref<8x128xf32, #tpu.memory_space<vmem>>, vector<8x128xf32>
    tpu.vector_store %arg9[%c0_39, %c0_40], %61 {strides = array<i32>} : memref<8x128xf32, #tpu.memory_space<vmem>>, vector<8x128xf32>,
    %c0_i32_41 = arith.constant 0 : i32
    %63 = arith.cmpi eq, %arg1, %c0_i32_41 : i32
    %64 = arith.extui %63 : i1 to i32
    %c0_i32_42 = arith.constant 0 : i32
    %65 = arith.cmpi ne, %64, %c0_i32_42 : i32
    scf.if %65 {
      %c0_43 = arith.constant 0 : index
      %c0_44 = arith.constant 0 : index
      %66 = vector.load %arg6[%c0_43, %c0_44] : memref<128x128xf32, #tpu.memory_space<vmem>>, vector<128x128xf32>
      %cst_45 = arith.constant dense<0.000000e+00> : vector<8x128xf32>
      %67 = tpu.matmul %61, %66, %cst_45 {dimension_numbers = #tpu.dot_dimension_numbers<[1], [0], [0], [1], [0, 0, 1, 1], [], []>, precision = #tpu.contract_precision<fp32>} : vector<8x128xf32>, vector<128x128xf32>, vector<8x128xf32> -> vector<8x128xf32>
      %c0_46 = arith.constant 0 : index
      %c0_47 = arith.constant 0 : index
      %68 = vector.load %arg7[%c0_46, %c0_47] : memref<1x128xf32, #tpu.memory_space<vmem>>, vector<1x128xf32>
      %69 = vector.broadcast %68 : vector<1x128xf32> to vector<8x128xf32>
      %70 = arith.addf %67, %69 : vector<8x128xf32>
      %c0_48 = arith.constant 0 : index
      %c0_49 = arith.constant 0 : index
      %71 = vector.load %arg8[%c0_48, %c0_49] : memref<8x128xf32, #tpu.memory_space<vmem>>, vector<8x128xf32>
      tpu.vector_store %arg8[%c0_48, %c0_49], %70 {strides = array<i32>} : memref<8x128xf32, #tpu.memory_space<vmem>>, vector<8x128xf32>,
    } else {
    }
    return
  }
  func.func @transform_0(%arg0: i32, %arg1: i32) -> (i32, i32, i32) {
    %c0_i32 = arith.constant 0 : i32
    %c0_i32_0 = arith.constant 0 : i32
    return %arg1, %arg0, %c0_i32 : i32, i32, i32
  }
  func.func @transform_1(%arg0: i32, %arg1: i32) -> (i32, i32) {
    %c0_i32 = arith.constant 0 : i32
    %c0_i32_0 = arith.constant 0 : i32
    %c0_i32_1 = arith.constant 0 : i32
    return %c0_i32, %c0_i32_0 : i32, i32
  }
  func.func @transform_2(%arg0: i32, %arg1: i32) -> (i32, i32) {
    %c0_i32 = arith.constant 0 : i32
    %c0_i32_0 = arith.constant 0 : i32
    %c0_i32_1 = arith.constant 0 : i32
    return %c0_i32, %c0_i32_0 : i32, i32
  }
  func.func @transform_3(%arg0: i32, %arg1: i32) -> (i32, i32) {
    %c0_i32 = arith.constant 0 : i32
    %c0_i32_0 = arith.constant 0 : i32
    %c0_i32_1 = arith.constant 0 : i32
    return %c0_i32, %c0_i32_0 : i32, i32
  }
  func.func @transform_4(%arg0: i32, %arg1: i32) -> (i32, i32) {
    %c0_i32 = arith.constant 0 : i32
    %c0_i32_0 = arith.constant 0 : i32
    %c0_i32_1 = arith.constant 0 : i32
    return %c0_i32, %c0_i32_0 : i32, i32
  }
  func.func @transform_5(%arg0: i32, %arg1: i32) -> (i32, i32) {
    %c0_i32 = arith.constant 0 : i32
    %c0_i32_0 = arith.constant 0 : i32
    %c0_i32_1 = arith.constant 0 : i32
    return %c0_i32, %c0_i32_0 : i32, i32
  }
  func.func @transform_6(%arg0: i32, %arg1: i32) -> (i32, i32) {
    %c0_i32 = arith.constant 0 : i32
    %c0_i32_0 = arith.constant 0 : i32
    return %arg0, %c0_i32 : i32, i32
  }
}

</mosaic_0001>

<bundles_post_ra>
// kernel: tpu_custom_call.1
= control target key start
LH: loop header
LB: loop body
LE: loop exit
PB: predicated region body
PF: predicated region fallthrough
CT: control target
= control target key end

     0   :  { %11 = vsyncpa [#allocation5], 0  ;;  %s14081_s0 = inlined_call_operand.hbm [shape: f32[8,8,128], index: 0, kind: input, shape index: {}]   ;;  %s14082_s1 = inlined_call_operand.hbm [shape: f32[128,128], index: 1, kind: input, shape index: {}]   ;;  %s14083_s2 = inlined_call_operand.hbm [shape: f32[128,128], index: 2, kind: input, shape index: {}]   ;;  %s14084_s3 = inlined_call_operand.vmem [shape: f32[1,128], index: 3, kind: input, shape index: {}]   ;;  %s14085_s4 = inlined_call_operand.hbm [shape: f32[128,128], index: 4, kind: input, shape index: {}]   ;;  %s14086_s5 = inlined_call_operand.vmem [shape: f32[1,128], index: 5, kind: input, shape index: {}]   ;;  %s14087_s6 = inlined_call_operand.hbm [shape: f32[8,128], index: 6, kind: output, shape index: {}]  }
   0x1   :  { %12 = vsyncpa [#allocation8], 0 }
   0x2   :  { %13 = vsyncpa [#allocation11], 0 }
   0x3   :  { %14 = vsyncpa [#allocation6], 0  ;;  %s11916_s21 = smov [#allocation7]   ;;  %s11917_s23 = smov [#allocation4]  }
   0x4   :  { %s32_s22 = sshll.u32 %s11916_s21, 4  ;;  %s20_s24 = sshll.u32 %s11917_s23, 4  ;;  %s33_s22 = int_to_ptr.vmem [resolvable:$true] %s32_s22  ;;  %s11961_s24 = int_to_ptr.vmem [resolvable:$true] %s20_s24 }
   0x5   :  { %s11798_s27 = scalar_lea.hbm %s14082_s1, 2048 }
   0x6   :  { %p11799_p0 = scmp.ne.s32.totalorder %s14082_s1, %s11798_s27  ;;  %p11802_p1 = scmp.lt.u32.totalorder %s11798_s27, %s14082_s1 }
   0x8   :  { %p11804_p2 = pnand %p11802_p1, %p11799_p0 }
   0xa   :  { %11807 = shalt.err (!%p11804_p2)
}
   0xb   :  { %s11808_s8 = scalar_lea.vmem %s33_s22, 2048  ;;  %p11813_p4 = scmp.lt.s32.totalorder %s33_s22, %s33_s22 }
   0xc   :  { %p11809_p3 = scmp.ne.s32.totalorder %s33_s22, %s11808_s8  ;;  %p11814_p5 = scmp.lt.s32.totalorder %s11808_s8, %s11808_s8 }
   0xe   :  { %p11815_p6 = por %p11814_p5, %p11813_p4 }
  0x10   :  { %p11816_p7 = pnand %p11815_p6, %p11809_p3 }
  0x12   :  { %11819 = shalt.err (!%p11816_p7)
}
  0x13   :  { %s11918_s9 = smov 128   ;;  %s11919_s10 = smov 8  }
  0x14   :  { %38 = dma.hbm_to_vmem [thread:$0]  %s14082_s1, 2048, %s33_s22, [#allocation8], %s11918_s9, %s11918_s9, %s11919_s10  }
  0x15   :  { %s11820_s15 = scalar_lea.hbm %s14081_s0, 1024 }
  0x16   :  { %p11821_p8 = scmp.ne.s32.totalorder %s14081_s0, %s11820_s15  ;;  %p11824_p9 = scmp.lt.u32.totalorder %s11820_s15, %s14081_s0 }
  0x18   :  { %p11826_p10 = pnand %p11824_p9, %p11821_p8 }
  0x1a   :  { %11829 = shalt.err (!%p11826_p10)
}
  0x1b   :  { %s11830_s20 = scalar_lea.vmem %s11961_s24, 1024  ;;  %p11835_p12 = scmp.lt.s32.totalorder %s11961_s24, %s11961_s24 }
  0x1c   :  { %p11831_p11 = scmp.ne.s32.totalorder %s11961_s24, %s11830_s20  ;;  %p11836_p13 = scmp.lt.s32.totalorder %s11830_s20, %s11830_s20 }
  0x1e   :  { %p11837_p0 = por %p11836_p13, %p11835_p12 }
  0x20   :  { %p11838_p1 = pnand %p11837_p0, %p11831_p11 }
  0x22   :  { %11841 = shalt.err (!%p11838_p1)
}
  0x23   :  { %26 = dma.hbm_to_vmem [thread:$0]  %s14081_s0, 1024, %s11961_s24, [#allocation5], %s11918_s9, %s11918_s9, %s11919_s10  }
  0x24   :  { %s11920_s22 = smov [#allocation9]   ;;  %s11921_s25 = smov [#allocation10]  }
  0x25   :  { %s44_s23 = sshll.u32 %s11920_s22, 4  ;;  %s58_s26 = sshll.u32 %s11921_s25, 4  ;;  %s45_s23 = int_to_ptr.vmem [resolvable:$true] %s44_s23  ;;  %s11998_s26 = int_to_ptr.vmem [resolvable:$true] %s58_s26 }
  0x26   :  { %s11842_s29 = scalar_lea.hbm %s14083_s2, 2048 }
  0x27   :  { %p11843_p2 = scmp.ne.s32.totalorder %s14083_s2, %s11842_s29  ;;  %p11846_p3 = scmp.lt.u32.totalorder %s11842_s29, %s14083_s2 }
  0x29   :  { %p11848_p4 = pnand %p11846_p3, %p11843_p2 }
  0x2b   :  { %11851 = shalt.err (!%p11848_p4)
}
  0x2c   :  { %s11852_s0 = scalar_lea.vmem %s45_s23, 2048  ;;  %p11857_p6 = scmp.lt.s32.totalorder %s45_s23, %s45_s23 }
  0x2d   :  { %p11853_p5 = scmp.ne.s32.totalorder %s45_s23, %s11852_s0  ;;  %p11858_p7 = scmp.lt.s32.totalorder %s11852_s0, %s11852_s0 }
  0x2f   :  { %p11859_p8 = por %p11858_p7, %p11857_p6 }
  0x31   :  { %p11860_p9 = pnand %p11859_p8, %p11853_p5 }
  0x33   :  { %11863 = shalt.err (!%p11860_p9)
}
  0x34   :  { %50 = dma.hbm_to_vmem [thread:$0]  %s14083_s2, 2048, %s45_s23, [#allocation8], %s11918_s9, %s11918_s9, %s11919_s10  }
  0x35   :  { %s11864_s15 = scalar_lea.hbm %s14085_s4, 2048 }
  0x36   :  { %p11865_p10 = scmp.ne.s32.totalorder %s14085_s4, %s11864_s15  ;;  %p11868_p11 = scmp.lt.u32.totalorder %s11864_s15, %s14085_s4 }
  0x38   :  { %p11870_p12 = pnand %p11868_p11, %p11865_p10 }
  0x3a   :  { %11873 = shalt.err (!%p11870_p12)
}
  0x3b   :  { %s11874_s20 = scalar_lea.vmem %s11998_s26, 2048  ;;  %p11879_p0 = scmp.lt.s32.totalorder %s11998_s26, %s11998_s26 }
  0x3c   :  { %p11875_p13 = scmp.ne.s32.totalorder %s11998_s26, %s11874_s20  ;;  %p11880_p1 = scmp.lt.s32.totalorder %s11874_s20, %s11874_s20 }
  0x3e   :  { %p11881_p2 = por %p11880_p1, %p11879_p0 }
  0x40   :  { %p11882_p3 = pnand %p11881_p2, %p11875_p13 }
  0x42   :  { %11885 = shalt.err (!%p11882_p3)
}
  0x43   :  { %64 = dma.hbm_to_vmem [thread:$0]  %s14085_s4, 2048, %s11998_s26, [#allocation11], %s11918_s9, %s11918_s9, %s11919_s10  }
  0x44   :  { %11908 = dma.done.wait [#allocation5], 1024  }
  0x45   :  { %11909 = vsyncadd [#allocation5], 4294966272 }
  0x46   :  { %11910 = dma.done.wait [#allocation8], 4096  }
  0x47   :  { %11911 = vsyncadd [#allocation8], 4294963200 }
  0x48   :  { %11912 = dma.done.wait [#allocation11], 2048  }
  0x49   :  { %11913 = vsyncadd [#allocation11], 4294965248  ;;  %v14124_v0 = vmov 0.0|0.0   ;;  %vm11923_vm0 = vmmov 0   ;;  %v14088_v1 = vmov 0.0   ;;  %v12038_v2 = vld [vmem:[#allocation7] sm:$0xff] }
  0x4a   :  { %10337 = vmatprep.subr.bf16.mxu1 %v14124_v0  ;;  %8287 = vmatprep.mubr.msk.f32.mxu1 %vm11923_vm0, %v14088_v1  ;;  %v12040_v3 = vld [vmem:[#allocation7 + $0x8] sm:$0xff]  ;;  %v12042_v4 = vld [vmem:[#allocation9] sm:$0xff]  ;;  %v116_v5 = vand.u32 4294901760, %v12038_v2  ;;  %v12049_v9 = vld [vmem:[#allocation7 + $0x10] sm:$0xff]  ;;  %s11925_s21 = smov [#allocation12]  }
  0x4b   :  { %v119_v6 = vand.u32 4294901760, %v12040_v3  ;;  %v12046_v7 = vld [vmem:[#allocation9 + $0x8] sm:$0xff]  ;;  %v1084_v8 = vand.u32 4294901760, %v12042_v4  ;;  %v12051_v10 = vld [vmem:[#allocation7 + $0x18] sm:$0xff]  ;;  %v14107_v12 = vand.u32 4294901760, %v12049_v9  ;;  %v12056_v14 = vld [vmem:[#allocation9 + $0x10] sm:$0xff] }
  0x4c   :  { %v1087_v11 = vand.u32 4294901760, %v12046_v7  ;;  %v14106_v13 = vand.u32 4294901760, %v12051_v10  ;;  %v12058_v15 = vld [vmem:[#allocation9 + $0x18] sm:$0xff]  ;;  %v12060_v16 = vld [vmem:[#allocation7 + $0x20] sm:$0xff]  ;;  %v14103_v18 = vand.u32 4294901760, %v12056_v14  ;;  %v12070_v20 = vld [vmem:[#allocation7 + $0x28] sm:$0xff] }
  0x4d   :  { %v12066_v17 = vpack.c.bf16 %v119_v6, %v116_v5  ;;  %v14102_v19 = vand.u32 4294901760, %v12058_v15  ;;  %v14101_v21 = vand.u32 4294901760, %v12060_v16  ;;  %v12073_v22 = vld [vmem:[#allocation9 + $0x20] sm:$0xff]  ;;  %v12075_v23 = vld [vmem:[#allocation9 + $0x28] sm:$0xff]  ;;  %v14096_v26 = vand.u32 4294901760, %v12070_v20  ;;  %v12091_v28 = vld [vmem:[#allocation7 + $0x30] sm:$0xff] }
  0x4e   :  { %v12081_v24 = vpack.c.bf16 %v1087_v11, %v1084_v8  ;;  %v12087_v25 = vpack.c.bf16 %v14106_v13, %v14107_v12  ;;  %v14095_v27 = vand.u32 4294901760, %v12073_v22  ;;  %v12093_v29 = vld [vmem:[#allocation7 + $0x38] sm:$0xff]  ;;  %v12095_v30 = vld [vmem:[#allocation9 + $0x30] sm:$0xff]  ;;  %v14094_v31 = vand.u32 4294901760, %v12075_v23  ;;  %v12103_v35 = vld [vmem:[#allocation7 + $0x40] sm:$0xff]  ;;  %s6916_s22 = sshll.u32 %s11925_s21, 4  ;;  %s6917_s22 = int_to_ptr.vmem [resolvable:$true] %s6916_s22 }
  0x4f   :  { %14213 = vst [vmem:[#allocation17_spill] sm:$0xff] %v12066_v17  ;;  %10146 = vmatprep.subr.bf16.mxu0 %v12066_v17  ;;  %v14093_v32 = vand.u32 4294901760, %v12091_v28  ;;  %v14092_v33 = vand.u32 4294901760, %v12093_v29  ;;  %v12101_v34 = vld [vmem:[#allocation9 + $0x38] sm:$0xff]  ;;  %v12105_v36 = vld [vmem:[#allocation7 + $0x48] sm:$0xff]  ;;  %v12113_v37 = vpack.c.bf16 %v14102_v19, %v14103_v18  ;;  %v14091_v38 = vand.u32 4294901760, %v12095_v30  ;;  %p11891_p5 = scmp.lt.s32.totalorder %s6917_s22, %s6917_s22 }
  0x50   :  { %14214 = vst [vmem:[#allocation18_spill] sm:$0xff] %v12081_v24  ;;  %14215 = vst [vmem:[#allocation19_spill] sm:$0xff] %v12087_v25  ;;  %10339 = vmatpush3.bf16.msra.mxu1 %v12081_v24  ;;  %10148 = vmatpush3.bf16.msra.mxu0 %v12066_v17  ;;  %v14090_v39 = vand.u32 4294901760, %v12101_v34  ;;  %v14100_v40 = vand.u32 4294901760, %v12103_v35  ;;  %v12118_v41 = vld [vmem:[#allocation9 + $0x40] sm:$0xff]  ;;  %v12120_v42 = vld [vmem:[#allocation9 + $0x48] sm:$0xff]  ;;  %v12130_v44 = vpack.c.bf16 %v14096_v26, %v14101_v21 }
  0x51   :  { %14216 = vst [vmem:[#allocation20_spill] sm:$0xff] %v12113_v37  ;;  %v12122_v43 = vld [vmem:[#allocation7 + $0x50] sm:$0xff]  ;;  %10340 = vmatprep.subr.bf16.mxu1 %v14124_v0  ;;  %10150 = vmatprep.subr.bf16.mxu0 %v12087_v25  ;;  %v12136_v45 = vpack.c.bf16 %v14094_v31, %v14095_v27  ;;  %v14097_v46 = vand.u32 4294901760, %v12105_v36  ;;  %v14099_v47 = vand.u32 4294901760, %v12118_v41  ;;  %v12140_v48 = vld [vmem:[#allocation7 + $0x58] sm:$0xff]  ;;  %v12150_v51 = vpack.c.bf16 %v14092_v33, %v14093_v32  ;;  %v12155_v55 = vld [vmem:[#allocation7 + $0x60] sm:$0xff] }
  0x52   :  { %14217 = vst [vmem:[#allocation21_spill] sm:$0xff] %v12130_v44  ;;  %v12142_v49 = vld [vmem:[#allocation9 + $0x50] sm:$0xff]  ;;  %v12144_v50 = vld [vmem:[#allocation9 + $0x58] sm:$0xff]  ;;  %v14098_v52 = vand.u32 4294901760, %v12120_v42  ;;  %v14105_v53 = vand.u32 4294901760, %v12122_v43  ;;  %v14104_v54 = vand.u32 4294901760, %v12140_v48  ;;  %v12165_v58 = vpack.c.bf16 %v14090_v39, %v14091_v38 }
  0x53   :  { %14218 = vst [vmem:[#allocation22_spill] sm:$0xff] %v12136_v45  ;;  %14219 = vst [vmem:[#allocation23_spill] sm:$0xff] %v12150_v51  ;;  %v12157_v56 = vld [vmem:[#allocation7 + $0x68] sm:$0xff]  ;;  %v12159_v57 = vld [vmem:[#allocation9 + $0x60] sm:$0xff]  ;;  %v14115_v59 = vand.u32 4294901760, %v12142_v49  ;;  %v14108_v60 = vand.u32 4294901760, %v12144_v50  ;;  %v12182_v39 = vpack.c.bf16 %v14097_v46, %v14100_v40 }
  0x54   :  { %14220 = vst [vmem:[#allocation24_spill] sm:$0xff] %v12165_v58  ;;  %v14114_v61 = vand.u32 4294901760, %v12155_v55  ;;  %v12170_v62 = vld [vmem:[#allocation9 + $0x68] sm:$0xff]  ;;  %v12172_v63 = vld [vmem:[#allocation7 + $0x70] sm:$0xff]  ;;  %v12174_v1 = vld [vmem:[#allocation7 + $0x78] sm:$0xff]  ;;  %10342 = vmatpush3.bf16.msra.mxu1 %v12113_v37  ;;  %10152 = vmatpush3.bf16.msra.mxu0 %v12087_v25  ;;  %v12188_v38 = vpack.c.bf16 %v14098_v52, %v14099_v47  ;;  %v14109_v33 = vand.u32 4294901760, %v12157_v56  ;;  %v12202_v46 = vpack.c.bf16 %v14104_v54, %v14105_v53 }
  0x55   :  { %14221 = vst [vmem:[#allocation25_spill] sm:$0xff] %v12182_v39  ;;  %v14111_v32 = vand.u32 4294901760, %v12159_v57  ;;  %v12192_v31 = vld [vmem:[#allocation9 + $0x70] sm:$0xff]  ;;  %v12194_v27 = vld [vmem:[#allocation9 + $0x78] sm:$0xff]  ;;  %v84_v26 = vld [vmem:[#allocation4] sm:$0xff]  ;;  %10343 = vmatprep.subr.bf16.mxu1 %v14124_v0  ;;  %10154 = vmatprep.subr.bf16.mxu0 %v12130_v44  ;;  %v14110_v52 = vand.u32 4294901760, %v12170_v62  ;;  %v12211_v19 = vpack.c.bf16 %v14108_v60, %v14115_v59  ;;  %v12232_v60 = vsub.f32 %v12038_v2, %v116_v5 }
  0x56   :  { %14222 = vst [vmem:[#allocation26_spill] sm:$0xff] %v12188_v38  ;;  %14223 = vst [vmem:[#allocation27_spill] sm:$0xff] %v12202_v46  ;;  %v14113_v47 = vand.u32 4294901760, %v12172_v63  ;;  %v14112_v40 = vand.u32 4294901760, %v12174_v1  ;;  %v85_v21 = vld [vmem:[#allocation4 + $0x8] sm:$0xff]  ;;  %v12217_v18 = vpack.c.bf16 %v14109_v33, %v14114_v61  ;;  %v12220_v53 = vand.u32 4294901760, %v84_v26 }
  0x57   :  { %14224 = vst [vmem:[#allocation28_spill] sm:$0xff] %v12211_v19  ;;  %v12226_v13 = vpack.c.bf16 %v14110_v52, %v14111_v32  ;;  %v12237_v33 = vsub.f32 %v12040_v3, %v119_v6  ;;  %v12253_v2 = vsub.f32 %v12042_v4, %v1084_v8  ;;  %v12255_v3 = vand.u32 4294901760, %v85_v21  ;;  %s11886_s23 = scalar_lea.vmem %s6917_s22, 128 }
  0x58   :  { %14225 = vst [vmem:[#allocation29_spill] sm:$0xff] %v12217_v18  ;;  %10345 = vmatpush3.bf16.msra.mxu1 %v12136_v45  ;;  %10156 = vmatpush3.bf16.msra.mxu0 %v12130_v44  ;;  %v12245_v52 = vpack.c.bf16 %v14112_v40, %v14113_v47  ;;  %v12248_v32 = vsub.f32 %v84_v26, %v12220_v53  ;;  %v14117_v5 = vand.u32 4294901760, %v12232_v60  ;;  %v14229_v40 = vand.u32 4294901760, %v12049_v9  ;;  %p11887_p4 = scmp.ne.s32.totalorder %s6917_s22, %s11886_s23  ;;  %p11892_p6 = scmp.lt.s32.totalorder %s11886_s23, %s11886_s23 }
  0x59   :  { %14226 = vst [vmem:[#allocation30_spill] sm:$0xff] %v12226_v13  ;;  %10346 = vmatprep.subr.bf16.mxu1 %v14124_v0  ;;  %10158 = vmatprep.subr.bf16.mxu0 %v12150_v51  ;;  %v14116_v6 = vand.u32 4294901760, %v12237_v33  ;;  %v12264_v26 = vsub.f32 %v12046_v7, %v1087_v11  ;;  %v14123_v47 = vand.u32 4294901760, %v12253_v2  ;;  %v12274_v61 = vsub.f32 %v85_v21, %v12255_v3 }
  0x5a   :  { %14227 = vst [vmem:[#allocation31_spill] sm:$0xff] %v12245_v52  ;;  %14228 = vst [vmem:[#allocation32_spill] sm:$0xff] %v12248_v32  ;;  %v12269_v4 = vsub.f32 %v12049_v9, %v14229_v40  ;;  %v14118_v8 = vand.u32 4294901760, %v12248_v32  ;;  %v14231_v59 = vand.u32 4294901760, %v12051_v10  ;;  %v280_v7 = vsub.f32 %v12232_v60, %v14117_v5  ;;  %p11893_p7 = por %p11892_p6, %p11891_p5 }
  0x5b   :  { %14230 = vst [vmem:[#allocation33_spill] sm:$0xff] %v12274_v61  ;;  %v287_v9 = vsub.f32 %v12237_v33, %v14116_v6  ;;  %v14128_v11 = vand.u32 4294901760, %v12264_v26  ;;  %v1178_v21 = vsub.f32 %v12253_v2, %v14123_v47  ;;  %v14235_v45 = vand.u32 4294901760, %v12194_v27 }
  0x5c   :  { %v12279_v12 = vsub.f32 %v12051_v10, %v14231_v59  ;;  %10348 = vmatpush3.bf16.msra.mxu1 %v12165_v58  ;;  %10160 = vmatpush3.bf16.msra.mxu0 %v12150_v51  ;;  %v199_v10 = vsub.f32 %v12248_v32, %v14118_v8  ;;  %v14131_v59 = vand.u32 4294901760, %v12274_v61  ;;  %v281_v5 = vand.u32 4294901760, %v280_v7  ;;  %p11894_p8 = pnand %p11893_p7, %p11887_p4 }
  0x5d   :  { %10349 = vmatprep.subr.bf16.mxu1 %v14124_v0  ;;  %10162 = vmatprep.subr.bf16.mxu0 %v12182_v39  ;;  %v288_v54 = vand.u32 4294901760, %v287_v9  ;;  %v1185_v40 = vsub.f32 %v12264_v26, %v14128_v11  ;;  %v14232_v8 = vand.u32 4294901760, %v12269_v4  ;;  %v1179_v47 = vand.u32 4294901760, %v1178_v21 }
  0x5e   :  { %v200_v51 = vand.u32 4294901760, %v199_v10  ;;  %v12310_v6 = vsub.f32 %v12274_v61, %v14131_v59  ;;  %v14233_v0 = vand.u32 4294901760, %v12279_v12  ;;  %v14234_v9 = vand.u32 4294901760, %v12192_v31 }
  0x5f   :  { %v294_v58 = vsub.f32 %v12269_v4, %v14232_v8  ;;  %v12321_v44 = vpack.c.bf16 %v288_v54, %v281_v5  ;;  %v1186_v8 = vand.u32 4294901760, %v1185_v40  ;;  %v14237_v10 = vand.u32 4294901760, %v12056_v14 }
  0x60   :  { %v301_v7 = vsub.f32 %v12279_v12, %v14233_v0  ;;  %v12319_v11 = vpack.c.bf16 %v14235_v45, %v14234_v9  ;;  %10351 = vmatpush3.bf16.msra.mxu1 %v12188_v38  ;;  %10164 = vmatpush3.bf16.msra.mxu0 %v12182_v39  ;;  %v14238_v37 = vand.u32 4294901760, %v12058_v15  ;;  %v14239_v54 = vand.u32 4294901760, %v12060_v16 }
  0x61   :  { %v12326_v21 = vsub.f32 %v12056_v14, %v14237_v10  ;;  %v295_v59 = vand.u32 4294901760, %v294_v58  ;;  %v14240_v40 = vmov 0.0|0.0   ;;  %10166 = vmatprep.subr.bf16.mxu0 %v12202_v46  ;;  %v14241_v10 = vand.u32 4294901760, %v12070_v20  ;;  %8023 = vmatprep.mubr.f32.mxu0 %v200_v51 }
  0x62   :  { %14236 = vst [vmem:[#allocation34_spill] sm:$0xff] %v12319_v11  ;;  %v12334_v45 = vsub.f32 %v12058_v15, %v14238_v37  ;;  %v12339_v5 = vsub.f32 %v12060_v16, %v14239_v54  ;;  %10352 = vmatprep.subr.bf16.mxu1 %v14240_v40  ;;  %v302_v14 = vand.u32 4294901760, %v301_v7  ;;  %v14242_v15 = vand.u32 4294901760, %v12073_v22 }
  0x63   :  { %v12347_v58 = vsub.f32 %v12070_v20, %v14241_v10  ;;  %v12354_v16 = vpack.c.bf16 %v1186_v8, %v1179_v47  ;;  %v14244_v7 = vand.u32 4294901760, %v12075_v23  ;;  %v14245_v20 = vand.u32 4294901760, %v12326_v21 }
  0x64   :  { %v12352_v37 = vsub.f32 %v12073_v22, %v14242_v15  ;;  %v14137_v54 = vand.u32 4294901760, %v12334_v45  ;;  %v14136_v0 = vand.u32 4294901760, %v12339_v5  ;;  %v14246_v47 = vand.u32 4294901760, %v12091_v28  ;;  %10354 = vmatpush3.bf16.msra.mxu1 %v12211_v19  ;;  %10168 = vmatpush3.bf16.msra.mxu0 %v12202_v46 }
  0x65   :  { %14243 = vst [vmem:[#allocation35_spill] sm:$0xff] %v12354_v16  ;;  %v12361_v9 = vsub.f32 %v12075_v23, %v14244_v7  ;;  %v1192_v10 = vsub.f32 %v12326_v21, %v14245_v20  ;;  %v14144_v38 = vand.u32 4294901760, %v12347_v58  ;;  %v14247_v7 = vand.u32 4294901760, %v12093_v29  ;;  %10355 = vmatprep.subr.bf16.mxu1 %v14240_v40  ;;  %10170 = vmatprep.subr.bf16.mxu0 %v12217_v18 }
  0x66   :  { %v14147_v22 = vand.u32 4294901760, %v12352_v37  ;;  %v12371_v51 = vsub.f32 %v12091_v28, %v14246_v47  ;;  %v1199_v23 = vsub.f32 %v12334_v45, %v14137_v54  ;;  %v308_v8 = vsub.f32 %v12339_v5, %v14136_v0 }
  0x67   :  { %v12385_v20 = vsub.f32 %v12093_v29, %v14247_v7  ;;  %v1193_v28 = vand.u32 4294901760, %v1192_v10  ;;  %v315_v47 = vsub.f32 %v12347_v58, %v14144_v38  ;;  %v14248_v29 = vand.u32 4294901760, %v12361_v9 }
  0x68   :  { %v1206_v0 = vsub.f32 %v12352_v37, %v14147_v22  ;;  %v14149_v54 = vand.u32 4294901760, %v12371_v51  ;;  %v1200_v15 = vand.u32 4294901760, %v1199_v23  ;;  %v309_v19 = vand.u32 4294901760, %v308_v8  ;;  %10357 = vmatpush3.bf16.msra.mxu1 %v12226_v13  ;;  %10172 = vmatpush3.bf16.msra.mxu0 %v12217_v18 }
  0x69   :  { %v1213_v7 = vsub.f32 %v12361_v9, %v14248_v29  ;;  %v14148_v46 = vand.u32 4294901760, %v12385_v20  ;;  %v316_v39 = vand.u32 4294901760, %v315_v47  ;;  %v14249_v25 = vand.u32 4294901760, %v12095_v30  ;;  %10358 = vmatprep.subr.bf16.mxu1 %v14240_v40  ;;  %10174 = vmatprep.subr.bf16.mxu0 %v12245_v52 }
  0x6a   :  { %v1207_v10 = vand.u32 4294901760, %v1206_v0  ;;  %v322_v38 = vsub.f32 %v12371_v51, %v14149_v54  ;;  %v12410_v23 = vpack.c.bf16 %v302_v14, %v295_v59  ;;  %v14250_v47 = vand.u32 4294901760, %v12101_v34 }
  0x6b   :  { %v12406_v22 = vsub.f32 %v12095_v30, %v14249_v25  ;;  %v1214_v8 = vand.u32 4294901760, %v1213_v7  ;;  %v329_v0 = vsub.f32 %v12385_v20, %v14148_v46  ;;  %v12422_v25 = vpack.c.bf16 %v1200_v15, %v1193_v28  ;;  %v86_v46 = vld [vmem:[#allocation4 + $0x10] sm:$0xff] }
  0x6c   :  { %v12418_v29 = vsub.f32 %v12101_v34, %v14250_v47  ;;  %v12424_v30 = vpack.c.bf16 %v316_v39, %v309_v19  ;;  %v14252_v14 = vand.u32 4294901760, %v12103_v35  ;;  %v323_v34 = vand.u32 4294901760, %v322_v38  ;;  %10360 = vmatpush3.bf16.msra.mxu1 %v12319_v11  ;;  %10176 = vmatpush3.bf16.msra.mxu0 %v12245_v52 }
  0x6d   :  { %14251 = vst [vmem:[#allocation36_spill] sm:$0xff] %v12422_v25  ;;  %v14153_v59 = vand.u32 4294901760, %v12406_v22  ;;  %v12432_v54 = vpack.c.bf16 %v1214_v8, %v1207_v10  ;;  %v14254_v13 = vand.u32 4294901760, %v12105_v36  ;;  %v14256_v38 = vand.u32 4294901760, %v12120_v42  ;;  %10361 = vmatprep.subr.bf16.mxu1 %v14240_v40  ;;  %10178 = vmatprep.subr.bf16.mxu0 %v12321_v44 }
  0x6e   :  { %v12430_v7 = vsub.f32 %v12103_v35, %v14252_v14  ;;  %v14152_v47 = vand.u32 4294901760, %v12418_v29  ;;  %v14255_v35 = vand.u32 4294901760, %v12118_v41  ;;  %v12460_v14 = vand.u32 4294901760, %v86_v46 }
  0x6f   :  { %14253 = vst [vmem:[#allocation37_spill] sm:$0xff] %v12432_v54  ;;  %v12438_v15 = vsub.f32 %v12105_v36, %v14254_v13  ;;  %v1220_v19 = vsub.f32 %v12406_v22, %v14153_v59  ;;  %v12452_v10 = vsub.f32 %v12120_v42, %v14256_v38  ;;  %v330_v13 = vand.u32 4294901760, %v329_v0 }
  0x70   :  { %v14158_v39 = vand.u32 4294901760, %v12430_v7  ;;  %v12447_v28 = vsub.f32 %v12118_v41, %v14255_v35  ;;  %v1227_v36 = vsub.f32 %v12418_v29, %v14152_v47  ;;  %v12473_v59 = vsub.f32 %v86_v46, %v12460_v14 }
  0x71   :  { %v14159_v8 = vand.u32 4294901760, %v12438_v15  ;;  %v1221_v41 = vand.u32 4294901760, %v1220_v19  ;;  %v14258_v11 = vand.u32 4294901760, %v12122_v43  ;;  %v14259_v52 = vmov 0.0  }
  0x72   :  { %v336_v42 = vsub.f32 %v12430_v7, %v14158_v39  ;;  %v1228_v38 = vand.u32 4294901760, %v1227_v36  ;;  %14257 = vst [vmem:[#allocation38_spill] sm:$0xff] %v12473_v59  ;;  %8288 = vmatmul.mubr.f32.vlgmr.msra.gmra.mrb[0].mxu1 %v14259_v52  ;;  %v14260_v39 = vand.u32 4294901760, %v12310_v6  ;;  %v14261_v36 = vand.u32 4294901760, %v12447_v28 }
  0x73   :  { %v343_v47 = vsub.f32 %v12438_v15, %v14159_v8  ;;  %v12478_v19 = vsub.f32 %v12122_v43, %v14258_v11  ;;  %v14262_v8 = vand.u32 4294901760, %v12452_v10  ;;  %v14263_v18 = vand.u32 4294901760, %v12140_v48  ;;  %10363 = vmatpush3.bf16.msra.mxu1 %v12354_v16  ;;  %8322 = vmatprep.mubr.msk.f32.mxu1 %vm11923_vm0, %v14259_v52 }
  0x74   :  { %8024 = vmatmul.mubr.f32.vlgmr.msra.gmra.mrb[0].mxu0 %v14260_v39  ;;  %v337_v35 = vand.u32 4294901760, %v336_v42  ;;  %v1234_v0 = vsub.f32 %v12447_v28, %v14261_v36  ;;  %v12496_v43 = vpack.c.bf16 %v330_v13, %v323_v34  ;;  %v14166_v11 = vand.u32 4294901760, %v12473_v59  ;;  %v87_v42 = vld [vmem:[#allocation4 + $0x18] sm:$0xff]  ;;  %10364 = vmatprep.subr.bf16.mxu1 %v14240_v40  ;;  %v88_v34 = vld [vmem:[#allocation4 + $0x20] sm:$0xff] }
  0x75   :  { %v1241_v46 = vsub.f32 %v12452_v10, %v14262_v8  ;;  %v12492_v24 = vsub.f32 %v12140_v48, %v14263_v18  ;;  %10180 = vmatpush3.bf16.msra.mxu0 %v12321_v44  ;;  %v344_v6 = vand.u32 4294901760, %v343_v47  ;;  %v14167_v39 = vand.u32 4294901760, %v12478_v19 }
  0x76   :  { %10182 = vmatprep.subr.bf16.mxu0 %v12410_v23  ;;  %v12502_v8 = vpack.c.bf16 %v1228_v38, %v1221_v41  ;;  %v1235_v18 = vand.u32 4294901760, %v1234_v0  ;;  %v14265_v36 = vand.u32 4294901760, %v12142_v49  ;;  %v219_v13 = vsub.f32 %v12473_v59, %v14166_v11 }
  0x77   :  { %v14168_v48 = vand.u32 4294901760, %v12492_v24  ;;  %v1242_v47 = vand.u32 4294901760, %v1241_v46  ;;  %v350_v16 = vsub.f32 %v12478_v19, %v14167_v39  ;;  %v14266_v41 = vand.u32 4294901760, %v12144_v50  ;;  %10366 = vmatpush3.bf16.msra.mxu1 %v12422_v25 }
  0x78   :  { %14264 = vst [vmem:[#allocation39_spill] sm:$0xff] %v12502_v8  ;;  %v12508_v44 = vsub.f32 %v12142_v49, %v14265_v36  ;;  %v12523_v49 = vpack.c.bf16 %v344_v6, %v337_v35  ;;  %v12529_v36 = vand.u32 4294901760, %v87_v42  ;;  %v220_v11 = vand.u32 4294901760, %v219_v13  ;;  %10367 = vmatprep.subr.bf16.mxu1 %v14240_v40 }
  0x79   :  { %v12519_v0 = vsub.f32 %v12144_v50, %v14266_v41  ;;  %v357_v38 = vsub.f32 %v12492_v24, %v14168_v48  ;;  %10184 = vmatpush3.bf16.msra.mxu0 %v12410_v23  ;;  %v351_v50 = vand.u32 4294901760, %v350_v16  ;;  %v12534_v39 = vand.u32 4294901760, %v88_v34 }
  0x7a   :  { %v14171_v46 = vand.u32 4294901760, %v12508_v44  ;;  %10186 = vmatprep.subr.bf16.mxu0 %v12424_v30  ;;  %v12542_v48 = vsub.f32 %v87_v42, %v12529_v36  ;;  %v14268_v23 = vand.u32 4294901760, %v12155_v55  ;;  %8026 = vmatprep.mubr.f32.mxu0 %v220_v11  ;;  %v14271_v42 = vand.u32 4294901760, %v12159_v57 }
  0x7b   :  { %v14176_v41 = vand.u32 4294901760, %v12519_v0  ;;  %v358_v35 = vand.u32 4294901760, %v357_v38  ;;  %v12553_v25 = vsub.f32 %v88_v34, %v12534_v39  ;;  %v14270_v38 = vand.u32 4294901760, %v12157_v56  ;;  %10369 = vmatpush3.bf16.msra.mxu1 %v12432_v54 }
  0x7c   :  { %v1248_v6 = vsub.f32 %v12508_v44, %v14171_v46  ;;  %14267 = vst [vmem:[#allocation40_spill] sm:$0xff] %v12542_v48  ;;  %v12547_v16 = vsub.f32 %v12155_v55, %v14268_v23  ;;  %v12563_v59 = vsub.f32 %v12159_v57, %v14271_v42  ;;  %v89_v55 = vld [vmem:[#allocation4 + $0x28] sm:$0xff]  ;;  %v12565_v23 = vpack.c.bf16 %v1242_v47, %v1235_v18  ;;  %v90_v42 = vld [vmem:[#allocation4 + $0x30] sm:$0xff] }
  0x7d   :  { %v1255_v13 = vsub.f32 %v12519_v0, %v14176_v41  ;;  %14269 = vst [vmem:[#allocation41_spill] sm:$0xff] %v12553_v25  ;;  %v12558_v46 = vsub.f32 %v12157_v56, %v14270_v38  ;;  %v14179_v61 = vand.u32 4294901760, %v12542_v48  ;;  %10188 = vmatpush3.bf16.msra.mxu0 %v12424_v30  ;;  %v14187_v56 = vand.u32 4294901760, %v12553_v25  ;;  %10370 = vmatprep.subr.bf16.mxu1 %v14240_v40 }
  0x7e   :  { %14272 = vst [vmem:[#allocation42_spill] sm:$0xff] %v12565_v23  ;;  %v1249_v11 = vand.u32 4294901760, %v1248_v6  ;;  %v14182_v41 = vand.u32 4294901760, %v12547_v16  ;;  %10190 = vmatprep.subr.bf16.mxu0 %v12496_v43  ;;  %v14273_v30 = vand.u32 4294901760, %v12170_v62  ;;  %v10197_v57 = vpack.c.bf16 %v358_v35, %v351_v50 }
  0x7f   :  { %v1256_v34 = vand.u32 4294901760, %v1255_v13  ;;  %v229_v18 = vsub.f32 %v12542_v48, %v14179_v61  ;;  %v12587_v13 = vand.u32 4294901760, %v89_v55  ;;  %v239_v38 = vsub.f32 %v12553_v25, %v14187_v56  ;;  %10372 = vmatpush3.bf16.msra.mxu1 %v12502_v8 }
  0x80   :  { %v364_v47 = vsub.f32 %v12547_v16, %v14182_v41  ;;  %v12585_v6 = vsub.f32 %v12170_v62, %v14273_v30  ;;  %v14274_v54 = vand.u32 4294901760, %v12558_v46  ;;  %v14275_v48 = vand.u32 4294901760, %v12563_v59  ;;  %10373 = vmatprep.subr.bf16.mxu1 %v14240_v40 }
  0x81   :  { %v12598_v17 = vpack.c.bf16 %v1256_v34, %v1249_v11  ;;  %v230_v62 = vand.u32 4294901760, %v229_v18  ;;  %v12602_v32 = vsub.f32 %v89_v55, %v12587_v13  ;;  %10192 = vmatpush3.bf16.msra.mxu0 %v12496_v43  ;;  %v240_v50 = vand.u32 4294901760, %v239_v38  ;;  %v91_v38 = vld [vmem:[#allocation4 + $0x38] sm:$0xff] }
  0x82   :  { %v371_v61 = vsub.f32 %v12558_v46, %v14274_v54  ;;  %v1262_v41 = vsub.f32 %v12563_v59, %v14275_v48  ;;  %v14188_v30 = vand.u32 4294901760, %v12585_v6  ;;  %v365_v35 = vand.u32 4294901760, %v364_v47  ;;  %10194 = vmatprep.subr.bf16.mxu0 %v12523_v49 }
  0x83   :  { %14276 = vst [vmem:[#allocation43_spill] sm:$0xff] %v12602_v32  ;;  %v12606_v54 = vand.u32 4294901760, %v90_v42  ;;  %v14278_v11 = vand.u32 4294901760, %v12172_v63  ;;  %v14280_v43 = vand.u32 4294901760, %v12174_v1  ;;  %8027 = vmatmul.mubr.f32.gmra.mrb[2].mxu0 %v230_v62  ;;  %v14284_v8 = vand.u32 4294901760, %v12194_v27  ;;  %10375 = vmatpush3.bf16.msra.mxu1 %v12565_v23 }
  0x84   :  { %v372_v56 = vand.u32 4294901760, %v371_v61  ;;  %v1269_v48 = vsub.f32 %v12585_v6, %v14188_v30  ;;  %v1263_v18 = vand.u32 4294901760, %v1262_v41  ;;  %v14283_v30 = vand.u32 4294901760, %v12192_v31  ;;  %8029 = vmatprep.mubr.f32.mxu0 %v240_v50  ;;  %10376 = vmatprep.subr.bf16.mxu1 %v14240_v40 }
  0x85   :  { %14277 = vst [vmem:[#allocation44_spill] sm:$0xff] %v12606_v54  ;;  %v12617_v34 = vsub.f32 %v12172_v63, %v14278_v11  ;;  %v12622_v61 = vsub.f32 %v12174_v1, %v14280_v43  ;;  %v12625_v47 = vsub.f32 %v90_v42, %v12606_v54  ;;  %v12635_v63 = vsub.f32 %v12194_v27, %v14284_v8 }
  0x86   :  { %v12630_v55 = vsub.f32 %v12192_v31, %v14283_v30  ;;  %v1270_v11 = vand.u32 4294901760, %v1269_v48  ;;  %v14285_v1 = vand.u32 4294901760, %v12602_v32  ;;  %10196 = vmatpush3.bf16.msra.mxu0 %v12523_v49  ;;  %v12647_v8 = vand.u32 4294901760, %v91_v38 }
  0x87   :  { %14279 = vst [vmem:[#allocation45_spill] sm:$0xff] %v12617_v34  ;;  %14281 = vst [vmem:[#allocation46_spill] sm:$0xff] %v12622_v61  ;;  %v377_v41 = vand.u32 4294901760, %v12617_v34  ;;  %v384_v42 = vand.u32 4294901760, %v12622_v61  ;;  %v14201_v31 = vand.u32 4294901760, %v12625_v47  ;;  %v1282_v27 = vand.u32 4294901760, %v12635_v63  ;;  %10198 = vmatprep.subr.bf16.mxu0 %v10197_v57  ;;  %10378 = vmatpush3.bf16.msra.mxu1 %v12598_v17 }
  0x88   :  { %14282 = vst [vmem:[#allocation47_spill] sm:$0xff] %v12625_v47  ;;  %v249_v62 = vsub.f32 %v12602_v32, %v14285_v1  ;;  %v1275_v30 = vand.u32 4294901760, %v12630_v55  ;;  %v10201_v50 = vpack.c.bf16 %v372_v56, %v365_v35  ;;  %v12658_v25 = vsub.f32 %v91_v38, %v12647_v8  ;;  %10379 = vmatprep.subr.bf16.mxu1 %v14240_v40 }
  0x89   :  { %v378_v43 = vsub.f32 %v12617_v34, %v377_v41  ;;  %v385_v1 = vsub.f32 %v12622_v61, %v384_v42  ;;  %v259_v49 = vsub.f32 %v12625_v47, %v14201_v31  ;;  %v1283_v32 = vsub.f32 %v12635_v63, %v1282_v27 }
  0x8a   :  { %v250_v48 = vand.u32 4294901760, %v249_v62  ;;  %v1276_v23 = vsub.f32 %v12630_v55, %v1275_v30  ;;  %v12660_v54 = vpack.c.bf16 %v1270_v11, %v1263_v18  ;;  %10200 = vmatpush3.bf16.msra.mxu0 %v10197_v57  ;;  %v14204_v31 = vand.u32 4294901760, %v12658_v25 }
  0x8b   :  { %v379_v56 = vand.u32 4294901760, %v378_v43  ;;  %v386_v35 = vand.u32 4294901760, %v385_v1  ;;  %v260_v62 = vand.u32 4294901760, %v259_v49  ;;  %v1284_v34 = vand.u32 4294901760, %v1283_v32  ;;  %10202 = vmatprep.subr.bf16.mxu0 %v10201_v50 }
  0x8c   :  { %14286 = vst [vmem:[#allocation48_spill] sm:$0xff] %v12660_v54  ;;  %8030 = vmatmul.mubr.f32.gmra.mrb[4].mxu0 %v250_v48  ;;  %v1277_v61 = vand.u32 4294901760, %v1276_v23  ;;  %v269_v38 = vsub.f32 %v12658_v25, %v14204_v31  ;;  %10381 = vmatpush3.bf16.msra.mxu1 %v12660_v54  ;;  %v10209_v32 = vpack.c.bf16 %v12237_v33, %v12232_v60  ;;  %v14288_v48 = vand.u32 4294901760, %v12232_v60 }
  0x8d   :  { %v10205_v47 = vpack.c.bf16 %v386_v35, %v379_v56  ;;  %8032 = vmatprep.mubr.f32.mxu0 %v260_v62  ;;  %10382 = vmatprep.subr.bf16.mxu1 %v14240_v40  ;;  %v12676_v23 = vpack.c.bf16 %v12264_v26, %v12253_v2  ;;  %v10213_v11 = vpack.c.bf16 %v12279_v12, %v12269_v4  ;;  %v14291_v43 = vand.u32 4294901760, %v12264_v26 }
  0x8e   :  { %10204 = vmatpush3.bf16.msra.mxu0 %v10201_v50  ;;  %v12669_v18 = vpack.c.bf16 %v1284_v34, %v1277_v61  ;;  %v270_v57 = vand.u32 4294901760, %v269_v38  ;;  %v14289_v34 = vand.u32 4294901760, %v12237_v33  ;;  %v14290_v50 = vand.u32 4294901760, %v12253_v2 }
  0x8f   :  { %10206 = vmatprep.subr.bf16.mxu0 %v10205_v47  ;;  %v14292_v49 = vand.u32 4294901760, %v12269_v4  ;;  %v14293_v56 = vand.u32 4294901760, %v12279_v12  ;;  %v14294_v62 = vand.u32 4294901760, %v12326_v21  ;;  %v14295_v60 = vand.u32 4294901760, %v12334_v45 }
  0x90   :  { %14287 = vst [vmem:[#allocation49_spill] sm:$0xff] %v12669_v18  ;;  %8033 = vmatmul.mubr.f32.gmra.mrb[6].mxu0 %v270_v57  ;;  %v12684_v61 = vpack.c.bf16 %v14289_v34, %v14288_v48  ;;  %v12690_v1 = vpack.c.bf16 %v14291_v43, %v14290_v50  ;;  %v14296_v33 = vand.u32 4294901760, %v12339_v5  ;;  %v14297_v2 = vand.u32 4294901760, %v12347_v58  ;;  %10384 = vmatpush3.bf16.msra.mxu1 %v12669_v18 }
  0x91   :  { %v12696_v35 = vpack.c.bf16 %v14293_v56, %v14292_v49  ;;  %v12702_v38 = vpack.c.bf16 %v14295_v60, %v14294_v62  ;;  %8067 = vmatprep.mubr.f32.mxu0 %v12220_v53  ;;  %v14298_v4 = vand.u32 4294901760, %v12352_v37  ;;  %v14299_v12 = vand.u32 4294901760, %v12361_v9  ;;  %10385 = vmatprep.subr.bf16.mxu1 %v14240_v40 }
  0x92   :  { %v12709_v26 = vpack.c.bf16 %v14297_v2, %v14296_v33  ;;  %v14300_v48 = vand.u32 4294901760, %v12371_v51  ;;  %v14301_v34 = vand.u32 4294901760, %v12385_v20  ;;  %v14302_v43 = vand.u32 4294901760, %v12406_v22  ;;  %10208 = vmatpush3.bf16.msra.mxu0 %v10205_v47 }
  0x93   :  { %v12715_v57 = vpack.c.bf16 %v14299_v12, %v14298_v4  ;;  %v14303_v49 = vand.u32 4294901760, %v12418_v29  ;;  %v14304_v62 = vand.u32 4294901760, %v12430_v7  ;;  %v14305_v60 = vand.u32 4294901760, %v12438_v15  ;;  %10210 = vmatprep.subr.bf16.mxu0 %v10209_v32  ;;  %8323 = vmatmul.mubr.f32.vlgmr.msra.gmra.mrb[0].mxu1 %v14259_v52 }
  0x94   :  { %v12721_v50 = vpack.c.bf16 %v14301_v34, %v14300_v48  ;;  %v14306_v2 = vand.u32 4294901760, %v12447_v28  ;;  %v14307_v4 = vand.u32 4294901760, %v12452_v10  ;;  %v14308_v48 = vand.u32 4294901760, %v12478_v19  ;;  %10387 = vmatpush3.bf16.msra.mxu1 %v12676_v23  ;;  %8357 = vmatprep.mubr.msk.f32.mxu1 %vm11923_vm0, %v14259_v52 }
  0x95   :  { %v12727_v56 = vpack.c.bf16 %v14303_v49, %v14302_v43  ;;  %v12734_v33 = vpack.c.bf16 %v14305_v60, %v14304_v62  ;;  %v14309_v34 = vand.u32 4294901760, %v12492_v24  ;;  %v14310_v47 = vand.u32 4294901760, %v12508_v44  ;;  %8068 = vmatmul.mubr.f32.vlgmr.msra.gmra.mrb[0].mxu0 %v12255_v3  ;;  %10388 = vmatprep.subr.bf16.mxu1 %v14240_v40 }
  0x96   :  { %v12740_v12 = vpack.c.bf16 %v14307_v4, %v14306_v2  ;;  %v14311_v49 = vand.u32 4294901760, %v12519_v0  ;;  %v14312_v60 = vand.u32 4294901760, %v12547_v16  ;;  %v14313_v2 = vand.u32 4294901760, %v12558_v46  ;;  %10212 = vmatpush3.bf16.msra.mxu0 %v10209_v32  ;;  %8070 = vmatprep.mubr.f32.mxu0 %v12460_v14  ;;  %v14333_v32 = vld [vmem:[#allocation24_spill] sm:$0xff] }
  0x97   :  { %v12746_v43 = vpack.c.bf16 %v14309_v34, %v14308_v48  ;;  %v14314_v31 = vand.u32 4294901760, %v12563_v59  ;;  %v14315_v48 = vand.u32 4294901760, %v12585_v6  ;;  %v12767_v18 = vpack.c.bf16 %v384_v42, %v377_v41  ;;  %10214 = vmatprep.subr.bf16.mxu0 %v10213_v11  ;;  %v14329_v42 = vld [vmem:[#allocation43_spill] sm:$0xff] }
  0x98   :  { %v12753_v62 = vpack.c.bf16 %v14311_v49, %v14310_v47  ;;  %v12759_v4 = vpack.c.bf16 %v14313_v2, %v14312_v60  ;;  %v12769_v54 = vpack.c.bf16 %v1282_v27, %v1275_v30  ;;  %v12776_v47 = vpack.c.bf16 %v12334_v45, %v12326_v21  ;;  %v14331_v30 = vld [vmem:[#allocation23_spill] sm:$0xff]  ;;  %v14336_v60 = vld [vmem:[#allocation26_spill] sm:$0xff] }
  0x99   :  { %v12765_v34 = vpack.c.bf16 %v14315_v48, %v14314_v31  ;;  %v10217_v41 = vpack.c.bf16 %v12347_v58, %v12339_v5  ;;  %8071 = vmatmul.mubr.f32.gmra.mrb[2].mxu0 %v12529_v36  ;;  %v12788_v21 = vpack.c.bf16 %v12361_v9, %v12352_v37  ;;  %v10221_v45 = vpack.c.bf16 %v12385_v20, %v12371_v51  ;;  %v14316_v58 = vld [vmem:[#allocation44_spill] sm:$0xff]  ;;  %v14330_v31 = vld [vmem:[#allocation22_spill] sm:$0xff]  ;;  %v14332_v27 = vld [vmem:[#allocation47_spill] sm:$0xff] }
  0x9a   :  { %10390 = vmatpush3.bf16.msra.mxu1 %v12776_v47  ;;  %10216 = vmatpush3.bf16.msra.mxu0 %v10213_v11  ;;  %v12798_v5 = vpack.c.bf16 %v12418_v29, %v12406_v22  ;;  %v10225_v9 = vpack.c.bf16 %v12438_v15, %v12430_v7  ;;  %v12808_v37 = vpack.c.bf16 %v12452_v10, %v12447_v28  ;;  %v14317_v51 = vld [vmem:[#allocation32_spill] sm:$0xff]  ;;  %v14318_v7 = vld [vmem:[#allocation45_spill] sm:$0xff]  ;;  %v14319_v15 = vld [vmem:[#allocation46_spill] sm:$0xff] }
  0x9b   :  { %10391 = vmatprep.subr.bf16.mxu1 %v14240_v40  ;;  %10218 = vmatprep.subr.bf16.mxu0 %v10217_v41  ;;  %v10229_v22 = vpack.c.bf16 %v12492_v24, %v12478_v19  ;;  %v12817_v20 = vpack.c.bf16 %v12519_v0, %v12508_v44  ;;  %v10233_v29 = vpack.c.bf16 %v12558_v46, %v12547_v16  ;;  %v14321_v19 = vld [vmem:[#allocation33_spill] sm:$0xff]  ;;  %v14322_v44 = vld [vmem:[#allocation18_spill] sm:$0xff]  ;;  %v14323_v0 = vld [vmem:[#allocation19_spill] sm:$0xff]  ;;  %v14335_v49 = vand.u32 4294901760, %v14317_v51 }
  0x9c   :  { %8073 = vmatprep.mubr.f32.mxu0 %v12534_v39  ;;  %v12825_v24 = vpack.c.bf16 %v12585_v6, %v12563_v59  ;;  %v10237_v28 = vpack.c.bf16 %v14319_v15, %v14318_v7  ;;  %v12833_v10 = vpack.c.bf16 %v12635_v63, %v12630_v55  ;;  %v14320_v59 = vld [vmem:[#allocation17_spill] sm:$0xff]  ;;  %v14324_v46 = vld [vmem:[#allocation38_spill] sm:$0xff]  ;;  %v14325_v16 = vld [vmem:[#allocation40_spill] sm:$0xff]  ;;  %v14347_v15 = vand.u32 4294901760, %v14329_v42 }
  0x9d   :  { %8074 = vmatmul.mubr.f32.gmra.mrb[4].mxu0 %v12587_v13  ;;  %v14326_v6 = vld [vmem:[#allocation20_spill] sm:$0xff]  ;;  %v14327_v55 = vld [vmem:[#allocation21_spill] sm:$0xff]  ;;  %v14337_v2 = vld [vmem:[#allocation27_spill] sm:$0xff]  ;;  %v14345_v7 = vand.u32 4294901760, %v14325_v16 }
  0x9e   :  { %10393 = vmatpush3.bf16.msra.mxu1 %v12788_v21  ;;  %10220 = vmatpush3.bf16.msra.mxu0 %v10217_v41  ;;  %v14328_v63 = vld [vmem:[#allocation41_spill] sm:$0xff]  ;;  %v14338_v48 = vld [vmem:[#allocation28_spill] sm:$0xff] }
  0x9f   :  { %10394 = vmatprep.subr.bf16.mxu1 %v14240_v40  ;;  %10222 = vmatprep.subr.bf16.mxu0 %v10221_v45  ;;  %v14334_v11 = vld [vmem:[#allocation25_spill] sm:$0xff] }
  0xa0   :  { %8076 = vmatprep.mubr.f32.mxu0 %v14316_v58  ;;  %v14339_v41 = vld [vmem:[#allocation29_spill] sm:$0xff] }
  0xa1   :  { %8077 = vmatmul.mubr.f32.gmra.mrb[6].mxu0 %v12647_v8 }
  0xa2   :  { %10396 = vmatpush3.bf16.msra.mxu1 %v12798_v5  ;;  %10224 = vmatpush3.bf16.msra.mxu0 %v10221_v45  ;;  %v14340_v45 = vld [vmem:[#allocation30_spill] sm:$0xff] }
  0xa3   :  { %10397 = vmatprep.subr.bf16.mxu1 %v14240_v40  ;;  %10226 = vmatprep.subr.bf16.mxu0 %v10225_v9 }
  0xa4   :  { %8111 = vmatprep.mubr.f32.mxu0 %v14317_v51  ;;  %v14343_v51 = vand.u32 4294901760, %v14321_v19 }
  0xa6   :  { %10399 = vmatpush3.bf16.msra.mxu1 %v12808_v37  ;;  %10228 = vmatpush3.bf16.msra.mxu0 %v10225_v9  ;;  %v14341_v9 = vld [vmem:[#allocation31_spill] sm:$0xff] }
  0xa7   :  { %10400 = vmatprep.subr.bf16.mxu1 %v14240_v40  ;;  %10230 = vmatprep.subr.bf16.mxu0 %v10229_v22 }
  0xaa   :  { %10402 = vmatpush3.bf16.msra.mxu1 %v12817_v20  ;;  %10232 = vmatpush3.bf16.msra.mxu0 %v10229_v22  ;;  %v14342_v22 = vld [vmem:[#allocation34_spill] sm:$0xff] }
  0xab   :  { %10403 = vmatprep.subr.bf16.mxu1 %v14240_v40  ;;  %10234 = vmatprep.subr.bf16.mxu0 %v10233_v29 }
  0xae   :  { %10405 = vmatpush3.bf16.msra.mxu1 %v12825_v24  ;;  %10236 = vmatpush3.bf16.msra.mxu0 %v10233_v29  ;;  %v14344_v29 = vand.u32 4294901760, %v14324_v46 }
  0xaf   :  { %10406 = vmatprep.subr.bf16.mxu1 %v14240_v40  ;;  %10238 = vmatprep.subr.bf16.mxu0 %v10237_v28 }
  0xb2   :  { %10408 = vmatpush3.bf16.msra.mxu1 %v12833_v10  ;;  %10240 = vmatpush3.bf16.msra.mxu0 %v10237_v28  ;;  %v14349_v28 = vand.u32 4294901760, %v12658_v25 }
  0xb3   :  { %10409 = vmatprep.subr.bf16.mxu1 %v14240_v40  ;;  %10242 = vmatprep.subr.bf16.mxu0 %v14320_v59 }
  0xb5   :  { %8358 = vmatmul.mubr.f32.vlgmr.msra.gmra.mrb[0].mxu1 %v14259_v52  ;;  %8112 = vmatmul.mubr.f32.vlgmr.msra.gmra.mrb[0].mxu0 %v14321_v19 }
  0xb6   :  { %10411 = vmatpush3.bf16.msra.mxu1 %v14322_v44  ;;  %10244 = vmatpush3.bf16.msra.mxu0 %v14320_v59 }
  0xb7   :  { %10412 = vmatprep.subr.bf16.mxu1 %v14240_v40  ;;  %10246 = vmatprep.subr.bf16.mxu0 %v14323_v0 }
  0xb8   :  { %8114 = vmatprep.mubr.f32.mxu0 %v14324_v46  ;;  %8392 = vmatprep.mubr.msk.f32.mxu1 %vm11923_vm0, %v14259_v52 }
  0xb9   :  { %8115 = vmatmul.mubr.f32.gmra.mrb[2].mxu0 %v14325_v16 }
  0xba   :  { %10414 = vmatpush3.bf16.msra.mxu1 %v14326_v6  ;;  %10248 = vmatpush3.bf16.msra.mxu0 %v14323_v0 }
  0xbb   :  { %10415 = vmatprep.subr.bf16.mxu1 %v14240_v40  ;;  %10250 = vmatprep.subr.bf16.mxu0 %v14327_v55 }
  0xbc   :  { %8117 = vmatprep.mubr.f32.mxu0 %v14328_v63 }
  0xbd   :  { %8118 = vmatmul.mubr.f32.gmra.mrb[4].mxu0 %v14329_v42 }
  0xbe   :  { %10417 = vmatpush3.bf16.msra.mxu1 %v14330_v31  ;;  %10252 = vmatpush3.bf16.msra.mxu0 %v14327_v55 }
  0xbf   :  { %10418 = vmatprep.subr.bf16.mxu1 %v14240_v40  ;;  %10254 = vmatprep.subr.bf16.mxu0 %v14331_v30 }
  0xc0   :  { %8120 = vmatprep.mubr.f32.mxu0 %v14332_v27 }
  0xc1   :  { %8121 = vmatmul.mubr.f32.gmra.mrb[6].mxu0 %v12658_v25 }
  0xc2   :  { %10420 = vmatpush3.bf16.msra.mxu1 %v14333_v32  ;;  %10256 = vmatpush3.bf16.msra.mxu0 %v14331_v30 }
  0xc3   :  { %10421 = vmatprep.subr.bf16.mxu1 %v14240_v40  ;;  %10258 = vmatprep.subr.bf16.mxu0 %v14334_v11 }
  0xc4   :  { %8155 = vmatprep.mubr.f32.mxu0 %v14335_v49  ;;  %v14350_v49 = vld [vmem:[#allocation35_spill] sm:$0xff] }
  0xc6   :  { %10423 = vmatpush3.bf16.msra.mxu1 %v14336_v60  ;;  %10260 = vmatpush3.bf16.msra.mxu0 %v14334_v11 }
  0xc7   :  { %10424 = vmatprep.subr.bf16.mxu1 %v14240_v40  ;;  %10262 = vmatprep.subr.bf16.mxu0 %v14337_v2 }
  0xca   :  { %10426 = vmatpush3.bf16.msra.mxu1 %v14338_v48  ;;  %10264 = vmatpush3.bf16.msra.mxu0 %v14337_v2 }
  0xcb   :  { %10427 = vmatprep.subr.bf16.mxu1 %v14240_v40  ;;  %10266 = vmatprep.subr.bf16.mxu0 %v14339_v41 }
  0xce   :  { %10429 = vmatpush3.bf16.msra.mxu1 %v14340_v45  ;;  %10268 = vmatpush3.bf16.msra.mxu0 %v14339_v41 }
  0xcf   :  { %10430 = vmatprep.subr.bf16.mxu1 %v14240_v40  ;;  %10270 = vmatprep.subr.bf16.mxu0 %v14341_v9 }
  0xd2   :  { %10432 = vmatpush3.bf16.msra.mxu1 %v14342_v22  ;;  %10272 = vmatpush3.bf16.msra.mxu0 %v14341_v9 }
  0xd3   :  { %10433 = vmatprep.subr.bf16.mxu1 %v14240_v40  ;;  %10274 = vmatprep.subr.bf16.mxu0 %v12684_v61 }
  0xd5   :  { %8393 = vmatmul.mubr.f32.vlgmr.msra.gmra.mrb[0].mxu1 %v14259_v52  ;;  %8156 = vmatmul.mubr.f32.vlgmr.msra.gmra.mrb[0].mxu0 %v14343_v51  ;;  %v14354_v51 = vld [vmem:[#allocation42_spill] sm:$0xff] }
  0xd6   :  { %10435 = vmatpush3.bf16.msra.mxu1 %v12690_v1  ;;  %10276 = vmatpush3.bf16.msra.mxu0 %v12684_v61  ;;  %v14346_v61 = vand.u32 4294901760, %v14328_v63 }
  0xd7   :  { %10436 = vmatprep.subr.bf16.mxu1 %v14240_v40  ;;  %10278 = vmatprep.subr.bf16.mxu0 %v12696_v35 }
  0xd8   :  { %8158 = vmatprep.mubr.f32.mxu0 %v14344_v29  ;;  %8427 = vmatprep.mubr.msk.f32.mxu1 %vm11923_vm0, %v14259_v52  ;;  %v14355_v29 = vld [vmem:[#allocation48_spill] sm:$0xff] }
  0xd9   :  { %8159 = vmatmul.mubr.f32.gmra.mrb[2].mxu0 %v14345_v7  ;;  %v14356_v7 = vld [vmem:[#allocation49_spill] sm:$0xff] }
  0xda   :  { %10438 = vmatpush3.bf16.msra.mxu1 %v12702_v38  ;;  %10280 = vmatpush3.bf16.msra.mxu0 %v12696_v35  ;;  %v14348_v35 = vand.u32 4294901760, %v14332_v27 }
  0xdb   :  { %10439 = vmatprep.subr.bf16.mxu1 %v14240_v40  ;;  %10282 = vmatprep.subr.bf16.mxu0 %v12709_v26 }
  0xdc   :  { %8161 = vmatprep.mubr.f32.mxu0 %v14346_v61 }
  0xdd   :  { %8162 = vmatmul.mubr.f32.gmra.mrb[4].mxu0 %v14347_v15 }
  0xde   :  { %10441 = vmatpush3.bf16.msra.mxu1 %v12715_v57  ;;  %10284 = vmatpush3.bf16.msra.mxu0 %v12709_v26 }
  0xdf   :  { %10442 = vmatprep.subr.bf16.mxu1 %v14240_v40  ;;  %10286 = vmatprep.subr.bf16.mxu0 %v12721_v50 }
  0xe0   :  { %8164 = vmatprep.mubr.f32.mxu0 %v14348_v35 }
  0xe1   :  { %8165 = vmatmul.mubr.f32.gmra.mrb[6].mxu0 %v14349_v28 }
  0xe2   :  { %10444 = vmatpush3.bf16.msra.mxu1 %v12727_v56  ;;  %10288 = vmatpush3.bf16.msra.mxu0 %v12721_v50 }
  0xe3   :  { %10445 = vmatprep.subr.bf16.mxu1 %v14240_v40  ;;  %10290 = vmatprep.subr.bf16.mxu0 %v12734_v33 }
  0xe4   :  { %8199 = vmatprep.mubr.f32.mxu0 %v12220_v53 }
  0xe6   :  { %10447 = vmatpush3.bf16.msra.mxu1 %v12740_v12  ;;  %10292 = vmatpush3.bf16.msra.mxu0 %v12734_v33 }
  0xe7   :  { %10448 = vmatprep.subr.bf16.mxu1 %v14240_v40  ;;  %10294 = vmatprep.subr.bf16.mxu0 %v12746_v43 }
  0xea   :  { %10450 = vmatpush3.bf16.msra.mxu1 %v12753_v62  ;;  %10296 = vmatpush3.bf16.msra.mxu0 %v12746_v43 }
  0xeb   :  { %10451 = vmatprep.subr.bf16.mxu1 %v14240_v40  ;;  %10298 = vmatprep.subr.bf16.mxu0 %v12759_v4 }
  0xee   :  { %10453 = vmatpush3.bf16.msra.mxu1 %v12765_v34  ;;  %10300 = vmatpush3.bf16.msra.mxu0 %v12759_v4 }
  0xef   :  { %10454 = vmatprep.subr.bf16.mxu1 %v14240_v40  ;;  %10302 = vmatprep.subr.bf16.mxu0 %v12767_v18 }
  0xf2   :  { %10456 = vmatpush3.bf16.msra.mxu1 %v12769_v54  ;;  %10304 = vmatpush3.bf16.msra.mxu0 %v12767_v18 }
  0xf3   :  { %10457 = vmatprep.subr.bf16.mxu1 %v14240_v40  ;;  %10306 = vmatprep.subr.bf16.mxu0 %v14320_v59 }
  0xf5   :  { %8428 = vmatmul.mubr.f32.vlgmr.msra.gmra.mrb[0].mxu1 %v14259_v52  ;;  %8200 = vmatmul.mubr.f32.vlgmr.msra.gmra.mrb[0].mxu0 %v12255_v3 }
  0xf6   :  { %10459 = vmatpush3.bf16.msra.mxu1 %v14322_v44  ;;  %10308 = vmatpush3.bf16.msra.mxu0 %v14320_v59 }
  0xf7   :  { %10460 = vmatprep.subr.bf16.mxu1 %v14240_v40  ;;  %10310 = vmatprep.subr.bf16.mxu0 %v14323_v0 }
  0xf8   :  { %8202 = vmatprep.mubr.f32.mxu0 %v12460_v14  ;;  %8462 = vmatprep.mubr.msk.f32.mxu1 %vm11923_vm0, %v14259_v52 }
  0xf9   :  { %8203 = vmatmul.mubr.f32.gmra.mrb[2].mxu0 %v12529_v36 }
  0xfa   :  { %10462 = vmatpush3.bf16.msra.mxu1 %v14326_v6  ;;  %10312 = vmatpush3.bf16.msra.mxu0 %v14323_v0 }
  0xfb   :  { %10463 = vmatprep.subr.bf16.mxu1 %v14240_v40  ;;  %10314 = vmatprep.subr.bf16.mxu0 %v14327_v55 }
  0xfc   :  { %8205 = vmatprep.mubr.f32.mxu0 %v12534_v39 }
  0xfd   :  { %8206 = vmatmul.mubr.f32.gmra.mrb[4].mxu0 %v12587_v13 }
  0xfe   :  { %10465 = vmatpush3.bf16.msra.mxu1 %v14330_v31  ;;  %10316 = vmatpush3.bf16.msra.mxu0 %v14327_v55 }
  0xff   :  { %10466 = vmatprep.subr.bf16.mxu1 %v14240_v40  ;;  %10318 = vmatprep.subr.bf16.mxu0 %v14331_v30 }
 0x100   :  { %8208 = vmatprep.mubr.f32.mxu0 %v14316_v58 }
 0x101   :  { %8209 = vmatmul.mubr.f32.gmra.mrb[6].mxu0 %v12647_v8 }
 0x102   :  { %10468 = vmatpush3.bf16.msra.mxu1 %v14333_v32  ;;  %10320 = vmatpush3.bf16.msra.mxu0 %v14331_v30 }
 0x103   :  { %10469 = vmatprep.subr.bf16.mxu1 %v14240_v40  ;;  %10322 = vmatprep.subr.bf16.mxu0 %v14334_v11 }
 0x104   :  { %8243 = vmatprep.mubr.f32.mxu0 %v12220_v53  ;;  %v6927_v53 = vld [vmem:[%s14084_s3] ss:$0 sm:$0xff] }
 0x106   :  { %10471 = vmatpush3.bf16.msra.mxu1 %v14336_v60  ;;  %10324 = vmatpush3.bf16.msra.mxu0 %v14334_v11 }
 0x107   :  { %10472 = vmatprep.subr.bf16.mxu1 %v14240_v40  ;;  %10326 = vmatprep.subr.bf16.mxu0 %v14337_v2 }
 0x10a   :  { %10474 = vmatpush3.bf16.msra.mxu1 %v14338_v48  ;;  %10328 = vmatpush3.bf16.msra.mxu0 %v14337_v2  ;;  %v14351_v2 = vld [vmem:[#allocation36_spill] sm:$0xff] }
 0x10b   :  { %10475 = vmatprep.subr.bf16.mxu1 %v14240_v40  ;;  %10330 = vmatprep.subr.bf16.mxu0 %v14339_v41 }
 0x10e   :  { %10477 = vmatpush3.bf16.msra.mxu1 %v14340_v45  ;;  %10332 = vmatpush3.bf16.msra.mxu0 %v14339_v41  ;;  %v14352_v41 = vld [vmem:[#allocation37_spill] sm:$0xff] }
 0x10f   :  { %10478 = vmatprep.subr.bf16.mxu1 %v14240_v40  ;;  %10334 = vmatprep.subr.bf16.mxu0 %v14341_v9 }
 0x112   :  { %10480 = vmatpush3.bf16.msra.mxu1 %v14342_v22  ;;  %10336 = vmatpush3.bf16.msra.mxu0 %v14341_v9  ;;  %v14353_v9 = vld [vmem:[#allocation39_spill] sm:$0xff] }
 0x113   :  { %10481 = vmatprep.subr.bf16.mxu0 %v14240_v40  ;;  %10625 = vmatprep.subr.bf16.mxu1 %v14240_v40 }
 0x115   :  { %8463 = vmatmul.mubr.f32.vlgmr.msra.gmra.mrb[0].mxu1 %v14259_v52  ;;  %8244 = vmatmul.mubr.f32.vlgmr.msra.gmra.mrb[0].mxu0 %v12255_v3 }
 0x116   :  { %8246 = vmatprep.mubr.f32.mxu0 %v12460_v14  ;;  %10483 = vmatpush3.bf16.msra.mxu0 %v14322_v44 }
 0x117   :  { %10484 = vmatprep.subr.bf16.mxu0 %v14240_v40  ;;  %10627 = vmatpush3.bf16.msra.mxu1 %v14322_v44 }
 0x118   :  { %10628 = vmatprep.subr.bf16.mxu1 %v14240_v40  ;;  %8707 = vmatprep.mubr.msk.f32.mxu1 %vm11923_vm0, %v14259_v52 }
 0x119   :  { %8247 = vmatmul.mubr.f32.gmra.mrb[2].mxu0 %v12529_v36 }
 0x11a   :  { %8249 = vmatprep.mubr.f32.mxu0 %v12534_v39  ;;  %10486 = vmatpush3.bf16.msra.mxu0 %v14326_v6 }
 0x11b   :  { %10487 = vmatprep.subr.bf16.mxu0 %v14240_v40  ;;  %10630 = vmatpush3.bf16.msra.mxu1 %v14326_v6 }
 0x11c   :  { %10631 = vmatprep.subr.bf16.mxu1 %v14240_v40 }
 0x11d   :  { %8250 = vmatmul.mubr.f32.gmra.mrb[4].mxu0 %v12587_v13 }
 0x11e   :  { %8252 = vmatprep.mubr.f32.mxu0 %v14316_v58  ;;  %10489 = vmatpush3.bf16.msra.mxu0 %v14330_v31 }
 0x11f   :  { %10490 = vmatprep.subr.bf16.mxu0 %v14240_v40  ;;  %10633 = vmatpush3.bf16.msra.mxu1 %v14330_v31 }
 0x120   :  { %10634 = vmatprep.subr.bf16.mxu1 %v14240_v40 }
 0x121   :  { %8253 = vmatmul.mubr.f32.gmra.mrb[6].mxu0 %v12647_v8 }
 0x122   :  { %10492 = vmatpush3.bf16.msra.mxu0 %v14333_v32  ;;  %8497 = vmatprep.mubr.msk.f32.mxu0 %vm11923_vm0, %v14259_v52 }
 0x123   :  { %10493 = vmatprep.subr.bf16.mxu0 %v14240_v40  ;;  %10636 = vmatpush3.bf16.msra.mxu1 %v14333_v32 }
 0x124   :  { %10637 = vmatprep.subr.bf16.mxu1 %v14240_v40 }
 0x126   :  { %10495 = vmatpush3.bf16.msra.mxu0 %v14336_v60 }
 0x127   :  { %10496 = vmatprep.subr.bf16.mxu0 %v14240_v40  ;;  %10639 = vmatpush3.bf16.msra.mxu1 %v14336_v60 }
 0x128   :  { %10640 = vmatprep.subr.bf16.mxu1 %v14240_v40 }
 0x12a   :  { %10498 = vmatpush3.bf16.msra.mxu0 %v14338_v48 }
 0x12b   :  { %10499 = vmatprep.subr.bf16.mxu0 %v14240_v40  ;;  %10642 = vmatpush3.bf16.msra.mxu1 %v14338_v48 }
 0x12c   :  { %10643 = vmatprep.subr.bf16.mxu1 %v14240_v40 }
 0x12e   :  { %10501 = vmatpush3.bf16.msra.mxu0 %v14340_v45 }
 0x12f   :  { %10502 = vmatprep.subr.bf16.mxu0 %v14240_v40  ;;  %10645 = vmatpush3.bf16.msra.mxu1 %v14340_v45 }
 0x130   :  { %10646 = vmatprep.subr.bf16.mxu1 %v14240_v40 }
 0x132   :  { %10504 = vmatpush3.bf16.msra.mxu0 %v14342_v22 }
 0x133   :  { %10505 = vmatprep.subr.bf16.mxu0 %v14240_v40  ;;  %10648 = vmatpush3.bf16.msra.mxu1 %v14342_v22 }
 0x134   :  { %10649 = vmatprep.subr.bf16.mxu1 %v14240_v40 }
 0x1e8   :  { %v1720_v3 = vpop.f32.mrb[0].mxu1  ;;  %v8245_v25 = vpop.f32.mrb[0].mxu0 }
 0x1e9   :  { %v13023_v14 = vadd.f32 %v8245_v25, %v6927_v53  ;;  %v8464_v39 = vpop.f32.mrb[1].mxu1  ;;  %v1011_v36 = vpop.f32.mrb[1].mxu0 }
 0x1ea   :  { %v11634_v13 = vadd.f32 %v6927_v53, %v1011_v36 }
 0x1ec   :  { %v1724_v8 = vadd.f32 %v11634_v13, %v1720_v3  ;;  %v8248_v18 = vpop.f32.mrb[2].mxu0 }
 0x1ed   :  { %v13025_v26 = vadd.f32 %v8248_v18, %v6927_v53  ;;  %v1023_v50 = vpop.f32.mrb[3].mxu0 }
 0x1ee   :  { %11782 = vtanh.f32 %v1724_v8  ;;  %v13027_v33 = vadd.f32 %v6927_v53, %v1023_v50 }
 0x1f0   :  { %v8251_v43 = vpop.f32.mrb[4].mxu0 }
 0x1f1   :  { %v13029_v4 = vadd.f32 %v8251_v43, %v6927_v53  ;;  %v1035_v58 = vpop.f32.mrb[5].mxu0 }
 0x1f2   :  { %v13031_v59 = vadd.f32 %v6927_v53, %v1035_v58 }
 0x1f4   :  { %v8254_v19 = vpop.f32.mrb[6].mxu0 }
 0x1f5   :  { %v13033_v0 = vadd.f32 %v8254_v19, %v6927_v53  ;;  %v1047_v46 = vpop.f32.mrb[7].mxu0 }
 0x1f6   :  { %v13035_v16 = vadd.f32 %v6927_v53, %v1047_v46 }
 0x1f8   :  { %v11783_v55 = vpop.eup %11782 }
 0x1f9   :  { %v13037_v63 = vand.u32 4294901760, %v11783_v55 }
 0x1fb   :  { %v1810_v42 = vsub.f32 %v11783_v55, %v13037_v63 }
 0x1fd   :  { %v1811_v30 = vand.u32 4294901760, %v1810_v42 }
 0x1ff   :  { %v1812_v27 = vsub.f32 %v1810_v42, %v1811_v30 }
 0x201   :  { %v1813_v11 = vand.u32 4294901760, %v1812_v27 }
 0x203   :  { %8498 = vmatmul.mubr.f32.vlgmr.msra.gmra.mrb[8].mxu0 %v1813_v11 }
 0x204   :  { %10507 = vmatpush3.bf16.msra.mxu0 %v14350_v49  ;;  %8532 = vmatprep.mubr.msk.f32.mxu0 %vm11923_vm0, %v14259_v52 }
 0x205   :  { %10508 = vmatprep.subr.bf16.mxu0 %v14240_v40 }
 0x208   :  { %10510 = vmatpush3.bf16.msra.mxu0 %v14351_v2 }
 0x209   :  { %10511 = vmatprep.subr.bf16.mxu0 %v14240_v40 }
 0x20c   :  { %10513 = vmatpush3.bf16.msra.mxu0 %v14352_v41 }
 0x20d   :  { %10514 = vmatprep.subr.bf16.mxu0 %v14240_v40 }
 0x210   :  { %10516 = vmatpush3.bf16.msra.mxu0 %v14353_v9 }
 0x211   :  { %10517 = vmatprep.subr.bf16.mxu0 %v14240_v40 }
 0x214   :  { %10519 = vmatpush3.bf16.msra.mxu0 %v14354_v51 }
 0x215   :  { %10520 = vmatprep.subr.bf16.mxu0 %v14240_v40 }
 0x218   :  { %10522 = vmatpush3.bf16.msra.mxu0 %v12598_v17 }
 0x219   :  { %10523 = vmatprep.subr.bf16.mxu0 %v14240_v40 }
 0x21c   :  { %10525 = vmatpush3.bf16.msra.mxu0 %v14355_v29 }
 0x21d   :  { %10526 = vmatprep.subr.bf16.mxu0 %v14240_v40 }
 0x220   :  { %10528 = vmatpush3.bf16.msra.mxu0 %v14356_v7 }
 0x221   :  { %10529 = vmatprep.subr.bf16.mxu0 %v14240_v40 }
 0x223   :  { %8533 = vmatmul.mubr.f32.vlgmr.msra.gmra.mrb[8].mxu0 %v13037_v63 }
 0x224   :  { %10531 = vmatpush3.bf16.msra.mxu0 %v12676_v23  ;;  %8567 = vmatprep.mubr.msk.f32.mxu0 %vm11923_vm0, %v14259_v52 }
 0x225   :  { %10532 = vmatprep.subr.bf16.mxu0 %v14240_v40 }
 0x228   :  { %10534 = vmatpush3.bf16.msra.mxu0 %v12776_v47 }
 0x229   :  { %10535 = vmatprep.subr.bf16.mxu0 %v14240_v40 }
 0x22c   :  { %10537 = vmatpush3.bf16.msra.mxu0 %v12788_v21 }
 0x22d   :  { %10538 = vmatprep.subr.bf16.mxu0 %v14240_v40 }
 0x230   :  { %10540 = vmatpush3.bf16.msra.mxu0 %v12798_v5 }
 0x231   :  { %10541 = vmatprep.subr.bf16.mxu0 %v14240_v40 }
 0x234   :  { %10543 = vmatpush3.bf16.msra.mxu0 %v12808_v37 }
 0x235   :  { %10544 = vmatprep.subr.bf16.mxu0 %v14240_v40 }
 0x238   :  { %10546 = vmatpush3.bf16.msra.mxu0 %v12817_v20 }
 0x239   :  { %10547 = vmatprep.subr.bf16.mxu0 %v14240_v40 }
 0x23c   :  { %10549 = vmatpush3.bf16.msra.mxu0 %v12825_v24 }
 0x23d   :  { %10550 = vmatprep.subr.bf16.mxu0 %v14240_v40 }
 0x240   :  { %10552 = vmatpush3.bf16.msra.mxu0 %v12833_v10 }
 0x241   :  { %10553 = vmatprep.subr.bf16.mxu0 %v14240_v40 }
 0x243   :  { %8568 = vmatmul.mubr.f32.vlgmr.msra.gmra.mrb[8].mxu0 %v1810_v42 }
 0x244   :  { %10555 = vmatpush3.bf16.msra.mxu0 %v14322_v44  ;;  %8602 = vmatprep.mubr.msk.f32.mxu0 %vm11923_vm0, %v14259_v52 }
 0x245   :  { %10556 = vmatprep.subr.bf16.mxu0 %v14240_v40 }
 0x248   :  { %10558 = vmatpush3.bf16.msra.mxu0 %v14326_v6 }
 0x249   :  { %10559 = vmatprep.subr.bf16.mxu0 %v14240_v40 }
 0x24c   :  { %10561 = vmatpush3.bf16.msra.mxu0 %v14330_v31 }
 0x24d   :  { %10562 = vmatprep.subr.bf16.mxu0 %v14240_v40 }
 0x250   :  { %10564 = vmatpush3.bf16.msra.mxu0 %v14333_v32 }
 0x251   :  { %10565 = vmatprep.subr.bf16.mxu0 %v14240_v40 }
 0x254   :  { %10567 = vmatpush3.bf16.msra.mxu0 %v14336_v60 }
 0x255   :  { %10568 = vmatprep.subr.bf16.mxu0 %v14240_v40 }
 0x258   :  { %10570 = vmatpush3.bf16.msra.mxu0 %v14338_v48 }
 0x259   :  { %10571 = vmatprep.subr.bf16.mxu0 %v14240_v40 }
 0x25c   :  { %10573 = vmatpush3.bf16.msra.mxu0 %v14340_v45 }
 0x25d   :  { %10574 = vmatprep.subr.bf16.mxu0 %v14240_v40 }
 0x260   :  { %10576 = vmatpush3.bf16.msra.mxu0 %v14342_v22 }
 0x261   :  { %10577 = vmatprep.subr.bf16.mxu0 %v14240_v40 }
 0x263   :  { %8603 = vmatmul.mubr.f32.vlgmr.msra.gmra.mrb[8].mxu0 %v1811_v30 }
 0x264   :  { %10579 = vmatpush3.bf16.msra.mxu0 %v12690_v1  ;;  %8637 = vmatprep.mubr.msk.f32.mxu0 %vm11923_vm0, %v14259_v52 }
 0x265   :  { %10580 = vmatprep.subr.bf16.mxu0 %v14240_v40 }
 0x268   :  { %10582 = vmatpush3.bf16.msra.mxu0 %v12702_v38 }
 0x269   :  { %10583 = vmatprep.subr.bf16.mxu0 %v14240_v40 }
 0x26c   :  { %10585 = vmatpush3.bf16.msra.mxu0 %v12715_v57 }
 0x26d   :  { %10586 = vmatprep.subr.bf16.mxu0 %v14240_v40 }
 0x270   :  { %10588 = vmatpush3.bf16.msra.mxu0 %v12727_v56 }
 0x271   :  { %10589 = vmatprep.subr.bf16.mxu0 %v14240_v40 }
 0x274   :  { %10591 = vmatpush3.bf16.msra.mxu0 %v12740_v12 }
 0x275   :  { %10592 = vmatprep.subr.bf16.mxu0 %v14240_v40 }
 0x278   :  { %10594 = vmatpush3.bf16.msra.mxu0 %v12753_v62 }
 0x279   :  { %10595 = vmatprep.subr.bf16.mxu0 %v14240_v40 }
 0x27c   :  { %10597 = vmatpush3.bf16.msra.mxu0 %v12765_v34 }
 0x27d   :  { %10598 = vmatprep.subr.bf16.mxu0 %v14240_v40 }
 0x280   :  { %10600 = vmatpush3.bf16.msra.mxu0 %v12769_v54 }
 0x281   :  { %10601 = vmatprep.subr.bf16.mxu0 %v14240_v40 }
 0x283   :  { %8638 = vmatmul.mubr.f32.vlgmr.msra.gmra.mrb[8].mxu0 %v13037_v63 }
 0x284   :  { %10603 = vmatpush3.bf16.msra.mxu0 %v14322_v44  ;;  %8672 = vmatprep.mubr.msk.f32.mxu0 %vm11923_vm0, %v14259_v52 }
 0x285   :  { %10604 = vmatprep.subr.bf16.mxu0 %v14240_v40 }
 0x288   :  { %10606 = vmatpush3.bf16.msra.mxu0 %v14326_v6 }
 0x289   :  { %10607 = vmatprep.subr.bf16.mxu0 %v14240_v40 }
 0x28c   :  { %10609 = vmatpush3.bf16.msra.mxu0 %v14330_v31 }
 0x28d   :  { %10610 = vmatprep.subr.bf16.mxu0 %v14240_v40 }
 0x290   :  { %10612 = vmatpush3.bf16.msra.mxu0 %v14333_v32 }
 0x291   :  { %10613 = vmatprep.subr.bf16.mxu0 %v14240_v40 }
 0x294   :  { %10615 = vmatpush3.bf16.msra.mxu0 %v14336_v60 }
 0x295   :  { %10616 = vmatprep.subr.bf16.mxu0 %v14240_v40 }
 0x298   :  { %10618 = vmatpush3.bf16.msra.mxu0 %v14338_v48 }
 0x299   :  { %10619 = vmatprep.subr.bf16.mxu0 %v14240_v40 }
 0x29c   :  { %10621 = vmatpush3.bf16.msra.mxu0 %v14340_v45 }
 0x29d   :  { %10622 = vmatprep.subr.bf16.mxu0 %v14240_v40 }
 0x2a0   :  { %10624 = vmatpush3.bf16.msra.mxu0 %v14342_v22 }
 0x2a1   :  { %10769 = vmatprep.subr.bf16.mxu0 %v14240_v40 }
 0x2a3   :  { %8673 = vmatmul.mubr.f32.vlgmr.msra.gmra.mrb[8].mxu0 %v13037_v63 }
 0x2a4   :  { %10771 = vmatpush3.bf16.msra.mxu0 %v14322_v44  ;;  %8917 = vmatprep.mubr.msk.f32.mxu0 %vm11923_vm0, %v14259_v52 }
 0x2a5   :  { %10772 = vmatprep.subr.bf16.mxu0 %v14240_v40 }
 0x2a8   :  { %10774 = vmatpush3.bf16.msra.mxu0 %v14326_v6 }
 0x2a9   :  { %10775 = vmatprep.subr.bf16.mxu0 %v14240_v40 }
 0x2ac   :  { %10777 = vmatpush3.bf16.msra.mxu0 %v14330_v31 }
 0x2ad   :  { %10778 = vmatprep.subr.bf16.mxu0 %v14240_v40 }
 0x2b0   :  { %10780 = vmatpush3.bf16.msra.mxu0 %v14333_v32 }
 0x2b1   :  { %10781 = vmatprep.subr.bf16.mxu0 %v14240_v40 }
 0x2b4   :  { %10783 = vmatpush3.bf16.msra.mxu0 %v14336_v60 }
 0x2b5   :  { %10784 = vmatprep.subr.bf16.mxu0 %v14240_v40 }
 0x2b8   :  { %10786 = vmatpush3.bf16.msra.mxu0 %v14338_v48 }
 0x2b9   :  { %10787 = vmatprep.subr.bf16.mxu0 %v14240_v40 }
 0x2bc   :  { %10789 = vmatpush3.bf16.msra.mxu0 %v14340_v45 }
 0x2bd   :  { %10790 = vmatprep.subr.bf16.mxu0 %v14240_v40 }
 0x2c0   :  { %10792 = vmatpush3.bf16.msra.mxu0 %v14342_v22 }
 0x2c1   :  { %10793 = vmatprep.subr.bf16.mxu0 %v14240_v40 }
 0x376   :  { %v2365_v61 = vpop.f32.mrb[8].mxu0 }
 0x377   :  { %v2369_v15 = vadd.f32 %v13023_v14, %v2365_v61  ;;  %v8674_v35 = vpop.f32.mrb[9].mxu0 }
 0x379   :  { %11784 = vtanh.f32 %v2369_v15 }
 0x383   :  { %v11785_v28 = vpop.eup %11784 }
 0x384   :  { %v13152_v53 = vand.u32 4294901760, %v11785_v28 }
 0x386   :  { %v2455_v3 = vsub.f32 %v11785_v28, %v13152_v53 }
 0x388   :  { %v2456_v25 = vand.u32 4294901760, %v2455_v3 }
 0x38a   :  { %v2457_v39 = vsub.f32 %v2455_v3, %v2456_v25 }
 0x38c   :  { %v2458_v36 = vand.u32 4294901760, %v2457_v39 }
 0x38e   :  { %8708 = vmatmul.mubr.f32.vlgmr.msra.gmra.mrb[2].mxu1 %v2458_v36 }
 0x38f   :  { %10651 = vmatpush3.bf16.msra.mxu1 %v14350_v49  ;;  %8742 = vmatprep.mubr.msk.f32.mxu1 %vm11923_vm0, %v14259_v52 }
 0x390   :  { %10652 = vmatprep.subr.bf16.mxu1 %v14240_v40 }
 0x393   :  { %10654 = vmatpush3.bf16.msra.mxu1 %v14351_v2 }
 0x394   :  { %10655 = vmatprep.subr.bf16.mxu1 %v14240_v40 }
 0x397   :  { %10657 = vmatpush3.bf16.msra.mxu1 %v14352_v41 }
 0x398   :  { %10658 = vmatprep.subr.bf16.mxu1 %v14240_v40 }
 0x39b   :  { %10660 = vmatpush3.bf16.msra.mxu1 %v14353_v9 }
 0x39c   :  { %10661 = vmatprep.subr.bf16.mxu1 %v14240_v40 }
 0x39f   :  { %10663 = vmatpush3.bf16.msra.mxu1 %v14354_v51 }
 0x3a0   :  { %10664 = vmatprep.subr.bf16.mxu1 %v14240_v40 }
 0x3a3   :  { %10666 = vmatpush3.bf16.msra.mxu1 %v12598_v17 }
 0x3a4   :  { %10667 = vmatprep.subr.bf16.mxu1 %v14240_v40 }
 0x3a7   :  { %10669 = vmatpush3.bf16.msra.mxu1 %v14355_v29 }
 0x3a8   :  { %10670 = vmatprep.subr.bf16.mxu1 %v14240_v40 }
 0x3ab   :  { %10672 = vmatpush3.bf16.msra.mxu1 %v14356_v7 }
 0x3ac   :  { %10673 = vmatprep.subr.bf16.mxu1 %v14240_v40 }
 0x3ae   :  { %8743 = vmatmul.mubr.f32.vlgmr.msra.gmra.mrb[2].mxu1 %v13152_v53 }
 0x3af   :  { %10675 = vmatpush3.bf16.msra.mxu1 %v12676_v23  ;;  %8777 = vmatprep.mubr.msk.f32.mxu1 %vm11923_vm0, %v14259_v52 }
 0x3b0   :  { %10676 = vmatprep.subr.bf16.mxu1 %v14240_v40 }
 0x3b3   :  { %10678 = vmatpush3.bf16.msra.mxu1 %v12776_v47 }
 0x3b4   :  { %10679 = vmatprep.subr.bf16.mxu1 %v14240_v40 }
 0x3b7   :  { %10681 = vmatpush3.bf16.msra.mxu1 %v12788_v21 }
 0x3b8   :  { %10682 = vmatprep.subr.bf16.mxu1 %v14240_v40 }
 0x3bb   :  { %10684 = vmatpush3.bf16.msra.mxu1 %v12798_v5 }
 0x3bc   :  { %10685 = vmatprep.subr.bf16.mxu1 %v14240_v40 }
 0x3bf   :  { %10687 = vmatpush3.bf16.msra.mxu1 %v12808_v37 }
 0x3c0   :  { %10688 = vmatprep.subr.bf16.mxu1 %v14240_v40 }
 0x3c3   :  { %10690 = vmatpush3.bf16.msra.mxu1 %v12817_v20 }
 0x3c4   :  { %10691 = vmatprep.subr.bf16.mxu1 %v14240_v40 }
 0x3c7   :  { %10693 = vmatpush3.bf16.msra.mxu1 %v12825_v24 }
 0x3c8   :  { %10694 = vmatprep.subr.bf16.mxu1 %v14240_v40 }
 0x3cb   :  { %10696 = vmatpush3.bf16.msra.mxu1 %v12833_v10 }
 0x3cc   :  { %10697 = vmatprep.subr.bf16.mxu1 %v14240_v40 }
 0x3ce   :  { %8778 = vmatmul.mubr.f32.vlgmr.msra.gmra.mrb[2].mxu1 %v2455_v3 }
 0x3cf   :  { %10699 = vmatpush3.bf16.msra.mxu1 %v14322_v44  ;;  %8812 = vmatprep.mubr.msk.f32.mxu1 %vm11923_vm0, %v14259_v52 }
 0x3d0   :  { %10700 = vmatprep.subr.bf16.mxu1 %v14240_v40 }
 0x3d3   :  { %10702 = vmatpush3.bf16.msra.mxu1 %v14326_v6 }
 0x3d4   :  { %10703 = vmatprep.subr.bf16.mxu1 %v14240_v40 }
 0x3d7   :  { %10705 = vmatpush3.bf16.msra.mxu1 %v14330_v31 }
 0x3d8   :  { %10706 = vmatprep.subr.bf16.mxu1 %v14240_v40 }
 0x3db   :  { %10708 = vmatpush3.bf16.msra.mxu1 %v14333_v32 }
 0x3dc   :  { %10709 = vmatprep.subr.bf16.mxu1 %v14240_v40 }
 0x3df   :  { %10711 = vmatpush3.bf16.msra.mxu1 %v14336_v60 }
 0x3e0   :  { %10712 = vmatprep.subr.bf16.mxu1 %v14240_v40 }
 0x3e3   :  { %10714 = vmatpush3.bf16.msra.mxu1 %v14338_v48 }
 0x3e4   :  { %10715 = vmatprep.subr.bf16.mxu1 %v14240_v40 }
 0x3e7   :  { %10717 = vmatpush3.bf16.msra.mxu1 %v14340_v45 }
 0x3e8   :  { %10718 = vmatprep.subr.bf16.mxu1 %v14240_v40 }
 0x3eb   :  { %10720 = vmatpush3.bf16.msra.mxu1 %v14342_v22 }
 0x3ec   :  { %10721 = vmatprep.subr.bf16.mxu1 %v14240_v40 }
 0x3ee   :  { %8813 = vmatmul.mubr.f32.vlgmr.msra.gmra.mrb[2].mxu1 %v2456_v25 }
 0x3ef   :  { %10723 = vmatpush3.bf16.msra.mxu1 %v12690_v1  ;;  %8847 = vmatprep.mubr.msk.f32.mxu1 %vm11923_vm0, %v14259_v52 }
 0x3f0   :  { %10724 = vmatprep.subr.bf16.mxu1 %v14240_v40 }
 0x3f3   :  { %10726 = vmatpush3.bf16.msra.mxu1 %v12702_v38 }
 0x3f4   :  { %10727 = vmatprep.subr.bf16.mxu1 %v14240_v40 }
 0x3f7   :  { %10729 = vmatpush3.bf16.msra.mxu1 %v12715_v57 }
 0x3f8   :  { %10730 = vmatprep.subr.bf16.mxu1 %v14240_v40 }
 0x3fb   :  { %10732 = vmatpush3.bf16.msra.mxu1 %v12727_v56 }
 0x3fc   :  { %10733 = vmatprep.subr.bf16.mxu1 %v14240_v40 }
 0x3ff   :  { %10735 = vmatpush3.bf16.msra.mxu1 %v12740_v12 }
 0x400   :  { %10736 = vmatprep.subr.bf16.mxu1 %v14240_v40 }
 0x403   :  { %10738 = vmatpush3.bf16.msra.mxu1 %v12753_v62 }
 0x404   :  { %10739 = vmatprep.subr.bf16.mxu1 %v14240_v40 }
 0x407   :  { %10741 = vmatpush3.bf16.msra.mxu1 %v12765_v34 }
 0x408   :  { %10742 = vmatprep.subr.bf16.mxu1 %v14240_v40 }
 0x40b   :  { %10744 = vmatpush3.bf16.msra.mxu1 %v12769_v54 }
 0x40c   :  { %10745 = vmatprep.subr.bf16.mxu1 %v14240_v40 }
 0x40e   :  { %8848 = vmatmul.mubr.f32.vlgmr.msra.gmra.mrb[2].mxu1 %v13152_v53 }
 0x40f   :  { %10747 = vmatpush3.bf16.msra.mxu1 %v14322_v44  ;;  %8882 = vmatprep.mubr.msk.f32.mxu1 %vm11923_vm0, %v14259_v52 }
 0x410   :  { %10748 = vmatprep.subr.bf16.mxu1 %v14240_v40 }
 0x413   :  { %10750 = vmatpush3.bf16.msra.mxu1 %v14326_v6 }
 0x414   :  { %10751 = vmatprep.subr.bf16.mxu1 %v14240_v40 }
 0x417   :  { %10753 = vmatpush3.bf16.msra.mxu1 %v14330_v31 }
 0x418   :  { %10754 = vmatprep.subr.bf16.mxu1 %v14240_v40 }
 0x41b   :  { %10756 = vmatpush3.bf16.msra.mxu1 %v14333_v32 }
 0x41c   :  { %10757 = vmatprep.subr.bf16.mxu1 %v14240_v40 }
 0x41f   :  { %10759 = vmatpush3.bf16.msra.mxu1 %v14336_v60 }
 0x420   :  { %10760 = vmatprep.subr.bf16.mxu1 %v14240_v40 }
 0x423   :  { %10762 = vmatpush3.bf16.msra.mxu1 %v14338_v48 }
 0x424   :  { %10763 = vmatprep.subr.bf16.mxu1 %v14240_v40 }
 0x427   :  { %10765 = vmatpush3.bf16.msra.mxu1 %v14340_v45 }
 0x428   :  { %10766 = vmatprep.subr.bf16.mxu1 %v14240_v40 }
 0x42b   :  { %10768 = vmatpush3.bf16.msra.mxu1 %v14342_v22 }
 0x42c   :  { %10913 = vmatprep.subr.bf16.mxu1 %v14240_v40 }
 0x42e   :  { %8883 = vmatmul.mubr.f32.vlgmr.msra.gmra.mrb[2].mxu1 %v13152_v53 }
 0x42f   :  { %10915 = vmatpush3.bf16.msra.mxu1 %v14322_v44  ;;  %9127 = vmatprep.mubr.msk.f32.mxu1 %vm11923_vm0, %v14259_v52 }
 0x430   :  { %10916 = vmatprep.subr.bf16.mxu1 %v14240_v40 }
 0x433   :  { %10918 = vmatpush3.bf16.msra.mxu1 %v14326_v6 }
 0x434   :  { %10919 = vmatprep.subr.bf16.mxu1 %v14240_v40 }
 0x437   :  { %10921 = vmatpush3.bf16.msra.mxu1 %v14330_v31 }
 0x438   :  { %10922 = vmatprep.subr.bf16.mxu1 %v14240_v40 }
 0x43b   :  { %10924 = vmatpush3.bf16.msra.mxu1 %v14333_v32 }
 0x43c   :  { %10925 = vmatprep.subr.bf16.mxu1 %v14240_v40 }
 0x43f   :  { %10927 = vmatpush3.bf16.msra.mxu1 %v14336_v60 }
 0x440   :  { %10928 = vmatprep.subr.bf16.mxu1 %v14240_v40 }
 0x443   :  { %10930 = vmatpush3.bf16.msra.mxu1 %v14338_v48 }
 0x444   :  { %10931 = vmatprep.subr.bf16.mxu1 %v14240_v40 }
 0x447   :  { %10933 = vmatpush3.bf16.msra.mxu1 %v14340_v45 }
 0x448   :  { %10934 = vmatprep.subr.bf16.mxu1 %v14240_v40 }
 0x44b   :  { %10936 = vmatpush3.bf16.msra.mxu1 %v14342_v22 }
 0x44c   :  { %10937 = vmatprep.subr.bf16.mxu1 %v14240_v40 }
 0x501   :  { %v3010_v14 = vpop.f32.mrb[2].mxu1 }
 0x502   :  { %v3014_v13 = vadd.f32 %v13027_v33, %v3010_v14  ;;  %v8884_v8 = vpop.f32.mrb[3].mxu1 }
 0x504   :  { %11786 = vtanh.f32 %v3014_v13 }
 0x50e   :  { %v11787_v18 = vpop.eup %11786 }
 0x50f   :  { %v13267_v50 = vand.u32 4294901760, %v11787_v18 }
 0x511   :  { %v3100_v43 = vsub.f32 %v11787_v18, %v13267_v50 }
 0x513   :  { %v3101_v58 = vand.u32 4294901760, %v3100_v43 }
 0x515   :  { %v3102_v19 = vsub.f32 %v3100_v43, %v3101_v58 }
 0x517   :  { %v3103_v46 = vand.u32 4294901760, %v3102_v19 }
 0x519   :  { %8918 = vmatmul.mubr.f32.vlgmr.msra.gmra.mrb[10].mxu0 %v3103_v46 }
 0x51a   :  { %10795 = vmatpush3.bf16.msra.mxu0 %v14350_v49  ;;  %8952 = vmatprep.mubr.msk.f32.mxu0 %vm11923_vm0, %v14259_v52 }
 0x51b   :  { %10796 = vmatprep.subr.bf16.mxu0 %v14240_v40 }
 0x51e   :  { %10798 = vmatpush3.bf16.msra.mxu0 %v14351_v2 }
 0x51f   :  { %10799 = vmatprep.subr.bf16.mxu0 %v14240_v40 }
 0x522   :  { %10801 = vmatpush3.bf16.msra.mxu0 %v14352_v41 }
 0x523   :  { %10802 = vmatprep.subr.bf16.mxu0 %v14240_v40 }
 0x526   :  { %10804 = vmatpush3.bf16.msra.mxu0 %v14353_v9 }
 0x527   :  { %10805 = vmatprep.subr.bf16.mxu0 %v14240_v40 }
 0x52a   :  { %10807 = vmatpush3.bf16.msra.mxu0 %v14354_v51 }
 0x52b   :  { %10808 = vmatprep.subr.bf16.mxu0 %v14240_v40 }
 0x52e   :  { %10810 = vmatpush3.bf16.msra.mxu0 %v12598_v17 }
 0x52f   :  { %10811 = vmatprep.subr.bf16.mxu0 %v14240_v40 }
 0x532   :  { %10813 = vmatpush3.bf16.msra.mxu0 %v14355_v29 }
 0x533   :  { %10814 = vmatprep.subr.bf16.mxu0 %v14240_v40 }
 0x536   :  { %10816 = vmatpush3.bf16.msra.mxu0 %v14356_v7 }
 0x537   :  { %10817 = vmatprep.subr.bf16.mxu0 %v14240_v40 }
 0x539   :  { %8953 = vmatmul.mubr.f32.vlgmr.msra.gmra.mrb[10].mxu0 %v13267_v50 }
 0x53a   :  { %10819 = vmatpush3.bf16.msra.mxu0 %v12676_v23  ;;  %8987 = vmatprep.mubr.msk.f32.mxu0 %vm11923_vm0, %v14259_v52 }
 0x53b   :  { %10820 = vmatprep.subr.bf16.mxu0 %v14240_v40 }
 0x53e   :  { %10822 = vmatpush3.bf16.msra.mxu0 %v12776_v47 }
 0x53f   :  { %10823 = vmatprep.subr.bf16.mxu0 %v14240_v40 }
 0x542   :  { %10825 = vmatpush3.bf16.msra.mxu0 %v12788_v21 }
 0x543   :  { %10826 = vmatprep.subr.bf16.mxu0 %v14240_v40 }
 0x546   :  { %10828 = vmatpush3.bf16.msra.mxu0 %v12798_v5 }
 0x547   :  { %10829 = vmatprep.subr.bf16.mxu0 %v14240_v40 }
 0x54a   :  { %10831 = vmatpush3.bf16.msra.mxu0 %v12808_v37 }
 0x54b   :  { %10832 = vmatprep.subr.bf16.mxu0 %v14240_v40 }
 0x54e   :  { %10834 = vmatpush3.bf16.msra.mxu0 %v12817_v20 }
 0x54f   :  { %10835 = vmatprep.subr.bf16.mxu0 %v14240_v40 }
 0x552   :  { %10837 = vmatpush3.bf16.msra.mxu0 %v12825_v24 }
 0x553   :  { %10838 = vmatprep.subr.bf16.mxu0 %v14240_v40 }
 0x556   :  { %10840 = vmatpush3.bf16.msra.mxu0 %v12833_v10 }
 0x557   :  { %10841 = vmatprep.subr.bf16.mxu0 %v14240_v40 }
 0x559   :  { %8988 = vmatmul.mubr.f32.vlgmr.msra.gmra.mrb[10].mxu0 %v3100_v43 }
 0x55a   :  { %10843 = vmatpush3.bf16.msra.mxu0 %v14322_v44  ;;  %9022 = vmatprep.mubr.msk.f32.mxu0 %vm11923_vm0, %v14259_v52 }
 0x55b   :  { %10844 = vmatprep.subr.bf16.mxu0 %v14240_v40 }
 0x55e   :  { %10846 = vmatpush3.bf16.msra.mxu0 %v14326_v6 }
 0x55f   :  { %10847 = vmatprep.subr.bf16.mxu0 %v14240_v40 }
 0x562   :  { %10849 = vmatpush3.bf16.msra.mxu0 %v14330_v31 }
 0x563   :  { %10850 = vmatprep.subr.bf16.mxu0 %v14240_v40 }
 0x566   :  { %10852 = vmatpush3.bf16.msra.mxu0 %v14333_v32 }
 0x567   :  { %10853 = vmatprep.subr.bf16.mxu0 %v14240_v40 }
 0x56a   :  { %10855 = vmatpush3.bf16.msra.mxu0 %v14336_v60 }
 0x56b   :  { %10856 = vmatprep.subr.bf16.mxu0 %v14240_v40 }
 0x56e   :  { %10858 = vmatpush3.bf16.msra.mxu0 %v14338_v48 }
 0x56f   :  { %10859 = vmatprep.subr.bf16.mxu0 %v14240_v40 }
 0x572   :  { %10861 = vmatpush3.bf16.msra.mxu0 %v14340_v45 }
 0x573   :  { %10862 = vmatprep.subr.bf16.mxu0 %v14240_v40 }
 0x576   :  { %10864 = vmatpush3.bf16.msra.mxu0 %v14342_v22 }
 0x577   :  { %10865 = vmatprep.subr.bf16.mxu0 %v14240_v40 }
 0x579   :  { %9023 = vmatmul.mubr.f32.vlgmr.msra.gmra.mrb[10].mxu0 %v3101_v58 }
 0x57a   :  { %10867 = vmatpush3.bf16.msra.mxu0 %v12690_v1  ;;  %9057 = vmatprep.mubr.msk.f32.mxu0 %vm11923_vm0, %v14259_v52 }
 0x57b   :  { %10868 = vmatprep.subr.bf16.mxu0 %v14240_v40 }
 0x57e   :  { %10870 = vmatpush3.bf16.msra.mxu0 %v12702_v38 }
 0x57f   :  { %10871 = vmatprep.subr.bf16.mxu0 %v14240_v40 }
 0x582   :  { %10873 = vmatpush3.bf16.msra.mxu0 %v12715_v57 }
 0x583   :  { %10874 = vmatprep.subr.bf16.mxu0 %v14240_v40 }
 0x586   :  { %10876 = vmatpush3.bf16.msra.mxu0 %v12727_v56 }
 0x587   :  { %10877 = vmatprep.subr.bf16.mxu0 %v14240_v40 }
 0x58a   :  { %10879 = vmatpush3.bf16.msra.mxu0 %v12740_v12 }
 0x58b   :  { %10880 = vmatprep.subr.bf16.mxu0 %v14240_v40 }
 0x58e   :  { %10882 = vmatpush3.bf16.msra.mxu0 %v12753_v62 }
 0x58f   :  { %10883 = vmatprep.subr.bf16.mxu0 %v14240_v40 }
 0x592   :  { %10885 = vmatpush3.bf16.msra.mxu0 %v12765_v34 }
 0x593   :  { %10886 = vmatprep.subr.bf16.mxu0 %v14240_v40 }
 0x596   :  { %10888 = vmatpush3.bf16.msra.mxu0 %v12769_v54 }
 0x597   :  { %10889 = vmatprep.subr.bf16.mxu0 %v14240_v40 }
 0x599   :  { %9058 = vmatmul.mubr.f32.vlgmr.msra.gmra.mrb[10].mxu0 %v13267_v50 }
 0x59a   :  { %10891 = vmatpush3.bf16.msra.mxu0 %v14322_v44  ;;  %9092 = vmatprep.mubr.msk.f32.mxu0 %vm11923_vm0, %v14259_v52 }
 0x59b   :  { %10892 = vmatprep.subr.bf16.mxu0 %v14240_v40 }
 0x59e   :  { %10894 = vmatpush3.bf16.msra.mxu0 %v14326_v6 }
 0x59f   :  { %10895 = vmatprep.subr.bf16.mxu0 %v14240_v40 }
 0x5a2   :  { %10897 = vmatpush3.bf16.msra.mxu0 %v14330_v31 }
 0x5a3   :  { %10898 = vmatprep.subr.bf16.mxu0 %v14240_v40 }
 0x5a6   :  { %10900 = vmatpush3.bf16.msra.mxu0 %v14333_v32 }
 0x5a7   :  { %10901 = vmatprep.subr.bf16.mxu0 %v14240_v40 }
 0x5aa   :  { %10903 = vmatpush3.bf16.msra.mxu0 %v14336_v60 }
 0x5ab   :  { %10904 = vmatprep.subr.bf16.mxu0 %v14240_v40 }
 0x5ae   :  { %10906 = vmatpush3.bf16.msra.mxu0 %v14338_v48 }
 0x5af   :  { %10907 = vmatprep.subr.bf16.mxu0 %v14240_v40 }
 0x5b2   :  { %10909 = vmatpush3.bf16.msra.mxu0 %v14340_v45 }
 0x5b3   :  { %10910 = vmatprep.subr.bf16.mxu0 %v14240_v40 }
 0x5b6   :  { %10912 = vmatpush3.bf16.msra.mxu0 %v14342_v22 }
 0x5b7   :  { %11057 = vmatprep.subr.bf16.mxu0 %v14240_v40 }
 0x5b9   :  { %9093 = vmatmul.mubr.f32.vlgmr.msra.gmra.mrb[10].mxu0 %v13267_v50 }
 0x5ba   :  { %11059 = vmatpush3.bf16.msra.mxu0 %v14322_v44  ;;  %9337 = vmatprep.mubr.msk.f32.mxu0 %vm11923_vm0, %v14259_v52 }
 0x5bb   :  { %11060 = vmatprep.subr.bf16.mxu0 %v14240_v40 }
 0x5be   :  { %11062 = vmatpush3.bf16.msra.mxu0 %v14326_v6 }
 0x5bf   :  { %11063 = vmatprep.subr.bf16.mxu0 %v14240_v40 }
 0x5c2   :  { %11065 = vmatpush3.bf16.msra.mxu0 %v14330_v31 }
 0x5c3   :  { %11066 = vmatprep.subr.bf16.mxu0 %v14240_v40 }
 0x5c6   :  { %11068 = vmatpush3.bf16.msra.mxu0 %v14333_v32 }
 0x5c7   :  { %11069 = vmatprep.subr.bf16.mxu0 %v14240_v40 }
 0x5ca   :  { %11071 = vmatpush3.bf16.msra.mxu0 %v14336_v60 }
 0x5cb   :  { %11072 = vmatprep.subr.bf16.mxu0 %v14240_v40 }
 0x5ce   :  { %11074 = vmatpush3.bf16.msra.mxu0 %v14338_v48 }
 0x5cf   :  { %11075 = vmatprep.subr.bf16.mxu0 %v14240_v40 }
 0x5d2   :  { %11077 = vmatpush3.bf16.msra.mxu0 %v14340_v45 }
 0x5d3   :  { %11078 = vmatprep.subr.bf16.mxu0 %v14240_v40 }
 0x5d6   :  { %11080 = vmatpush3.bf16.msra.mxu0 %v14342_v22 }
 0x5d7   :  { %11081 = vmatprep.subr.bf16.mxu0 %v14240_v40 }
 0x68c   :  { %v3655_v33 = vpop.f32.mrb[10].mxu0 }
 0x68d   :  { %v3659_v55 = vadd.f32 %v13025_v26, %v3655_v33  ;;  %v9094_v63 = vpop.f32.mrb[11].mxu0 }
 0x68f   :  { %11788 = vtanh.f32 %v3659_v55 }
 0x699   :  { %v11789_v42 = vpop.eup %11788 }
 0x69a   :  { %v13382_v30 = vand.u32 4294901760, %v11789_v42 }
 0x69c   :  { %v3745_v27 = vsub.f32 %v11789_v42, %v13382_v30 }
 0x69e   :  { %v3746_v11 = vand.u32 4294901760, %v3745_v27 }
 0x6a0   :  { %v3747_v61 = vsub.f32 %v3745_v27, %v3746_v11 }
 0x6a2   :  { %v3748_v15 = vand.u32 4294901760, %v3747_v61 }
 0x6a4   :  { %9128 = vmatmul.mubr.f32.vlgmr.msra.gmra.mrb[4].mxu1 %v3748_v15 }
 0x6a5   :  { %10939 = vmatpush3.bf16.msra.mxu1 %v14350_v49  ;;  %9162 = vmatprep.mubr.msk.f32.mxu1 %vm11923_vm0, %v14259_v52 }
 0x6a6   :  { %10940 = vmatprep.subr.bf16.mxu1 %v14240_v40 }
 0x6a9   :  { %10942 = vmatpush3.bf16.msra.mxu1 %v14351_v2 }
 0x6aa   :  { %10943 = vmatprep.subr.bf16.mxu1 %v14240_v40 }
 0x6ad   :  { %10945 = vmatpush3.bf16.msra.mxu1 %v14352_v41 }
 0x6ae   :  { %10946 = vmatprep.subr.bf16.mxu1 %v14240_v40 }
 0x6b1   :  { %10948 = vmatpush3.bf16.msra.mxu1 %v14353_v9 }
 0x6b2   :  { %10949 = vmatprep.subr.bf16.mxu1 %v14240_v40 }
 0x6b5   :  { %10951 = vmatpush3.bf16.msra.mxu1 %v14354_v51 }
 0x6b6   :  { %10952 = vmatprep.subr.bf16.mxu1 %v14240_v40 }
 0x6b9   :  { %10954 = vmatpush3.bf16.msra.mxu1 %v12598_v17 }
 0x6ba   :  { %10955 = vmatprep.subr.bf16.mxu1 %v14240_v40 }
 0x6bd   :  { %10957 = vmatpush3.bf16.msra.mxu1 %v14355_v29 }
 0x6be   :  { %10958 = vmatprep.subr.bf16.mxu1 %v14240_v40 }
 0x6c1   :  { %10960 = vmatpush3.bf16.msra.mxu1 %v14356_v7 }
 0x6c2   :  { %10961 = vmatprep.subr.bf16.mxu1 %v14240_v40 }
 0x6c4   :  { %9163 = vmatmul.mubr.f32.vlgmr.msra.gmra.mrb[4].mxu1 %v13382_v30 }
 0x6c5   :  { %10963 = vmatpush3.bf16.msra.mxu1 %v12676_v23  ;;  %9197 = vmatprep.mubr.msk.f32.mxu1 %vm11923_vm0, %v14259_v52 }
 0x6c6   :  { %10964 = vmatprep.subr.bf16.mxu1 %v14240_v40 }
 0x6c9   :  { %10966 = vmatpush3.bf16.msra.mxu1 %v12776_v47 }
 0x6ca   :  { %10967 = vmatprep.subr.bf16.mxu1 %v14240_v40 }
 0x6cd   :  { %10969 = vmatpush3.bf16.msra.mxu1 %v12788_v21 }
 0x6ce   :  { %10970 = vmatprep.subr.bf16.mxu1 %v14240_v40 }
 0x6d1   :  { %10972 = vmatpush3.bf16.msra.mxu1 %v12798_v5 }
 0x6d2   :  { %10973 = vmatprep.subr.bf16.mxu1 %v14240_v40 }
 0x6d5   :  { %10975 = vmatpush3.bf16.msra.mxu1 %v12808_v37 }
 0x6d6   :  { %10976 = vmatprep.subr.bf16.mxu1 %v14240_v40 }
 0x6d9   :  { %10978 = vmatpush3.bf16.msra.mxu1 %v12817_v20 }
 0x6da   :  { %10979 = vmatprep.subr.bf16.mxu1 %v14240_v40 }
 0x6dd   :  { %10981 = vmatpush3.bf16.msra.mxu1 %v12825_v24 }
 0x6de   :  { %10982 = vmatprep.subr.bf16.mxu1 %v14240_v40 }
 0x6e1   :  { %10984 = vmatpush3.bf16.msra.mxu1 %v12833_v10 }
 0x6e2   :  { %10985 = vmatprep.subr.bf16.mxu1 %v14240_v40 }
 0x6e4   :  { %9198 = vmatmul.mubr.f32.vlgmr.msra.gmra.mrb[4].mxu1 %v3745_v27 }
 0x6e5   :  { %10987 = vmatpush3.bf16.msra.mxu1 %v14322_v44  ;;  %9232 = vmatprep.mubr.msk.f32.mxu1 %vm11923_vm0, %v14259_v52 }
 0x6e6   :  { %10988 = vmatprep.subr.bf16.mxu1 %v14240_v40 }
 0x6e9   :  { %10990 = vmatpush3.bf16.msra.mxu1 %v14326_v6 }
 0x6ea   :  { %10991 = vmatprep.subr.bf16.mxu1 %v14240_v40 }
 0x6ed   :  { %10993 = vmatpush3.bf16.msra.mxu1 %v14330_v31 }
 0x6ee   :  { %10994 = vmatprep.subr.bf16.mxu1 %v14240_v40 }
 0x6f1   :  { %10996 = vmatpush3.bf16.msra.mxu1 %v14333_v32 }
 0x6f2   :  { %10997 = vmatprep.subr.bf16.mxu1 %v14240_v40 }
 0x6f5   :  { %10999 = vmatpush3.bf16.msra.mxu1 %v14336_v60 }
 0x6f6   :  { %11000 = vmatprep.subr.bf16.mxu1 %v14240_v40 }
 0x6f9   :  { %11002 = vmatpush3.bf16.msra.mxu1 %v14338_v48 }
 0x6fa   :  { %11003 = vmatprep.subr.bf16.mxu1 %v14240_v40 }
 0x6fd   :  { %11005 = vmatpush3.bf16.msra.mxu1 %v14340_v45 }
 0x6fe   :  { %11006 = vmatprep.subr.bf16.mxu1 %v14240_v40 }
 0x701   :  { %11008 = vmatpush3.bf16.msra.mxu1 %v14342_v22 }
 0x702   :  { %11009 = vmatprep.subr.bf16.mxu1 %v14240_v40 }
 0x704   :  { %9233 = vmatmul.mubr.f32.vlgmr.msra.gmra.mrb[4].mxu1 %v3746_v11 }
 0x705   :  { %11011 = vmatpush3.bf16.msra.mxu1 %v12690_v1  ;;  %9267 = vmatprep.mubr.msk.f32.mxu1 %vm11923_vm0, %v14259_v52 }
 0x706   :  { %11012 = vmatprep.subr.bf16.mxu1 %v14240_v40 }
 0x709   :  { %11014 = vmatpush3.bf16.msra.mxu1 %v12702_v38 }
 0x70a   :  { %11015 = vmatprep.subr.bf16.mxu1 %v14240_v40 }
 0x70d   :  { %11017 = vmatpush3.bf16.msra.mxu1 %v12715_v57 }
 0x70e   :  { %11018 = vmatprep.subr.bf16.mxu1 %v14240_v40 }
 0x711   :  { %11020 = vmatpush3.bf16.msra.mxu1 %v12727_v56 }
 0x712   :  { %11021 = vmatprep.subr.bf16.mxu1 %v14240_v40 }
 0x715   :  { %11023 = vmatpush3.bf16.msra.mxu1 %v12740_v12 }
 0x716   :  { %11024 = vmatprep.subr.bf16.mxu1 %v14240_v40 }
 0x719   :  { %11026 = vmatpush3.bf16.msra.mxu1 %v12753_v62 }
 0x71a   :  { %11027 = vmatprep.subr.bf16.mxu1 %v14240_v40 }
 0x71d   :  { %11029 = vmatpush3.bf16.msra.mxu1 %v12765_v34 }
 0x71e   :  { %11030 = vmatprep.subr.bf16.mxu1 %v14240_v40 }
 0x721   :  { %11032 = vmatpush3.bf16.msra.mxu1 %v12769_v54 }
 0x722   :  { %11033 = vmatprep.subr.bf16.mxu1 %v14240_v40 }
 0x724   :  { %9268 = vmatmul.mubr.f32.vlgmr.msra.gmra.mrb[4].mxu1 %v13382_v30 }
 0x725   :  { %11035 = vmatpush3.bf16.msra.mxu1 %v14322_v44  ;;  %9302 = vmatprep.mubr.msk.f32.mxu1 %vm11923_vm0, %v14259_v52 }
 0x726   :  { %11036 = vmatprep.subr.bf16.mxu1 %v14240_v40 }
 0x729   :  { %11038 = vmatpush3.bf16.msra.mxu1 %v14326_v6 }
 0x72a   :  { %11039 = vmatprep.subr.bf16.mxu1 %v14240_v40 }
 0x72d   :  { %11041 = vmatpush3.bf16.msra.mxu1 %v14330_v31 }
 0x72e   :  { %11042 = vmatprep.subr.bf16.mxu1 %v14240_v40 }
 0x731   :  { %11044 = vmatpush3.bf16.msra.mxu1 %v14333_v32 }
 0x732   :  { %11045 = vmatprep.subr.bf16.mxu1 %v14240_v40 }
 0x735   :  { %11047 = vmatpush3.bf16.msra.mxu1 %v14336_v60 }
 0x736   :  { %11048 = vmatprep.subr.bf16.mxu1 %v14240_v40 }
 0x739   :  { %11050 = vmatpush3.bf16.msra.mxu1 %v14338_v48 }
 0x73a   :  { %11051 = vmatprep.subr.bf16.mxu1 %v14240_v40 }
 0x73d   :  { %11053 = vmatpush3.bf16.msra.mxu1 %v14340_v45 }
 0x73e   :  { %11054 = vmatprep.subr.bf16.mxu1 %v14240_v40 }
 0x741   :  { %11056 = vmatpush3.bf16.msra.mxu1 %v14342_v22 }
 0x742   :  { %11201 = vmatprep.subr.bf16.mxu1 %v14240_v40 }
 0x744   :  { %9303 = vmatmul.mubr.f32.vlgmr.msra.gmra.mrb[4].mxu1 %v13382_v30 }
 0x745   :  { %11203 = vmatpush3.bf16.msra.mxu1 %v14322_v44  ;;  %9547 = vmatprep.mubr.msk.f32.mxu1 %vm11923_vm0, %v14259_v52 }
 0x746   :  { %11204 = vmatprep.subr.bf16.mxu1 %v14240_v40 }
 0x749   :  { %11206 = vmatpush3.bf16.msra.mxu1 %v14326_v6 }
 0x74a   :  { %11207 = vmatprep.subr.bf16.mxu1 %v14240_v40 }
 0x74d   :  { %11209 = vmatpush3.bf16.msra.mxu1 %v14330_v31 }
 0x74e   :  { %11210 = vmatprep.subr.bf16.mxu1 %v14240_v40 }
 0x751   :  { %11212 = vmatpush3.bf16.msra.mxu1 %v14333_v32 }
 0x752   :  { %11213 = vmatprep.subr.bf16.mxu1 %v14240_v40 }
 0x755   :  { %11215 = vmatpush3.bf16.msra.mxu1 %v14336_v60 }
 0x756   :  { %11216 = vmatprep.subr.bf16.mxu1 %v14240_v40 }
 0x759   :  { %11218 = vmatpush3.bf16.msra.mxu1 %v14338_v48 }
 0x75a   :  { %11219 = vmatprep.subr.bf16.mxu1 %v14240_v40 }
 0x75d   :  { %11221 = vmatpush3.bf16.msra.mxu1 %v14340_v45 }
 0x75e   :  { %11222 = vmatprep.subr.bf16.mxu1 %v14240_v40 }
 0x761   :  { %11224 = vmatpush3.bf16.msra.mxu1 %v14342_v22 }
 0x762   :  { %11225 = vmatprep.subr.bf16.mxu1 %v14240_v40 }
 0x817   :  { %v4300_v26 = vpop.f32.mrb[4].mxu1 }
 0x818   :  { %v4304_v35 = vadd.f32 %v13031_v59, %v4300_v26  ;;  %v9304_v28 = vpop.f32.mrb[5].mxu1 }
 0x81a   :  { %11790 = vtanh.f32 %v4304_v35 }
 0x824   :  { %v11791_v53 = vpop.eup %11790 }
 0x825   :  { %v13497_v3 = vand.u32 4294901760, %v11791_v53 }
 0x827   :  { %v4390_v25 = vsub.f32 %v11791_v53, %v13497_v3 }
 0x829   :  { %v4391_v39 = vand.u32 4294901760, %v4390_v25 }
 0x82b   :  { %v4392_v36 = vsub.f32 %v4390_v25, %v4391_v39 }
 0x82d   :  { %v4393_v14 = vand.u32 4294901760, %v4392_v36 }
 0x82f   :  { %9338 = vmatmul.mubr.f32.vlgmr.msra.gmra.mrb[12].mxu0 %v4393_v14 }
 0x830   :  { %11083 = vmatpush3.bf16.msra.mxu0 %v14350_v49  ;;  %9372 = vmatprep.mubr.msk.f32.mxu0 %vm11923_vm0, %v14259_v52 }
 0x831   :  { %11084 = vmatprep.subr.bf16.mxu0 %v14240_v40 }
 0x834   :  { %11086 = vmatpush3.bf16.msra.mxu0 %v14351_v2 }
 0x835   :  { %11087 = vmatprep.subr.bf16.mxu0 %v14240_v40 }
 0x838   :  { %11089 = vmatpush3.bf16.msra.mxu0 %v14352_v41 }
 0x839   :  { %11090 = vmatprep.subr.bf16.mxu0 %v14240_v40 }
 0x83c   :  { %11092 = vmatpush3.bf16.msra.mxu0 %v14353_v9 }
 0x83d   :  { %11093 = vmatprep.subr.bf16.mxu0 %v14240_v40 }
 0x840   :  { %11095 = vmatpush3.bf16.msra.mxu0 %v14354_v51 }
 0x841   :  { %11096 = vmatprep.subr.bf16.mxu0 %v14240_v40 }
 0x844   :  { %11098 = vmatpush3.bf16.msra.mxu0 %v12598_v17 }
 0x845   :  { %11099 = vmatprep.subr.bf16.mxu0 %v14240_v40 }
 0x848   :  { %11101 = vmatpush3.bf16.msra.mxu0 %v14355_v29 }
 0x849   :  { %11102 = vmatprep.subr.bf16.mxu0 %v14240_v40 }
 0x84c   :  { %11104 = vmatpush3.bf16.msra.mxu0 %v14356_v7 }
 0x84d   :  { %11105 = vmatprep.subr.bf16.mxu0 %v14240_v40 }
 0x84f   :  { %9373 = vmatmul.mubr.f32.vlgmr.msra.gmra.mrb[12].mxu0 %v13497_v3 }
 0x850   :  { %11107 = vmatpush3.bf16.msra.mxu0 %v12676_v23  ;;  %9407 = vmatprep.mubr.msk.f32.mxu0 %vm11923_vm0, %v14259_v52 }
 0x851   :  { %11108 = vmatprep.subr.bf16.mxu0 %v14240_v40 }
 0x854   :  { %11110 = vmatpush3.bf16.msra.mxu0 %v12776_v47 }
 0x855   :  { %11111 = vmatprep.subr.bf16.mxu0 %v14240_v40 }
 0x858   :  { %11113 = vmatpush3.bf16.msra.mxu0 %v12788_v21 }
 0x859   :  { %11114 = vmatprep.subr.bf16.mxu0 %v14240_v40 }
 0x85c   :  { %11116 = vmatpush3.bf16.msra.mxu0 %v12798_v5 }
 0x85d   :  { %11117 = vmatprep.subr.bf16.mxu0 %v14240_v40 }
 0x860   :  { %11119 = vmatpush3.bf16.msra.mxu0 %v12808_v37 }
 0x861   :  { %11120 = vmatprep.subr.bf16.mxu0 %v14240_v40 }
 0x864   :  { %11122 = vmatpush3.bf16.msra.mxu0 %v12817_v20 }
 0x865   :  { %11123 = vmatprep.subr.bf16.mxu0 %v14240_v40 }
 0x868   :  { %11125 = vmatpush3.bf16.msra.mxu0 %v12825_v24 }
 0x869   :  { %11126 = vmatprep.subr.bf16.mxu0 %v14240_v40 }
 0x86c   :  { %11128 = vmatpush3.bf16.msra.mxu0 %v12833_v10 }
 0x86d   :  { %11129 = vmatprep.subr.bf16.mxu0 %v14240_v40 }
 0x86f   :  { %9408 = vmatmul.mubr.f32.vlgmr.msra.gmra.mrb[12].mxu0 %v4390_v25  ;;  %v6259_v25 = vld [vmem:[#allocation10 + $0x70] sm:$0xff] }
 0x870   :  { %11131 = vmatpush3.bf16.msra.mxu0 %v14322_v44  ;;  %9442 = vmatprep.mubr.msk.f32.mxu0 %vm11923_vm0, %v14259_v52 }
 0x871   :  { %11132 = vmatprep.subr.bf16.mxu0 %v14240_v40 }
 0x874   :  { %11134 = vmatpush3.bf16.msra.mxu0 %v14326_v6 }
 0x875   :  { %11135 = vmatprep.subr.bf16.mxu0 %v14240_v40 }
 0x878   :  { %11137 = vmatpush3.bf16.msra.mxu0 %v14330_v31 }
 0x879   :  { %11138 = vmatprep.subr.bf16.mxu0 %v14240_v40 }
 0x87c   :  { %11140 = vmatpush3.bf16.msra.mxu0 %v14333_v32 }
 0x87d   :  { %11141 = vmatprep.subr.bf16.mxu0 %v14240_v40 }
 0x880   :  { %11143 = vmatpush3.bf16.msra.mxu0 %v14336_v60 }
 0x881   :  { %11144 = vmatprep.subr.bf16.mxu0 %v14240_v40 }
 0x884   :  { %11146 = vmatpush3.bf16.msra.mxu0 %v14338_v48 }
 0x885   :  { %11147 = vmatprep.subr.bf16.mxu0 %v14240_v40 }
 0x888   :  { %11149 = vmatpush3.bf16.msra.mxu0 %v14340_v45 }
 0x889   :  { %11150 = vmatprep.subr.bf16.mxu0 %v14240_v40 }
 0x88c   :  { %11152 = vmatpush3.bf16.msra.mxu0 %v14342_v22 }
 0x88d   :  { %11153 = vmatprep.subr.bf16.mxu0 %v14240_v40 }
 0x88f   :  { %9443 = vmatmul.mubr.f32.vlgmr.msra.gmra.mrb[12].mxu0 %v4391_v39  ;;  %v6260_v39 = vld [vmem:[#allocation10 + $0x78] sm:$0xff] }
 0x890   :  { %11155 = vmatpush3.bf16.msra.mxu0 %v12690_v1  ;;  %9477 = vmatprep.mubr.msk.f32.mxu0 %vm11923_vm0, %v14259_v52 }
 0x891   :  { %11156 = vmatprep.subr.bf16.mxu0 %v14240_v40 }
 0x894   :  { %11158 = vmatpush3.bf16.msra.mxu0 %v12702_v38 }
 0x895   :  { %11159 = vmatprep.subr.bf16.mxu0 %v14240_v40 }
 0x898   :  { %11161 = vmatpush3.bf16.msra.mxu0 %v12715_v57 }
 0x899   :  { %11162 = vmatprep.subr.bf16.mxu0 %v14240_v40 }
 0x89c   :  { %11164 = vmatpush3.bf16.msra.mxu0 %v12727_v56 }
 0x89d   :  { %11165 = vmatprep.subr.bf16.mxu0 %v14240_v40 }
 0x8a0   :  { %11167 = vmatpush3.bf16.msra.mxu0 %v12740_v12 }
 0x8a1   :  { %11168 = vmatprep.subr.bf16.mxu0 %v14240_v40 }
 0x8a4   :  { %11170 = vmatpush3.bf16.msra.mxu0 %v12753_v62 }
 0x8a5   :  { %11171 = vmatprep.subr.bf16.mxu0 %v14240_v40 }
 0x8a8   :  { %11173 = vmatpush3.bf16.msra.mxu0 %v12765_v34 }
 0x8a9   :  { %11174 = vmatprep.subr.bf16.mxu0 %v14240_v40 }
 0x8ac   :  { %11176 = vmatpush3.bf16.msra.mxu0 %v12769_v54 }
 0x8ad   :  { %11177 = vmatprep.subr.bf16.mxu0 %v14240_v40 }
 0x8af   :  { %9478 = vmatmul.mubr.f32.vlgmr.msra.gmra.mrb[12].mxu0 %v13497_v3 }
 0x8b0   :  { %11179 = vmatpush3.bf16.msra.mxu0 %v14322_v44  ;;  %9512 = vmatprep.mubr.msk.f32.mxu0 %vm11923_vm0, %v14259_v52 }
 0x8b1   :  { %11180 = vmatprep.subr.bf16.mxu0 %v14240_v40 }
 0x8b4   :  { %11182 = vmatpush3.bf16.msra.mxu0 %v14326_v6 }
 0x8b5   :  { %11183 = vmatprep.subr.bf16.mxu0 %v14240_v40 }
 0x8b8   :  { %11185 = vmatpush3.bf16.msra.mxu0 %v14330_v31 }
 0x8b9   :  { %11186 = vmatprep.subr.bf16.mxu0 %v14240_v40 }
 0x8bc   :  { %11188 = vmatpush3.bf16.msra.mxu0 %v14333_v32 }
 0x8bd   :  { %11189 = vmatprep.subr.bf16.mxu0 %v14240_v40 }
 0x8c0   :  { %11191 = vmatpush3.bf16.msra.mxu0 %v14336_v60 }
 0x8c1   :  { %11192 = vmatprep.subr.bf16.mxu0 %v14240_v40 }
 0x8c4   :  { %11194 = vmatpush3.bf16.msra.mxu0 %v14338_v48 }
 0x8c5   :  { %11195 = vmatprep.subr.bf16.mxu0 %v14240_v40 }
 0x8c8   :  { %11197 = vmatpush3.bf16.msra.mxu0 %v14340_v45 }
 0x8c9   :  { %11198 = vmatprep.subr.bf16.mxu0 %v14240_v40 }
 0x8cc   :  { %11200 = vmatpush3.bf16.msra.mxu0 %v14342_v22 }
 0x8cd   :  { %11345 = vmatprep.subr.bf16.mxu0 %v14240_v40 }
 0x8cf   :  { %9513 = vmatmul.mubr.f32.vlgmr.msra.gmra.mrb[12].mxu0 %v13497_v3 }
 0x8d0   :  { %11347 = vmatpush3.bf16.msra.mxu0 %v14322_v44  ;;  %9757 = vmatprep.mubr.msk.f32.mxu0 %vm11923_vm0, %v14259_v52 }
 0x8d1   :  { %11348 = vmatprep.subr.bf16.mxu0 %v14240_v40 }
 0x8d4   :  { %11350 = vmatpush3.bf16.msra.mxu0 %v14326_v6 }
 0x8d5   :  { %11351 = vmatprep.subr.bf16.mxu0 %v14240_v40 }
 0x8d8   :  { %11353 = vmatpush3.bf16.msra.mxu0 %v14330_v31 }
 0x8d9   :  { %11354 = vmatprep.subr.bf16.mxu0 %v14240_v40 }
 0x8dc   :  { %11356 = vmatpush3.bf16.msra.mxu0 %v14333_v32 }
 0x8dd   :  { %11357 = vmatprep.subr.bf16.mxu0 %v14240_v40 }
 0x8e0   :  { %11359 = vmatpush3.bf16.msra.mxu0 %v14336_v60 }
 0x8e1   :  { %11360 = vmatprep.subr.bf16.mxu0 %v14240_v40 }
 0x8e4   :  { %11362 = vmatpush3.bf16.msra.mxu0 %v14338_v48 }
 0x8e5   :  { %11363 = vmatprep.subr.bf16.mxu0 %v14240_v40 }
 0x8e8   :  { %11365 = vmatpush3.bf16.msra.mxu0 %v14340_v45 }
 0x8e9   :  { %11366 = vmatprep.subr.bf16.mxu0 %v14240_v40 }
 0x8ec   :  { %11368 = vmatpush3.bf16.msra.mxu0 %v14342_v22 }
 0x8ed   :  { %11369 = vmatprep.subr.bf16.mxu0 %v14240_v40 }
 0x9a2   :  { %v4945_v59 = vpop.f32.mrb[12].mxu0 }
 0x9a3   :  { %v4949_v13 = vadd.f32 %v13029_v4, %v4945_v59  ;;  %v9514_v8 = vpop.f32.mrb[13].mxu0 }
 0x9a5   :  { %11792 = vtanh.f32 %v4949_v13 }
 0x9af   :  { %v11793_v18 = vpop.eup %11792 }
 0x9b0   :  { %v13612_v50 = vand.u32 4294901760, %v11793_v18 }
 0x9b2   :  { %v5035_v43 = vsub.f32 %v11793_v18, %v13612_v50 }
 0x9b4   :  { %v5036_v58 = vand.u32 4294901760, %v5035_v43 }
 0x9b6   :  { %v5037_v19 = vsub.f32 %v5035_v43, %v5036_v58 }
 0x9b8   :  { %v5038_v46 = vand.u32 4294901760, %v5037_v19 }
 0x9ba   :  { %9548 = vmatmul.mubr.f32.vlgmr.msra.gmra.mrb[6].mxu1 %v5038_v46  ;;  %v6311_v46 = vand.u32 4294901760, %v6259_v25 }
 0x9bb   :  { %11227 = vmatpush3.bf16.msra.mxu1 %v14350_v49  ;;  %9582 = vmatprep.mubr.msk.f32.mxu1 %vm11923_vm0, %v14259_v52 }
 0x9bc   :  { %11228 = vmatprep.subr.bf16.mxu1 %v14240_v40 }
 0x9bf   :  { %11230 = vmatpush3.bf16.msra.mxu1 %v14351_v2 }
 0x9c0   :  { %11231 = vmatprep.subr.bf16.mxu1 %v14240_v40 }
 0x9c3   :  { %11233 = vmatpush3.bf16.msra.mxu1 %v14352_v41 }
 0x9c4   :  { %11234 = vmatprep.subr.bf16.mxu1 %v14240_v40 }
 0x9c7   :  { %11236 = vmatpush3.bf16.msra.mxu1 %v14353_v9 }
 0x9c8   :  { %11237 = vmatprep.subr.bf16.mxu1 %v14240_v40 }
 0x9cb   :  { %11239 = vmatpush3.bf16.msra.mxu1 %v14354_v51 }
 0x9cc   :  { %11240 = vmatprep.subr.bf16.mxu1 %v14240_v40 }
 0x9cf   :  { %11242 = vmatpush3.bf16.msra.mxu1 %v12598_v17 }
 0x9d0   :  { %11243 = vmatprep.subr.bf16.mxu1 %v14240_v40 }
 0x9d3   :  { %11245 = vmatpush3.bf16.msra.mxu1 %v14355_v29 }
 0x9d4   :  { %11246 = vmatprep.subr.bf16.mxu1 %v14240_v40 }
 0x9d7   :  { %11248 = vmatpush3.bf16.msra.mxu1 %v14356_v7 }
 0x9d8   :  { %11249 = vmatprep.subr.bf16.mxu1 %v14240_v40 }
 0x9da   :  { %9583 = vmatmul.mubr.f32.vlgmr.msra.gmra.mrb[6].mxu1 %v13612_v50 }
 0x9db   :  { %11251 = vmatpush3.bf16.msra.mxu1 %v12676_v23  ;;  %9617 = vmatprep.mubr.msk.f32.mxu1 %vm11923_vm0, %v14259_v52 }
 0x9dc   :  { %11252 = vmatprep.subr.bf16.mxu1 %v14240_v40 }
 0x9df   :  { %11254 = vmatpush3.bf16.msra.mxu1 %v12776_v47 }
 0x9e0   :  { %11255 = vmatprep.subr.bf16.mxu1 %v14240_v40 }
 0x9e3   :  { %11257 = vmatpush3.bf16.msra.mxu1 %v12788_v21 }
 0x9e4   :  { %11258 = vmatprep.subr.bf16.mxu1 %v14240_v40 }
 0x9e7   :  { %11260 = vmatpush3.bf16.msra.mxu1 %v12798_v5 }
 0x9e8   :  { %11261 = vmatprep.subr.bf16.mxu1 %v14240_v40 }
 0x9eb   :  { %11263 = vmatpush3.bf16.msra.mxu1 %v12808_v37 }
 0x9ec   :  { %11264 = vmatprep.subr.bf16.mxu1 %v14240_v40 }
 0x9ef   :  { %11266 = vmatpush3.bf16.msra.mxu1 %v12817_v20 }
 0x9f0   :  { %11267 = vmatprep.subr.bf16.mxu1 %v14240_v40 }
 0x9f3   :  { %11269 = vmatpush3.bf16.msra.mxu1 %v12825_v24 }
 0x9f4   :  { %11270 = vmatprep.subr.bf16.mxu1 %v14240_v40 }
 0x9f7   :  { %11272 = vmatpush3.bf16.msra.mxu1 %v12833_v10 }
 0x9f8   :  { %11273 = vmatprep.subr.bf16.mxu1 %v14240_v40 }
 0x9fa   :  { %9618 = vmatmul.mubr.f32.vlgmr.msra.gmra.mrb[6].mxu1 %v5035_v43 }
 0x9fb   :  { %11275 = vmatpush3.bf16.msra.mxu1 %v14322_v44  ;;  %9652 = vmatprep.mubr.msk.f32.mxu1 %vm11923_vm0, %v14259_v52 }
 0x9fc   :  { %11276 = vmatprep.subr.bf16.mxu1 %v14240_v40 }
 0x9ff   :  { %11278 = vmatpush3.bf16.msra.mxu1 %v14326_v6 }
 0xa00   :  { %11279 = vmatprep.subr.bf16.mxu1 %v14240_v40 }
 0xa03   :  { %11281 = vmatpush3.bf16.msra.mxu1 %v14330_v31 }
 0xa04   :  { %11282 = vmatprep.subr.bf16.mxu1 %v14240_v40 }
 0xa07   :  { %11284 = vmatpush3.bf16.msra.mxu1 %v14333_v32 }
 0xa08   :  { %11285 = vmatprep.subr.bf16.mxu1 %v14240_v40 }
 0xa0b   :  { %11287 = vmatpush3.bf16.msra.mxu1 %v14336_v60 }
 0xa0c   :  { %11288 = vmatprep.subr.bf16.mxu1 %v14240_v40 }
 0xa0f   :  { %11290 = vmatpush3.bf16.msra.mxu1 %v14338_v48 }
 0xa10   :  { %11291 = vmatprep.subr.bf16.mxu1 %v14240_v40 }
 0xa13   :  { %11293 = vmatpush3.bf16.msra.mxu1 %v14340_v45 }
 0xa14   :  { %11294 = vmatprep.subr.bf16.mxu1 %v14240_v40 }
 0xa17   :  { %11296 = vmatpush3.bf16.msra.mxu1 %v14342_v22 }
 0xa18   :  { %11297 = vmatprep.subr.bf16.mxu1 %v14240_v40 }
 0xa1a   :  { %9653 = vmatmul.mubr.f32.vlgmr.msra.gmra.mrb[6].mxu1 %v5036_v58 }
 0xa1b   :  { %11299 = vmatpush3.bf16.msra.mxu1 %v12690_v1  ;;  %9687 = vmatprep.mubr.msk.f32.mxu1 %vm11923_vm0, %v14259_v52 }
 0xa1c   :  { %11300 = vmatprep.subr.bf16.mxu1 %v14240_v40 }
 0xa1f   :  { %11302 = vmatpush3.bf16.msra.mxu1 %v12702_v38 }
 0xa20   :  { %11303 = vmatprep.subr.bf16.mxu1 %v14240_v40 }
 0xa23   :  { %11305 = vmatpush3.bf16.msra.mxu1 %v12715_v57 }
 0xa24   :  { %11306 = vmatprep.subr.bf16.mxu1 %v14240_v40 }
 0xa27   :  { %11308 = vmatpush3.bf16.msra.mxu1 %v12727_v56 }
 0xa28   :  { %11309 = vmatprep.subr.bf16.mxu1 %v14240_v40 }
 0xa2b   :  { %11311 = vmatpush3.bf16.msra.mxu1 %v12740_v12 }
 0xa2c   :  { %11312 = vmatprep.subr.bf16.mxu1 %v14240_v40 }
 0xa2f   :  { %11314 = vmatpush3.bf16.msra.mxu1 %v12753_v62 }
 0xa30   :  { %11315 = vmatprep.subr.bf16.mxu1 %v14240_v40 }
 0xa33   :  { %11317 = vmatpush3.bf16.msra.mxu1 %v12765_v34 }
 0xa34   :  { %11318 = vmatprep.subr.bf16.mxu1 %v14240_v40 }
 0xa37   :  { %11320 = vmatpush3.bf16.msra.mxu1 %v12769_v54 }
 0xa38   :  { %11321 = vmatprep.subr.bf16.mxu1 %v14240_v40 }
 0xa3a   :  { %9688 = vmatmul.mubr.f32.vlgmr.msra.gmra.mrb[6].mxu1 %v13612_v50 }
 0xa3b   :  { %11323 = vmatpush3.bf16.msra.mxu1 %v14322_v44  ;;  %9722 = vmatprep.mubr.msk.f32.mxu1 %vm11923_vm0, %v14259_v52 }
 0xa3c   :  { %11324 = vmatprep.subr.bf16.mxu1 %v14240_v40 }
 0xa3f   :  { %11326 = vmatpush3.bf16.msra.mxu1 %v14326_v6 }
 0xa40   :  { %11327 = vmatprep.subr.bf16.mxu1 %v14240_v40 }
 0xa43   :  { %11329 = vmatpush3.bf16.msra.mxu1 %v14330_v31 }
 0xa44   :  { %11330 = vmatprep.subr.bf16.mxu1 %v14240_v40 }
 0xa47   :  { %11332 = vmatpush3.bf16.msra.mxu1 %v14333_v32 }
 0xa48   :  { %11333 = vmatprep.subr.bf16.mxu1 %v14240_v40 }
 0xa4b   :  { %11335 = vmatpush3.bf16.msra.mxu1 %v14336_v60 }
 0xa4c   :  { %11336 = vmatprep.subr.bf16.mxu1 %v14240_v40 }
 0xa4f   :  { %11338 = vmatpush3.bf16.msra.mxu1 %v14338_v48 }
 0xa50   :  { %11339 = vmatprep.subr.bf16.mxu1 %v14240_v40 }
 0xa53   :  { %11341 = vmatpush3.bf16.msra.mxu1 %v14340_v45 }
 0xa54   :  { %11342 = vmatprep.subr.bf16.mxu1 %v14240_v40 }
 0xa57   :  { %11344 = vmatpush3.bf16.msra.mxu1 %v14342_v22 }
 0xa58   :  { %11489 = vmatprep.subr.bf16.mxu1 %v14240_v40 }
 0xa5a   :  { %9723 = vmatmul.mubr.f32.vlgmr.msra.gmra.mrb[6].mxu1 %v13612_v50 }
 0xa5b   :  { %9967 = vmatprep.mubr.msk.f32.mxu1 %vm11923_vm0, %v14259_v52 }
 0xb2d   :  { %v5590_v4 = vpop.f32.mrb[6].mxu1 }
 0xb2e   :  { %v5594_v33 = vadd.f32 %v13035_v16, %v5590_v4  ;;  %v9724_v55 = vpop.f32.mrb[7].mxu1  ;;  %v6245_v16 = vld [vmem:[#allocation10] sm:$0xff]  ;;  %v6314_v4 = vand.u32 4294901760, %v6260_v39 }
 0xb30   :  { %11794 = vtanh.f32 %v5594_v33 }
 0xb3a   :  { %v11795_v63 = vpop.eup %11794 }
 0xb3b   :  { %v13711_v42 = vand.u32 4294901760, %v11795_v63 }
 0xb3d   :  { %v13714_v30 = vsub.f32 %v11795_v63, %v13711_v42  ;;  %v13873_v63 = vpack.c.bf16 %v6314_v4, %v6311_v46 }
 0xb3f   :  { %v5681_v27 = vand.u32 4294901760, %v13714_v30 }
 0xb41   :  { %v5682_v11 = vsub.f32 %v13714_v30, %v5681_v27 }
 0xb43   :  { %v5683_v61 = vand.u32 4294901760, %v5682_v11 }
 0xb45   :  { %9758 = vmatmul.mubr.f32.vlgmr.msra.gmra.mrb[14].mxu0 %v5683_v61 }
 0xb46   :  { %11371 = vmatpush3.bf16.msra.mxu0 %v14350_v49  ;;  %9792 = vmatprep.mubr.msk.f32.mxu0 %vm11923_vm0, %v14259_v52  ;;  %v6246_v49 = vld [vmem:[#allocation10 + $0x8] sm:$0xff] }
 0xb47   :  { %11372 = vmatprep.subr.bf16.mxu0 %v14240_v40 }
 0xb4a   :  { %11374 = vmatpush3.bf16.msra.mxu0 %v14351_v2  ;;  %v6247_v2 = vld [vmem:[#allocation10 + $0x10] sm:$0xff] }
 0xb4b   :  { %11375 = vmatprep.subr.bf16.mxu0 %v14240_v40 }
 0xb4e   :  { %11377 = vmatpush3.bf16.msra.mxu0 %v14352_v41  ;;  %v6272_v41 = vand.u32 4294901760, %v6246_v49 }
 0xb4f   :  { %11378 = vmatprep.subr.bf16.mxu0 %v14240_v40 }
 0xb50   :  { %v13747_v26 = vsub.f32 %v6246_v49, %v6272_v41 }
 0xb52   :  { %11380 = vmatpush3.bf16.msra.mxu0 %v14353_v9  ;;  %v6248_v9 = vld [vmem:[#allocation10 + $0x18] sm:$0xff]  ;;  %v6369_v55 = vand.u32 4294901760, %v13747_v26 }
 0xb53   :  { %11381 = vmatprep.subr.bf16.mxu0 %v14240_v40 }
 0xb54   :  { %v6370_v11 = vsub.f32 %v13747_v26, %v6369_v55 }
 0xb56   :  { %11383 = vmatpush3.bf16.msra.mxu0 %v14354_v51  ;;  %v6275_v51 = vand.u32 4294901760, %v6247_v2 }
 0xb57   :  { %11384 = vmatprep.subr.bf16.mxu0 %v14240_v40 }
 0xb58   :  { %v13749_v35 = vsub.f32 %v6247_v2, %v6275_v51  ;;  %v6371_v2 = vand.u32 4294901760, %v6370_v11 }
 0xb5a   :  { %11386 = vmatpush3.bf16.msra.mxu0 %v12598_v17  ;;  %v6269_v17 = vand.u32 4294901760, %v6245_v16  ;;  %v6376_v61 = vand.u32 4294901760, %v13749_v35 }
 0xb5b   :  { %11387 = vmatprep.subr.bf16.mxu0 %v14240_v40 }
 0xb5c   :  { %v13745_v15 = vsub.f32 %v6245_v16, %v6269_v17 }
 0xb5e   :  { %11389 = vmatpush3.bf16.msra.mxu0 %v14355_v29  ;;  %v6278_v29 = vand.u32 4294901760, %v6248_v9  ;;  %v6362_v33 = vand.u32 4294901760, %v13745_v15 }
 0xb5f   :  { %11390 = vmatprep.subr.bf16.mxu0 %v14240_v40 }
 0xb60   :  { %v13751_v28 = vsub.f32 %v6248_v9, %v6278_v29 }
 0xb62   :  { %11392 = vmatpush3.bf16.msra.mxu0 %v14356_v7  ;;  %v13743_v7 = vpack.c.bf16 %v6272_v41, %v6269_v17  ;;  %v6383_v16 = vand.u32 4294901760, %v13751_v28  ;;  %v6377_v17 = vsub.f32 %v13749_v35, %v6376_v61 }
 0xb63   :  { %11393 = vmatprep.subr.bf16.mxu0 %v14240_v40 }
 0xb64   :  { %11491 = vmatpush3.bf16.msra.mxu1 %v13743_v7  ;;  %v6384_v41 = vsub.f32 %v13751_v28, %v6383_v16 }
 0xb65   :  { %9793 = vmatmul.mubr.f32.vlgmr.msra.gmra.mrb[14].mxu0 %v13711_v42  ;;  %11492 = vmatprep.subr.bf16.mxu1 %v14240_v40 }
 0xb66   :  { %11395 = vmatpush3.bf16.msra.mxu0 %v12676_v23  ;;  %9827 = vmatprep.mubr.msk.f32.mxu0 %vm11923_vm0, %v14259_v52  ;;  %v13755_v23 = vpack.c.bf16 %v6278_v29, %v6275_v51  ;;  %v6378_v51 = vand.u32 4294901760, %v6377_v17  ;;  %v6385_v29 = vand.u32 4294901760, %v6384_v41 }
 0xb67   :  { %11396 = vmatprep.subr.bf16.mxu0 %v14240_v40 }
 0xb68   :  { %11494 = vmatpush3.bf16.msra.mxu1 %v13755_v23 }
 0xb69   :  { %11495 = vmatprep.subr.bf16.mxu1 %v14240_v40 }
 0xb6a   :  { %11398 = vmatpush3.bf16.msra.mxu0 %v12776_v47 }
 0xb6b   :  { %11399 = vmatprep.subr.bf16.mxu0 %v14240_v40 }
 0xb6e   :  { %11401 = vmatpush3.bf16.msra.mxu0 %v12788_v21 }
 0xb6f   :  { %11402 = vmatprep.subr.bf16.mxu0 %v14240_v40 }
 0xb72   :  { %11404 = vmatpush3.bf16.msra.mxu0 %v12798_v5  ;;  %v6253_v5 = vld [vmem:[#allocation10 + $0x40] sm:$0xff] }
 0xb73   :  { %11405 = vmatprep.subr.bf16.mxu0 %v14240_v40 }
 0xb76   :  { %11407 = vmatpush3.bf16.msra.mxu0 %v12808_v37  ;;  %v6254_v37 = vld [vmem:[#allocation10 + $0x48] sm:$0xff] }
 0xb77   :  { %11408 = vmatprep.subr.bf16.mxu0 %v14240_v40 }
 0xb7a   :  { %11410 = vmatpush3.bf16.msra.mxu0 %v12817_v20  ;;  %v6293_v20 = vand.u32 4294901760, %v6253_v5 }
 0xb7b   :  { %11411 = vmatprep.subr.bf16.mxu0 %v14240_v40 }
 0xb7c   :  { %v13858_v8 = vsub.f32 %v6253_v5, %v6293_v20 }
 0xb7e   :  { %11413 = vmatpush3.bf16.msra.mxu0 %v12825_v24  ;;  %v6296_v24 = vand.u32 4294901760, %v6254_v37 }
 0xb7f   :  { %11414 = vmatprep.subr.bf16.mxu0 %v14240_v40 }
 0xb80   :  { %v13860_v18 = vsub.f32 %v6254_v37, %v6296_v24 }
 0xb82   :  { %11416 = vmatpush3.bf16.msra.mxu0 %v12833_v10  ;;  %v13839_v10 = vpack.c.bf16 %v6296_v24, %v6293_v20 }
 0xb83   :  { %11417 = vmatprep.subr.bf16.mxu0 %v14240_v40 }
 0xb85   :  { %9828 = vmatmul.mubr.f32.vlgmr.msra.gmra.mrb[14].mxu0 %v13714_v30  ;;  %v13877_v30 = vsub.f32 %v6260_v39, %v6314_v4 }
 0xb86   :  { %11419 = vmatpush3.bf16.msra.mxu0 %v14322_v44  ;;  %9862 = vmatprep.mubr.msk.f32.mxu0 %vm11923_vm0, %v14259_v52 }
 0xb87   :  { %11420 = vmatprep.subr.bf16.mxu0 %v14240_v40 }
 0xb8a   :  { %11422 = vmatpush3.bf16.msra.mxu0 %v14326_v6 }
 0xb8b   :  { %11423 = vmatprep.subr.bf16.mxu0 %v14240_v40 }
 0xb8e   :  { %11425 = vmatpush3.bf16.msra.mxu0 %v14330_v31 }
 0xb8f   :  { %11426 = vmatprep.subr.bf16.mxu0 %v14240_v40 }
 0xb92   :  { %11428 = vmatpush3.bf16.msra.mxu0 %v14333_v32 }
 0xb93   :  { %11429 = vmatprep.subr.bf16.mxu0 %v14240_v40 }
 0xb96   :  { %11431 = vmatpush3.bf16.msra.mxu0 %v14336_v60 }
 0xb97   :  { %11432 = vmatprep.subr.bf16.mxu0 %v14240_v40 }
 0xb9a   :  { %11434 = vmatpush3.bf16.msra.mxu0 %v14338_v48 }
 0xb9b   :  { %11435 = vmatprep.subr.bf16.mxu0 %v14240_v40 }
 0xb9e   :  { %11437 = vmatpush3.bf16.msra.mxu0 %v14340_v45 }
 0xb9f   :  { %11438 = vmatprep.subr.bf16.mxu0 %v14240_v40 }
 0xba2   :  { %11440 = vmatpush3.bf16.msra.mxu0 %v14342_v22 }
 0xba3   :  { %11441 = vmatprep.subr.bf16.mxu0 %v14240_v40 }
 0xba5   :  { %9863 = vmatmul.mubr.f32.vlgmr.msra.gmra.mrb[14].mxu0 %v5681_v27  ;;  %v6363_v27 = vsub.f32 %v13745_v15, %v6362_v33 }
 0xba6   :  { %11443 = vmatpush3.bf16.msra.mxu0 %v12690_v1  ;;  %9897 = vmatprep.mubr.msk.f32.mxu0 %vm11923_vm0, %v14259_v52  ;;  %v6250_v1 = vld [vmem:[#allocation10 + $0x28] sm:$0xff] }
 0xba7   :  { %11444 = vmatprep.subr.bf16.mxu0 %v14240_v40  ;;  %v6364_v49 = vand.u32 4294901760, %v6363_v27 }
 0xba9   :  { %v13895_v9 = vpack.c.bf16 %v6371_v2, %v6364_v49 }
 0xbaa   :  { %11446 = vmatpush3.bf16.msra.mxu0 %v12702_v38 }
 0xbab   :  { %11447 = vmatprep.subr.bf16.mxu0 %v14240_v40 }
 0xbae   :  { %11449 = vmatpush3.bf16.msra.mxu0 %v12715_v57  ;;  %v6284_v57 = vand.u32 4294901760, %v6250_v1 }
 0xbaf   :  { %11450 = vmatprep.subr.bf16.mxu0 %v14240_v40 }
 0xbb0   :  { %v13851_v14 = vsub.f32 %v6250_v1, %v6284_v57 }
 0xbb2   :  { %11452 = vmatpush3.bf16.msra.mxu0 %v12727_v56  ;;  %v6397_v1 = vand.u32 4294901760, %v13851_v14 }
 0xbb3   :  { %11453 = vmatprep.subr.bf16.mxu0 %v14240_v40 }
 0xbb6   :  { %11455 = vmatpush3.bf16.msra.mxu0 %v12740_v12  ;;  %v6251_v12 = vld [vmem:[#allocation10 + $0x30] sm:$0xff] }
 0xbb7   :  { %11456 = vmatprep.subr.bf16.mxu0 %v14240_v40 }
 0xbba   :  { %11458 = vmatpush3.bf16.msra.mxu0 %v12753_v62  ;;  %v6252_v62 = vld [vmem:[#allocation10 + $0x38] sm:$0xff] }
 0xbbb   :  { %11459 = vmatprep.subr.bf16.mxu0 %v14240_v40  ;;  %v6290_v47 = vand.u32 4294901760, %v6252_v62 }
 0xbbd   :  { %v13855_v13 = vsub.f32 %v6252_v62, %v6290_v47 }
 0xbbe   :  { %11461 = vmatpush3.bf16.msra.mxu0 %v12765_v34  ;;  %v6287_v34 = vand.u32 4294901760, %v6251_v12 }
 0xbbf   :  { %11462 = vmatprep.subr.bf16.mxu0 %v14240_v40 }
 0xbc0   :  { %v13835_v21 = vpack.c.bf16 %v6290_v47, %v6287_v34  ;;  %v13853_v59 = vsub.f32 %v6251_v12, %v6287_v34  ;;  %v6398_v12 = vsub.f32 %v13851_v14, %v6397_v1  ;;  %v6411_v47 = vand.u32 4294901760, %v13855_v13 }
 0xbc2   :  { %11464 = vmatpush3.bf16.msra.mxu0 %v12769_v54  ;;  %v6249_v54 = vld [vmem:[#allocation10 + $0x20] sm:$0xff]  ;;  %v6404_v34 = vand.u32 4294901760, %v13853_v59  ;;  %v6399_v5 = vand.u32 4294901760, %v6398_v12  ;;  %v6412_v20 = vsub.f32 %v13855_v13, %v6411_v47 }
 0xbc3   :  { %11465 = vmatprep.subr.bf16.mxu0 %v14240_v40  ;;  %v6281_v38 = vand.u32 4294901760, %v6249_v54 }
 0xbc4   :  { %v6405_v37 = vsub.f32 %v13853_v59, %v6404_v34 }
 0xbc5   :  { %9898 = vmatmul.mubr.f32.vlgmr.msra.gmra.mrb[14].mxu0 %v13711_v42  ;;  %v13831_v56 = vpack.c.bf16 %v6284_v57, %v6281_v38  ;;  %v13849_v36 = vsub.f32 %v6249_v54, %v6281_v38  ;;  %v11517_v38 = vpack.c.bf16 %v6385_v29, %v6378_v51 }
 0xbc6   :  { %11467 = vmatpush3.bf16.msra.mxu0 %v14322_v44  ;;  %9932 = vmatprep.mubr.msk.f32.mxu0 %vm11923_vm0, %v14259_v52  ;;  %v6255_v44 = vld [vmem:[#allocation10 + $0x50] sm:$0xff] }
 0xbc7   :  { %11468 = vmatprep.subr.bf16.mxu0 %v14240_v40  ;;  %11497 = vmatpush3.bf16.msra.mxu1 %v13831_v56  ;;  %v6390_v54 = vand.u32 4294901760, %v13849_v36 }
 0xbc8   :  { %11498 = vmatprep.subr.bf16.mxu1 %v14240_v40 }
 0xbc9   :  { %v6391_v57 = vsub.f32 %v13849_v36, %v6390_v54 }
 0xbca   :  { %11470 = vmatpush3.bf16.msra.mxu0 %v14326_v6  ;;  %v6256_v6 = vld [vmem:[#allocation10 + $0x58] sm:$0xff] }
 0xbcb   :  { %11471 = vmatprep.subr.bf16.mxu0 %v14240_v40  ;;  %11500 = vmatpush3.bf16.msra.mxu1 %v13835_v21  ;;  %v6392_v62 = vand.u32 4294901760, %v6391_v57 }
 0xbcc   :  { %11501 = vmatprep.subr.bf16.mxu1 %v14240_v40 }
 0xbcd   :  { %v11520_v24 = vpack.c.bf16 %v6399_v5, %v6392_v62 }
 0xbce   :  { %11473 = vmatpush3.bf16.msra.mxu0 %v14330_v31  ;;  %v6299_v31 = vand.u32 4294901760, %v6255_v44 }
 0xbcf   :  { %11474 = vmatprep.subr.bf16.mxu0 %v14240_v40  ;;  %11503 = vmatpush3.bf16.msra.mxu1 %v13839_v10 }
 0xbd0   :  { %11504 = vmatprep.subr.bf16.mxu1 %v14240_v40  ;;  %v13862_v50 = vsub.f32 %v6255_v44, %v6299_v31  ;;  %v6406_v44 = vand.u32 4294901760, %v6405_v37  ;;  %v14209_v37 = vand.u32 4294901760, %v13877_v30 }
 0xbd2   :  { %11476 = vmatpush3.bf16.msra.mxu0 %v14333_v32  ;;  %v6302_v32 = vand.u32 4294901760, %v6256_v6  ;;  %v6432_v39 = vand.u32 4294901760, %v13862_v50 }
 0xbd3   :  { %11477 = vmatprep.subr.bf16.mxu0 %v14240_v40 }
 0xbd4   :  { %v13864_v43 = vsub.f32 %v6256_v6, %v6302_v32  ;;  %v6413_v6 = vand.u32 4294901760, %v6412_v20  ;;  %v6433_v27 = vsub.f32 %v13862_v50, %v6432_v39 }
 0xbd6   :  { %11479 = vmatpush3.bf16.msra.mxu0 %v14336_v60  ;;  %v13843_v60 = vpack.c.bf16 %v6302_v32, %v6299_v31  ;;  %v6418_v31 = vand.u32 4294901760, %v13858_v8  ;;  %v6425_v32 = vand.u32 4294901760, %v13860_v18  ;;  %v6434_v49 = vand.u32 4294901760, %v6433_v27 }
 0xbd7   :  { %11480 = vmatprep.subr.bf16.mxu0 %v14240_v40  ;;  %v11541_v27 = vpack.c.bf16 %v13751_v28, %v13749_v35 }
 0xbd8   :  { %11506 = vmatpush3.bf16.msra.mxu1 %v13843_v60  ;;  %v11598_v35 = vpack.c.bf16 %v6425_v32, %v6418_v31 }
 0xbd9   :  { %11507 = vmatprep.subr.bf16.mxu1 %v14240_v40 }
 0xbda   :  { %11482 = vmatpush3.bf16.msra.mxu0 %v14338_v48  ;;  %v6257_v48 = vld [vmem:[#allocation10 + $0x60] sm:$0xff] }
 0xbdb   :  { %11483 = vmatprep.subr.bf16.mxu0 %v14240_v40 }
 0xbde   :  { %11485 = vmatpush3.bf16.msra.mxu0 %v14340_v45  ;;  %v6258_v45 = vld [vmem:[#allocation10 + $0x68] sm:$0xff] }
 0xbdf   :  { %11486 = vmatprep.subr.bf16.mxu0 %v14240_v40  ;;  %v6308_v53 = vand.u32 4294901760, %v6258_v45 }
 0xbe1   :  { %v13869_v19 = vsub.f32 %v6258_v45, %v6308_v53  ;;  %v6419_v45 = vsub.f32 %v13858_v8, %v6418_v31 }
 0xbe2   :  { %11488 = vmatpush3.bf16.msra.mxu0 %v14342_v22  ;;  %v6305_v22 = vand.u32 4294901760, %v6257_v48 }
 0xbe3   :  { %v14211_v41 = vand.u32 4294901760, %v13869_v19 }
 0xbe4   :  { %v13847_v3 = vpack.c.bf16 %v6308_v53, %v6305_v22  ;;  %v13867_v58 = vsub.f32 %v6257_v48, %v6305_v22  ;;  %v11523_v48 = vpack.c.bf16 %v6413_v6, %v6406_v44  ;;  %v6426_v22 = vsub.f32 %v13860_v18, %v6425_v32 }
 0xbe5   :  { %9933 = vmatmul.mubr.f32.vlgmr.msra.gmra.mrb[14].mxu0 %v13711_v42  ;;  %v13875_v42 = vsub.f32 %v6259_v25, %v6311_v46  ;;  %v6420_v53 = vand.u32 4294901760, %v6419_v45  ;;  %v6439_v46 = vand.u32 4294901760, %v13864_v43  ;;  %v6454_v57 = vsub.f32 %v13869_v19, %v14211_v41 }
 0xbe6   :  { %11509 = vmatpush3.bf16.msra.mxu1 %v13847_v3  ;;  %v6427_v25 = vand.u32 4294901760, %v6426_v22  ;;  %v14212_v17 = vand.u32 4294901760, %v13867_v58  ;;  %v6468_v6 = vsub.f32 %v13877_v30, %v14209_v37 }
 0xbe7   :  { %11510 = vmatprep.subr.bf16.mxu1 %v14240_v40  ;;  %v6440_v11 = vsub.f32 %v13864_v43, %v6439_v46  ;;  %v6455_v62 = vand.u32 4294901760, %v6454_v57  ;;  %v14210_v5 = vand.u32 4294901760, %v13875_v42  ;;  %v11556_v57 = vpack.c.bf16 %v13869_v19, %v13867_v58 }
 0xbe8   :  { %v11526_v4 = vpack.c.bf16 %v6427_v25, %v6420_v53  ;;  %v6447_v29 = vsub.f32 %v13867_v58, %v14212_v17  ;;  %v6469_v22 = vand.u32 4294901760, %v6468_v6  ;;  %v11538_v25 = vpack.c.bf16 %v13747_v26, %v13745_v15 }
 0xbe9   :  { %v6441_v2 = vand.u32 4294901760, %v6440_v11  ;;  %v6461_v44 = vsub.f32 %v13875_v42, %v14210_v5  ;;  %v11544_v11 = vpack.c.bf16 %v13851_v14, %v13849_v36  ;;  %v11592_v15 = vpack.c.bf16 %v6397_v1, %v6390_v54 }
 0xbea   :  { %11512 = vmatpush3.bf16.msra.mxu1 %v13873_v63  ;;  %v6448_v12 = vand.u32 4294901760, %v6447_v29  ;;  %v11553_v29 = vpack.c.bf16 %v13864_v43, %v13862_v50  ;;  %v11595_v26 = vpack.c.bf16 %v6411_v47, %v6404_v34  ;;  %v11601_v28 = vpack.c.bf16 %v6439_v46, %v6432_v39 }
 0xbeb   :  { %11513 = vmatprep.subr.bf16.mxu1 %v14240_v40  ;;  %v11529_v51 = vpack.c.bf16 %v6441_v2, %v6434_v49  ;;  %v6462_v45 = vand.u32 4294901760, %v6461_v44  ;;  %v11547_v49 = vpack.c.bf16 %v13855_v13, %v13853_v59  ;;  %v11550_v2 = vpack.c.bf16 %v13860_v18, %v13858_v8 }
 0xbec   :  { %v11532_v20 = vpack.c.bf16 %v6455_v62, %v6448_v12  ;;  %v11559_v12 = vpack.c.bf16 %v13877_v30, %v13875_v42  ;;  %v14357_v36 = vand.u32 4294901760, %v13867_v58  ;;  %v14358_v14 = vand.u32 4294901760, %v13869_v19 }
 0xbed   :  { %v11535_v53 = vpack.c.bf16 %v6469_v22, %v6462_v45  ;;  %v14359_v13 = vand.u32 4294901760, %v13875_v42  ;;  %v14360_v8 = vand.u32 4294901760, %v13877_v30 }
 0xbee   :  { %v11604_v59 = vpack.c.bf16 %v14358_v14, %v14357_v36 }
 0xbef   :  { %v11607_v18 = vpack.c.bf16 %v14360_v8, %v14359_v13 }
 0xcb8   :  { %v6235_v62 = vpop.f32.mrb[14].mxu0 }
 0xcb9   :  { %v6239_v44 = vadd.f32 %v13033_v0, %v6235_v62  ;;  %v9934_v6 = vpop.f32.mrb[15].mxu0  ;;  %v11586_v0 = vpack.c.bf16 %v6369_v55, %v6362_v33 }
 0xcbb   :  { %11796 = vtanh.f32 %v6239_v44 }
 0xcc5   :  { %v11797_v45 = vpop.eup %11796 }
 0xcc6   :  { %v13962_v22 = vand.u32 4294901760, %v11797_v45 }
 0xcc8   :  { %v6350_v37 = vsub.f32 %v11797_v45, %v13962_v22 }
 0xcca   :  { %v6351_v5 = vand.u32 4294901760, %v6350_v37 }
 0xccc   :  { %v6352_v41 = vsub.f32 %v6350_v37, %v6351_v5 }
 0xcce   :  { %v6353_v17 = vand.u32 4294901760, %v6352_v41 }
 0xcd0   :  { %9968 = vmatmul.mubr.f32.vlgmr.msra.gmra.mrb[8].mxu1 %v6353_v17 }
 0xcd1   :  { %11515 = vmatpush3.bf16.msra.mxu1 %v13895_v9  ;;  %10002 = vmatprep.mubr.msk.f32.mxu1 %vm11923_vm0, %v14259_v52  ;;  %v11589_v9 = vpack.c.bf16 %v6383_v16, %v6376_v61 }
 0xcd2   :  { %11516 = vmatprep.subr.bf16.mxu1 %v14240_v40 }
 0xcd5   :  { %11518 = vmatpush3.bf16.msra.mxu1 %v11517_v38 }
 0xcd6   :  { %11519 = vmatprep.subr.bf16.mxu1 %v14240_v40 }
 0xcd9   :  { %11521 = vmatpush3.bf16.msra.mxu1 %v11520_v24 }
 0xcda   :  { %11522 = vmatprep.subr.bf16.mxu1 %v14240_v40 }
 0xcdd   :  { %11524 = vmatpush3.bf16.msra.mxu1 %v11523_v48 }
 0xcde   :  { %11525 = vmatprep.subr.bf16.mxu1 %v14240_v40 }
 0xce1   :  { %11527 = vmatpush3.bf16.msra.mxu1 %v11526_v4 }
 0xce2   :  { %11528 = vmatprep.subr.bf16.mxu1 %v14240_v40 }
 0xce5   :  { %11530 = vmatpush3.bf16.msra.mxu1 %v11529_v51 }
 0xce6   :  { %11531 = vmatprep.subr.bf16.mxu1 %v14240_v40 }
 0xce9   :  { %11533 = vmatpush3.bf16.msra.mxu1 %v11532_v20 }
 0xcea   :  { %11534 = vmatprep.subr.bf16.mxu1 %v14240_v40 }
 0xced   :  { %11536 = vmatpush3.bf16.msra.mxu1 %v11535_v53 }
 0xcee   :  { %11537 = vmatprep.subr.bf16.mxu1 %v14240_v40 }
 0xcf0   :  { %10003 = vmatmul.mubr.f32.vlgmr.msra.gmra.mrb[8].mxu1 %v13962_v22 }
 0xcf1   :  { %11539 = vmatpush3.bf16.msra.mxu1 %v11538_v25  ;;  %10037 = vmatprep.mubr.msk.f32.mxu1 %vm11923_vm0, %v14259_v52 }
 0xcf2   :  { %11540 = vmatprep.subr.bf16.mxu1 %v14240_v40 }
 0xcf5   :  { %11542 = vmatpush3.bf16.msra.mxu1 %v11541_v27 }
 0xcf6   :  { %11543 = vmatprep.subr.bf16.mxu1 %v14240_v40 }
 0xcf9   :  { %11545 = vmatpush3.bf16.msra.mxu1 %v11544_v11 }
 0xcfa   :  { %11546 = vmatprep.subr.bf16.mxu1 %v14240_v40 }
 0xcfd   :  { %11548 = vmatpush3.bf16.msra.mxu1 %v11547_v49 }
 0xcfe   :  { %11549 = vmatprep.subr.bf16.mxu1 %v14240_v40 }
 0xd01   :  { %11551 = vmatpush3.bf16.msra.mxu1 %v11550_v2 }
 0xd02   :  { %11552 = vmatprep.subr.bf16.mxu1 %v14240_v40 }
 0xd05   :  { %11554 = vmatpush3.bf16.msra.mxu1 %v11553_v29 }
 0xd06   :  { %11555 = vmatprep.subr.bf16.mxu1 %v14240_v40 }
 0xd09   :  { %11557 = vmatpush3.bf16.msra.mxu1 %v11556_v57 }
 0xd0a   :  { %11558 = vmatprep.subr.bf16.mxu1 %v14240_v40 }
 0xd0d   :  { %11560 = vmatpush3.bf16.msra.mxu1 %v11559_v12 }
 0xd0e   :  { %11561 = vmatprep.subr.bf16.mxu1 %v14240_v40 }
 0xd10   :  { %10038 = vmatmul.mubr.f32.vlgmr.msra.gmra.mrb[8].mxu1 %v6350_v37 }
 0xd11   :  { %11563 = vmatpush3.bf16.msra.mxu1 %v13743_v7  ;;  %10072 = vmatprep.mubr.msk.f32.mxu1 %vm11923_vm0, %v14259_v52 }
 0xd12   :  { %11564 = vmatprep.subr.bf16.mxu1 %v14240_v40 }
 0xd15   :  { %11566 = vmatpush3.bf16.msra.mxu1 %v13755_v23 }
 0xd16   :  { %11567 = vmatprep.subr.bf16.mxu1 %v14240_v40 }
 0xd19   :  { %11569 = vmatpush3.bf16.msra.mxu1 %v13831_v56 }
 0xd1a   :  { %11570 = vmatprep.subr.bf16.mxu1 %v14240_v40 }
 0xd1d   :  { %11572 = vmatpush3.bf16.msra.mxu1 %v13835_v21 }
 0xd1e   :  { %11573 = vmatprep.subr.bf16.mxu1 %v14240_v40 }
 0xd21   :  { %11575 = vmatpush3.bf16.msra.mxu1 %v13839_v10 }
 0xd22   :  { %11576 = vmatprep.subr.bf16.mxu1 %v14240_v40 }
 0xd25   :  { %11578 = vmatpush3.bf16.msra.mxu1 %v13843_v60 }
 0xd26   :  { %11579 = vmatprep.subr.bf16.mxu1 %v14240_v40 }
 0xd29   :  { %11581 = vmatpush3.bf16.msra.mxu1 %v13847_v3 }
 0xd2a   :  { %11582 = vmatprep.subr.bf16.mxu1 %v14240_v40 }
 0xd2d   :  { %11584 = vmatpush3.bf16.msra.mxu1 %v13873_v63 }
 0xd2e   :  { %11585 = vmatprep.subr.bf16.mxu1 %v14240_v40 }
 0xd30   :  { %10073 = vmatmul.mubr.f32.vlgmr.msra.gmra.mrb[8].mxu1 %v6351_v5 }
 0xd31   :  { %11587 = vmatpush3.bf16.msra.mxu1 %v11586_v0  ;;  %10107 = vmatprep.mubr.msk.f32.mxu1 %vm11923_vm0, %v14259_v52 }
 0xd32   :  { %11588 = vmatprep.subr.bf16.mxu1 %v14240_v40 }
 0xd35   :  { %11590 = vmatpush3.bf16.msra.mxu1 %v11589_v9 }
 0xd36   :  { %11591 = vmatprep.subr.bf16.mxu1 %v14240_v40 }
 0xd39   :  { %11593 = vmatpush3.bf16.msra.mxu1 %v11592_v15 }
 0xd3a   :  { %11594 = vmatprep.subr.bf16.mxu1 %v14240_v40 }
 0xd3d   :  { %11596 = vmatpush3.bf16.msra.mxu1 %v11595_v26 }
 0xd3e   :  { %11597 = vmatprep.subr.bf16.mxu1 %v14240_v40 }
 0xd41   :  { %11599 = vmatpush3.bf16.msra.mxu1 %v11598_v35 }
 0xd42   :  { %11600 = vmatprep.subr.bf16.mxu1 %v14240_v40 }
 0xd45   :  { %11602 = vmatpush3.bf16.msra.mxu1 %v11601_v28 }
 0xd46   :  { %11603 = vmatprep.subr.bf16.mxu1 %v14240_v40 }
 0xd49   :  { %11605 = vmatpush3.bf16.msra.mxu1 %v11604_v59 }
 0xd4a   :  { %11606 = vmatprep.subr.bf16.mxu1 %v14240_v40 }
 0xd4d   :  { %11608 = vmatpush3.bf16.msra.mxu1 %v11607_v18 }
 0xd4e   :  { %11609 = vmatprep.subr.bf16.mxu1 %v14240_v40 }
 0xd50   :  { %10108 = vmatmul.mubr.f32.vlgmr.msra.gmra.mrb[8].mxu1 %v13962_v22 }
 0xd51   :  { %11611 = vmatpush3.bf16.msra.mxu1 %v13743_v7  ;;  %10142 = vmatprep.mubr.msk.f32.mxu1 %vm11923_vm0, %v14259_v52  ;;  %v6928_v52 = vld [vmem:[%s14086_s5] ss:$0 sm:$0xff] }
 0xd52   :  { %11612 = vmatprep.subr.bf16.mxu1 %v14240_v40 }
 0xd55   :  { %11614 = vmatpush3.bf16.msra.mxu1 %v13755_v23 }
 0xd56   :  { %11615 = vmatprep.subr.bf16.mxu1 %v14240_v40 }
 0xd59   :  { %11617 = vmatpush3.bf16.msra.mxu1 %v13831_v56 }
 0xd5a   :  { %11618 = vmatprep.subr.bf16.mxu1 %v14240_v40 }
 0xd5d   :  { %11620 = vmatpush3.bf16.msra.mxu1 %v13835_v21 }
 0xd5e   :  { %11621 = vmatprep.subr.bf16.mxu1 %v14240_v40 }
 0xd61   :  { %11623 = vmatpush3.bf16.msra.mxu1 %v13839_v10 }
 0xd62   :  { %11624 = vmatprep.subr.bf16.mxu1 %v14240_v40 }
 0xd65   :  { %11626 = vmatpush3.bf16.msra.mxu1 %v13843_v60 }
 0xd66   :  { %11627 = vmatprep.subr.bf16.mxu1 %v14240_v40 }
 0xd69   :  { %11629 = vmatpush3.bf16.msra.mxu1 %v13847_v3 }
 0xd6a   :  { %11630 = vmatprep.subr.bf16.mxu1 %v14240_v40 }
 0xd6d   :  { %11632 = vmatpush3.bf16.msra.mxu1 %v13873_v63 }
 0xd70   :  { %10143 = vmatmul.mubr.f32.vlgmr.msra.gmra.mrb[8].mxu1 %v13962_v22 }
 0xe43   :  { %v6905_v7 = vpop.f32.mrb[8].mxu1 }
 0xe44   :  { %v11641_v23 = vadd.f32 %v6928_v52, %v6905_v7  ;;  %v10144_v56 = vpop.f32.mrb[9].mxu1 }
 0xe46   :  { %6909 = vst [vmem:[#allocation12] sm:$0xff] %v11641_v23 }
 0xe47   :  { %11897 = shalt.err (!%p11894_p8)
}
 0xe48   :  { %s11898_s27 = scalar_lea.hbm %s14087_s6, 128 }
 0xe49   :  { %p11899_p9 = scmp.ne.s32.totalorder %s14087_s6, %s11898_s27  ;;  %p11902_p10 = scmp.lt.u32.totalorder %s11898_s27, %s14087_s6 }
 0xe4b   :  { %p11904_p11 = pnand %p11902_p10, %p11899_p9 }
 0xe4d   :  { %11907 = shalt.err (!%p11904_p11)
}
 0xe4e   :  { %6919 = dma.vmem_to_hbm [thread:$0]  %s6917_s22, 128, %s14087_s6, [#allocation6]  }
 0xe4f   :  { %11914 = dma.done.wait [#allocation6], 128  }
 0xe50   :  { %11915 = vsyncadd [#allocation6], 4294967168 }
 0xe51   :  { %6923 = vsyncpa [#allocation5], 1 }
 0xe52   :  { %6924 = vsyncpa [#allocation8], 1 }
 0xe53   :  { %6925 = vsyncpa [#allocation11], 1 }
 0xe54   :  { %6926 = vsyncpa [#allocation6], 1 }

</bundles_post_ra>
